<compile_context>
chip_gen: v5e
topology: v5e:2x2
jax: 0.10.0
libtpu: 0.0.40
codegen_flags: <defaults>
</compile_context>

<pallas_src>
import jax
import jax.numpy as jnp
from jax.experimental import pallas as pl
from jax.experimental.pallas import tpu as pltpu

EPS = 1e-5
LANE = 128


def _round_up(x, m):
    return (x + m - 1) // m * m


# ------------------------- Pallas: tiled matmul + bias -------------------------

def _matmul_bias_kernel(a_ref, b_ref, bias_ref, o_ref, acc_ref):
    @pl.when(pl.program_id(2) == 0)
    def _():
        acc_ref[...] = jnp.zeros_like(acc_ref)

    acc_ref[...] += jnp.dot(a_ref[...], b_ref[...],
                            preferred_element_type=jnp.float32)

    @pl.when(pl.program_id(2) == pl.num_programs(2) - 1)
    def _():
        o_ref[...] = (acc_ref[...] + bias_ref[...]).astype(o_ref.dtype)


def matmul_bias(a, b, bias, out_dtype=jnp.bfloat16):
    """(M,K) @ (K,N) + bias(N); bf16 operands, f32 MXU accumulation, tiled grid."""
    M, K = a.shape
    K2, N = b.shape
    assert K == K2 and N % LANE == 0 and K % LANE == 0

    tn = LANE                                   # N pre-padded -> lane-dense stores
    tk = 256 if K % 256 == 0 else LANE          # K pre-padded to multiple of 128
    tm = min(256, _round_up(M, 16))
    Mp = _round_up(M, tm)

    a = a.astype(jnp.bfloat16)
    b = b.astype(jnp.bfloat16)
    if Mp != M:
        a = jnp.pad(a, ((0, Mp - M), (0, 0)))
    bias2 = bias.reshape(1, N).astype(jnp.float32)

    out = pl.pallas_call(
        _matmul_bias_kernel,
        out_shape=jax.ShapeDtypeStruct((Mp, N), out_dtype),
        grid=(Mp // tm, N // tn, K // tk),
        in_specs=[
            pl.BlockSpec((tm, tk), lambda i, j, k: (i, k)),
            pl.BlockSpec((tk, tn), lambda i, j, k: (k, j)),
            pl.BlockSpec((1, tn), lambda i, j, k: (0, j)),
        ],
        out_specs=pl.BlockSpec((tm, tn), lambda i, j, k: (i, j)),
        scratch_shapes=[pltpu.VMEM((tm, tn), jnp.float32)],
        compiler_params=pltpu.CompilerParams(
            dimension_semantics=("parallel", "parallel", "arbitrary")),
    )(a, b, bias2)
    return out[:M] if Mp != M else out


# --------------- Pallas: InstanceNorm + ReLU (+skip add / +tanh) ---------------

def _make_in_kernel(with_skip, with_tanh):
    def kernel(*refs):
        if with_skip:
            x_ref, s_ref, o_ref = refs
        else:
            x_ref, o_ref = refs
        x = x_ref[...].astype(jnp.float32)               # (1, HW, 128)
        inv_hw = 1.0 / x.shape[1]
        mean = jnp.sum(x, axis=1, keepdims=True) * inv_hw
        ex2 = jnp.sum(x * x, axis=1, keepdims=True) * inv_hw
        var = jnp.maximum(ex2 - mean * mean, 0.0)        # one-pass biased var
        y = jnp.maximum((x - mean) * jax.lax.rsqrt(var + EPS), 0.0)
        if with_tanh:
            y = jnp.tanh(y)
        if with_skip:
            y = y + s_ref[...].astype(jnp.float32)
        o_ref[...] = y.astype(o_ref.dtype)
    return kernel


def instance_norm_relu(x_nhwc, skip=None, apply_tanh=False,
                       out_dtype=jnp.bfloat16):
    """InstanceNorm2d(affine=False)+ReLU, channel-blocked (grid=(N, C//128))."""
    N, H, W, C = x_nhwc.shape
    assert C % LANE == 0
    HW = H * W
    x3 = x_nhwc.reshape(N, HW, C)
    spec = pl.BlockSpec((1, HW, LANE), lambda n, c: (n, 0, c))
    kernel = _make_in_kernel(skip is not None, apply_tanh)

    args, in_specs = [x3], [spec]
    if skip is not None:
        args.append(skip.reshape(N, HW, C))
        in_specs.append(spec)

    out = pl.pallas_call(
        kernel,
        out_shape=jax.ShapeDtypeStruct((N, HW, C), out_dtype),
        grid=(N, C // LANE),
        in_specs=in_specs,
        out_specs=spec,
        compiler_params=pltpu.CompilerParams(
            dimension_semantics=("parallel", "parallel")),
    )(*args)
    return out.reshape(N, H, W, C)


# ------------------------- plain-JAX glue (layout/packing) ---------------------

def pack_conv(w_oihw, bias, cin_p):
    """OIHW conv weight -> lane-dense (kh*kw*cin_p, cout_p) bf16 matrix."""
    cout, cin, kh, kw = w_oihw.shape
    cout_p = _round_up(cout, LANE)
    w = jnp.transpose(w_oihw, (2, 3, 1, 0))                       # (kh,kw,ci,co)
    w = jnp.pad(w, ((0, 0), (0, 0), (0, cin_p - cin), (0, cout_p - cout)))
    w_mat = w.reshape(kh * kw * cin_p, cout_p).astype(jnp.bfloat16)
    b_p = jnp.pad(bias, (0, cout_p - cout)).astype(jnp.float32)
    return w_mat, b_p, kh, kw


def im2col(x, kh, kw, stride):
    """x: (N, Hp, Wp, C) already padded -> (N, OH, OW, kh*kw*C)."""
    # TODO(synk): reading taps in-kernel (shifted windows via index_map) would
    # avoid materializing the kh*kw-times-inflated patch tensor in HBM.
    N, Hp, Wp, C = x.shape
    oh = (Hp - kh) // stride + 1
    ow = (Wp - kw) // stride + 1
    cols = []
    for i in range(kh):
        for j in range(kw):
            cols.append(x[:, i:i + (oh - 1) * stride + 1:stride,
                             j:j + (ow - 1) * stride + 1:stride, :])
    return jnp.concatenate(cols, axis=-1), oh, ow


def conv_im2col(x_padded, w_mat, bias_p, kh, kw, stride):
    N, _, _, Cp = x_padded.shape
    cout_p = w_mat.shape[1]
    patches, oh, ow = im2col(x_padded, kh, kw, stride)
    A = patches.reshape(N * oh * ow, kh * kw * Cp)
    y = matmul_bias(A, w_mat, bias_p)
    return y.reshape(N, oh, ow, cout_p)


def down_layer(x, w, b, stride, skip=None, apply_tanh=False,
               out_dtype=jnp.bfloat16):
    """Conv2d(padding=1, reflect) + InstanceNorm + ReLU (+residual / +tanh)."""
    w_mat, b_p, kh, kw = pack_conv(w, b, x.shape[-1])
    xp = jnp.pad(x, ((0, 0), (1, 1), (1, 1), (0, 0)), mode="reflect")
    y = conv_im2col(xp, w_mat, b_p, kh, kw, stride)
    return instance_norm_relu(y, skip=skip, apply_tanh=apply_tanh,
                              out_dtype=out_dtype)


def up_layer(x, wT, b, stride=2, pad=1, out_pad=1):
    """ConvTranspose2d(stride=2, padding=1, output_padding=1) + IN + ReLU."""
    cin, cout, kh, kw = wT.shape
    N, H, W, Cp = x.shape
    # TODO(synk): sub-pixel decomposition would avoid the ~75% zero-MACs from
    # zero-dilating the input; kept as a correct fractionally-strided conv here.
    xd = jnp.zeros((N, (H - 1) * stride + 1, (W - 1) * stride + 1, Cp), x.dtype)
    xd = xd.at[:, ::stride, ::stride, :].set(x)
    lo = kh - 1 - pad
    hi = kh - 1 - pad + out_pad
    xp = jnp.pad(xd, ((0, 0), (lo, hi), (lo, hi), (0, 0)))
    w_eq = jnp.transpose(jnp.flip(wT, axis=(2, 3)), (1, 0, 2, 3))  # (co,ci,kh,kw)
    w_mat, b_p, kh, kw = pack_conv(w_eq, b, Cp)
    y = conv_im2col(xp, w_mat, b_p, kh, kw, 1)
    return instance_norm_relu(y)


# ------------------------------ generator forward ------------------------------
# TODO(synk): torch.cuda.amp.autocast runs convs in fp16 on CUDA; here convs run
# in bf16 (MXU native) with f32 accumulation and f32 norm statistics.

def generator_forward(params, x_nchw):
    x = jnp.transpose(x_nchw, (0, 2, 3, 1)).astype(jnp.float32)   # NCHW -> NHWC
    cin = x.shape[-1]
    cin_p = _round_up(cin, LANE)
    x = jnp.pad(x, ((0, 0), (0, 0), (0, 0), (0, cin_p - cin)))
    x = x.astype(jnp.bfloat16)

    # Input stack (downsampling)
    for (w, b, stride) in params["input"]:
        x = down_layer(x, w, b, stride)
    # Residual stack: x = x + convLayer(x)  (skip add fused into the IN kernel)
    for (w, b) in params["res"]:
        x = down_layer(x, w, b, 1, skip=x)
    # Output stack (upsampling)
    for (wT, b) in params["up"]:
        x = up_layer(x, wT, b)
    # Final conv + IN + ReLU with tanh fused into the norm epilogue
    w, b = params["out"]
    x = down_layer(x, w, b, 1, apply_tanh=True, out_dtype=jnp.float32)

    x = x[..., :w.shape[0]]                                       # drop channel pad
    x = jnp.pad(x, ((0, 0), (4, 4), (4, 4), (0, 0)), mode="reflect")
    return jnp.transpose(x, (0, 3, 1, 2)).astype(jnp.float32)     # NHWC -> NCHW


# --------------------------- deterministic param init --------------------------

def init_conv(key, cout, cin, kh, kw):
    k1, k2 = jax.random.split(key)
    fan_in = cin * kh * kw
    bound = 1.0 / (fan_in ** 0.5)
    w = jax.random.uniform(k1, (cout, cin, kh, kw), jnp.float32, -bound, bound)
    b = jax.random.uniform(k2, (cout,), jnp.float32, -bound, bound)
    return w, b


def init_convT(key, cin, cout, kh, kw):
    k1, k2 = jax.random.split(key)
    fan_in = cout * kh * kw
    bound = 1.0 / (fan_in ** 0.5)
    w = jax.random.uniform(k1, (cin, cout, kh, kw), jnp.float32, -bound, bound)
    b = jax.random.uniform(k2, (cout,), jnp.float32, -bound, bound)
    return w, b


if __name__ == "__main__":
    key = jax.random.PRNGKey(0)
    img_channels = 3
    hidden = [8, 16, 32]      # small stand-ins for [64, 128, 256]
    n_res = 2                 # small stand-in for 9 residual layers
    keys = jax.random.split(key, 16)

    params = {
        "input": [
            init_conv(keys[0], hidden[0], img_channels, 7, 7) + (1,),
            init_conv(keys[1], hidden[1], hidden[0], 3, 3) + (2,),
            init_conv(keys[2], hidden[2], hidden[1], 3, 3) + (2,),
        ],
        "res": [init_conv(keys[3 + i], hidden[2], hidden[2], 3, 3)
                for i in range(n_res)],
        "up": [
            init_convT(keys[3 + n_res], hidden[2], hidden[1], 3, 3),
            init_convT(keys[4 + n_res], hidden[1], hidden[0], 3, 3),
        ],
        "out": init_conv(keys[5 + n_res], img_channels, hidden[0], 7, 7),
    }

    x = jax.random.normal(keys[10], (2, img_channels, 16, 16), jnp.float32)
    fwd = jax.jit(lambda inp: generator_forward(params, inp))
    out = jax.block_until_ready(fwd(x))
    assert out.shape == (2, 3, 16, 16), out.shape
    assert bool(jnp.all(jnp.isfinite(out)))
    print("KERNEL_OK")
</pallas_src>

<mosaic_0001>
module attributes {stable_mosaic.version = 11 : i64} {
  func.func @_matmul_bias_kernel(%arg0: i32, %arg1: i32, %arg2: i32, %arg3: memref<256x128xbf16, #tpu.memory_space<vmem>>, %arg4: memref<128x128xbf16, #tpu.memory_space<vmem>>, %arg5: memref<1x128xf32, #tpu.memory_space<vmem>>, %arg6: memref<256x128xbf16, #tpu.memory_space<vmem>>, %arg7: memref<256x128xf32, #tpu.memory_space<vmem>>) attributes {dimension_semantics = [#tpu.dimension_semantics<parallel>, #tpu.dimension_semantics<parallel>, #tpu.dimension_semantics<arbitrary>], iteration_bounds = array<i64: 2, 1, 49>, scalar_prefetch = 0 : i64, scratch_operands = 1 : i64, tpu.core_type = #tpu.core_type<tc>, window_params = [{transform_indices = @transform_0, window_bounds = array<i64: 256, 128>}, {transform_indices = @transform_1, window_bounds = array<i64: 128, 128>}, {transform_indices = @transform_2, window_bounds = array<i64: 1, 128>}, {transform_indices = @transform_3, window_bounds = array<i64: 256, 128>}]} {
    %c0_i32 = arith.constant 0 : i32
    %0 = arith.cmpi eq, %arg2, %c0_i32 : i32
    %1 = arith.extui %0 : i1 to i32
    %c0_i32_0 = arith.constant 0 : i32
    %2 = arith.cmpi ne, %1, %c0_i32_0 : i32
    scf.if %2 {
      %cst_9 = arith.constant 0.000000e+00 : f32
      %12 = vector.broadcast %cst_9 : f32 to vector<256x128xf32>
      %c0_10 = arith.constant 0 : index
      %c0_11 = arith.constant 0 : index
      %13 = vector.load %arg7[%c0_10, %c0_11] : memref<256x128xf32, #tpu.memory_space<vmem>>, vector<256x128xf32>
      tpu.vector_store %arg7[%c0_10, %c0_11], %12 {strides = array<i32>} : memref<256x128xf32, #tpu.memory_space<vmem>>, vector<256x128xf32>,
    } else {
    }
    %c0 = arith.constant 0 : index
    %c0_1 = arith.constant 0 : index
    %3 = vector.load %arg7[%c0, %c0_1] : memref<256x128xf32, #tpu.memory_space<vmem>>, vector<256x128xf32>
    %c0_2 = arith.constant 0 : index
    %c0_3 = arith.constant 0 : index
    %4 = vector.load %arg3[%c0_2, %c0_3] : memref<256x128xbf16, #tpu.memory_space<vmem>>, vector<256x128xbf16>
    %c0_4 = arith.constant 0 : index
    %c0_5 = arith.constant 0 : index
    %5 = vector.load %arg4[%c0_4, %c0_5] : memref<128x128xbf16, #tpu.memory_space<vmem>>, vector<128x128xbf16>
    %cst = arith.constant dense<0.000000e+00> : vector<256x128xf32>
    %6 = tpu.matmul %4, %5, %cst {dimension_numbers = #tpu.dot_dimension_numbers<[1], [0], [0], [1], [0, 0, 1, 1], [], []>} : vector<256x128xbf16>, vector<128x128xbf16>, vector<256x128xf32> -> vector<256x128xf32>
    %7 = arith.addf %3, %6 : vector<256x128xf32>
    %c0_6 = arith.constant 0 : index
    %c0_7 = arith.constant 0 : index
    %8 = vector.load %arg7[%c0_6, %c0_7] : memref<256x128xf32, #tpu.memory_space<vmem>>, vector<256x128xf32>
    tpu.vector_store %arg7[%c0_6, %c0_7], %7 {strides = array<i32>} : memref<256x128xf32, #tpu.memory_space<vmem>>, vector<256x128xf32>,
    %c48_i32 = arith.constant 48 : i32
    %9 = arith.cmpi eq, %arg2, %c48_i32 : i32
    %10 = arith.extui %9 : i1 to i32
    %c0_i32_8 = arith.constant 0 : i32
    %11 = arith.cmpi ne, %10, %c0_i32_8 : i32
    scf.if %11 {
      %c0_9 = arith.constant 0 : index
      %c0_10 = arith.constant 0 : index
      %12 = vector.load %arg7[%c0_9, %c0_10] : memref<256x128xf32, #tpu.memory_space<vmem>>, vector<256x128xf32>
      %c0_11 = arith.constant 0 : index
      %c0_12 = arith.constant 0 : index
      %13 = vector.load %arg5[%c0_11, %c0_12] : memref<1x128xf32, #tpu.memory_space<vmem>>, vector<1x128xf32>
      %14 = vector.broadcast %13 : vector<1x128xf32> to vector<256x128xf32>
      %15 = arith.addf %12, %14 : vector<256x128xf32>
      %16 = arith.truncf %15 : vector<256x128xf32> to vector<256x128xbf16>
      %c0_13 = arith.constant 0 : index
      %c0_14 = arith.constant 0 : index
      %17 = vector.load %arg6[%c0_13, %c0_14] : memref<256x128xbf16, #tpu.memory_space<vmem>>, vector<256x128xbf16>
      tpu.vector_store %arg6[%c0_13, %c0_14], %16 {strides = array<i32>} : memref<256x128xbf16, #tpu.memory_space<vmem>>, vector<256x128xbf16>,
    } else {
    }
    return
  }
  func.func @transform_0(%arg0: i32, %arg1: i32, %arg2: i32) -> (i32, i32) {
    %c0_i32 = arith.constant 0 : i32
    return %arg0, %arg2 : i32, i32
  }
  func.func @transform_1(%arg0: i32, %arg1: i32, %arg2: i32) -> (i32, i32) {
    %c0_i32 = arith.constant 0 : i32
    return %arg2, %arg1 : i32, i32
  }
  func.func @transform_2(%arg0: i32, %arg1: i32, %arg2: i32) -> (i32, i32) {
    %c0_i32 = arith.constant 0 : i32
    %c0_i32_0 = arith.constant 0 : i32
    return %c0_i32, %arg1 : i32, i32
  }
  func.func @transform_3(%arg0: i32, %arg1: i32, %arg2: i32) -> (i32, i32) {
    %c0_i32 = arith.constant 0 : i32
    return %arg0, %arg1 : i32, i32
  }
}

module attributes {stable_mosaic.version = 11 : i64} {
  func.func @kernel(%arg0: i32, %arg1: i32, %arg2: memref<1x144x128xbf16, #tpu.memory_space<vmem>>, %arg3: memref<1x144x128xbf16, #tpu.memory_space<vmem>>) attributes {dimension_semantics = [#tpu.dimension_semantics<parallel>, #tpu.dimension_semantics<parallel>], iteration_bounds = array<i64: 2, 1>, scalar_prefetch = 0 : i64, scratch_operands = 0 : i64, tpu.core_type = #tpu.core_type<tc>, window_params = [{transform_indices = @transform_0, window_bounds = array<i64: 1, 144, 128>}, {transform_indices = @transform_1, window_bounds = array<i64: 1, 144, 128>}]} {
    %c0 = arith.constant 0 : index
    %c0_0 = arith.constant 0 : index
    %c0_1 = arith.constant 0 : index
    %0 = vector.load %arg2[%c0, %c0_0, %c0_1] : memref<1x144x128xbf16, #tpu.memory_space<vmem>>, vector<1x144x128xbf16>
    %1 = arith.extf %0 : vector<1x144x128xbf16> to vector<1x144x128xf32>
    %cst = arith.constant dense<0.000000e+00> : vector<1x128xf32>
    %2 = vector.multi_reduction <add>, %1, %cst [1] : vector<1x144x128xf32> to vector<1x128xf32>
    %3 = vector.shape_cast %2 : vector<1x128xf32> to vector<1x1x128xf32>
    %cst_2 = arith.constant 0.0069444445 : f32
    %4 = vector.broadcast %cst_2 : f32 to vector<1x1x128xf32>
    %5 = arith.mulf %3, %4 : vector<1x1x128xf32>
    %6 = arith.mulf %1, %1 : vector<1x144x128xf32>
    %cst_3 = arith.constant dense<0.000000e+00> : vector<1x128xf32>
    %7 = vector.multi_reduction <add>, %6, %cst_3 [1] : vector<1x144x128xf32> to vector<1x128xf32>
    %8 = vector.shape_cast %7 : vector<1x128xf32> to vector<1x1x128xf32>
    %cst_4 = arith.constant 0.0069444445 : f32
    %9 = vector.broadcast %cst_4 : f32 to vector<1x1x128xf32>
    %10 = arith.mulf %8, %9 : vector<1x1x128xf32>
    %11 = arith.mulf %5, %5 : vector<1x1x128xf32>
    %12 = arith.subf %10, %11 : vector<1x1x128xf32>
    %cst_5 = arith.constant 0.000000e+00 : f32
    %13 = vector.broadcast %cst_5 : f32 to vector<1x1x128xf32>
    %14 = arith.maximumf %12, %13 : vector<1x1x128xf32>
    %15 = vector.broadcast %5 : vector<1x1x128xf32> to vector<1x144x128xf32>
    %16 = arith.subf %1, %15 : vector<1x144x128xf32>
    %cst_6 = arith.constant 9.99999974E-6 : f32
    %17 = vector.broadcast %cst_6 : f32 to vector<1x1x128xf32>
    %18 = arith.addf %14, %17 : vector<1x1x128xf32>
    %19 = math.rsqrt %18 : vector<1x1x128xf32>
    %20 = vector.broadcast %19 : vector<1x1x128xf32> to vector<1x144x128xf32>
    %21 = arith.mulf %16, %20 : vector<1x144x128xf32>
    %cst_7 = arith.constant 0.000000e+00 : f32
    %22 = vector.broadcast %cst_7 : f32 to vector<1x144x128xf32>
    %23 = arith.maximumf %21, %22 : vector<1x144x128xf32>
    %24 = arith.truncf %23 : vector<1x144x128xf32> to vector<1x144x128xbf16>
    %c0_8 = arith.constant 0 : index
    %c0_9 = arith.constant 0 : index
    %c0_10 = arith.constant 0 : index
    %25 = vector.load %arg3[%c0_8, %c0_9, %c0_10] : memref<1x144x128xbf16, #tpu.memory_space<vmem>>, vector<1x144x128xbf16>
    tpu.vector_store %arg3[%c0_8, %c0_9, %c0_10], %24 {strides = array<i32>} : memref<1x144x128xbf16, #tpu.memory_space<vmem>>, vector<1x144x128xbf16>,
    return
  }
  func.func @transform_0(%arg0: i32, %arg1: i32) -> (i32, i32, i32) {
    %c0_i32 = arith.constant 0 : i32
    %c0_i32_0 = arith.constant 0 : i32
    return %arg0, %c0_i32, %arg1 : i32, i32, i32
  }
  func.func @transform_1(%arg0: i32, %arg1: i32) -> (i32, i32, i32) {
    %c0_i32 = arith.constant 0 : i32
    %c0_i32_0 = arith.constant 0 : i32
    return %arg0, %c0_i32, %arg1 : i32, i32, i32
  }
}

module attributes {stable_mosaic.version = 11 : i64} {
  func.func @_matmul_bias_kernel(%arg0: i32, %arg1: i32, %arg2: i32, %arg3: memref<80x128xbf16, #tpu.memory_space<vmem>>, %arg4: memref<128x128xbf16, #tpu.memory_space<vmem>>, %arg5: memref<1x128xf32, #tpu.memory_space<vmem>>, %arg6: memref<80x128xbf16, #tpu.memory_space<vmem>>, %arg7: memref<80x128xf32, #tpu.memory_space<vmem>>) attributes {dimension_semantics = [#tpu.dimension_semantics<parallel>, #tpu.dimension_semantics<parallel>, #tpu.dimension_semantics<arbitrary>], iteration_bounds = array<i64: 1, 1, 9>, scalar_prefetch = 0 : i64, scratch_operands = 1 : i64, tpu.core_type = #tpu.core_type<tc>, window_params = [{transform_indices = @transform_0, window_bounds = array<i64: 80, 128>}, {transform_indices = @transform_1, window_bounds = array<i64: 128, 128>}, {transform_indices = @transform_2, window_bounds = array<i64: 1, 128>}, {transform_indices = @transform_3, window_bounds = array<i64: 80, 128>}]} {
    %c0_i32 = arith.constant 0 : i32
    %0 = arith.cmpi eq, %arg2, %c0_i32 : i32
    %1 = arith.extui %0 : i1 to i32
    %c0_i32_0 = arith.constant 0 : i32
    %2 = arith.cmpi ne, %1, %c0_i32_0 : i32
    scf.if %2 {
      %cst_9 = arith.constant 0.000000e+00 : f32
      %12 = vector.broadcast %cst_9 : f32 to vector<80x128xf32>
      %c0_10 = arith.constant 0 : index
      %c0_11 = arith.constant 0 : index
      %13 = vector.load %arg7[%c0_10, %c0_11] : memref<80x128xf32, #tpu.memory_space<vmem>>, vector<80x128xf32>
      tpu.vector_store %arg7[%c0_10, %c0_11], %12 {strides = array<i32>} : memref<80x128xf32, #tpu.memory_space<vmem>>, vector<80x128xf32>,
    } else {
    }
    %c0 = arith.constant 0 : index
    %c0_1 = arith.constant 0 : index
    %3 = vector.load %arg7[%c0, %c0_1] : memref<80x128xf32, #tpu.memory_space<vmem>>, vector<80x128xf32>
    %c0_2 = arith.constant 0 : index
    %c0_3 = arith.constant 0 : index
    %4 = vector.load %arg3[%c0_2, %c0_3] : memref<80x128xbf16, #tpu.memory_space<vmem>>, vector<80x128xbf16>
    %c0_4 = arith.constant 0 : index
    %c0_5 = arith.constant 0 : index
    %5 = vector.load %arg4[%c0_4, %c0_5] : memref<128x128xbf16, #tpu.memory_space<vmem>>, vector<128x128xbf16>
    %cst = arith.constant dense<0.000000e+00> : vector<80x128xf32>
    %6 = tpu.matmul %4, %5, %cst {dimension_numbers = #tpu.dot_dimension_numbers<[1], [0], [0], [1], [0, 0, 1, 1], [], []>} : vector<80x128xbf16>, vector<128x128xbf16>, vector<80x128xf32> -> vector<80x128xf32>
    %7 = arith.addf %3, %6 : vector<80x128xf32>
    %c0_6 = arith.constant 0 : index
    %c0_7 = arith.constant 0 : index
    %8 = vector.load %arg7[%c0_6, %c0_7] : memref<80x128xf32, #tpu.memory_space<vmem>>, vector<80x128xf32>
    tpu.vector_store %arg7[%c0_6, %c0_7], %7 {strides = array<i32>} : memref<80x128xf32, #tpu.memory_space<vmem>>, vector<80x128xf32>,
    %c8_i32 = arith.constant 8 : i32
    %9 = arith.cmpi eq, %arg2, %c8_i32 : i32
    %10 = arith.extui %9 : i1 to i32
    %c0_i32_8 = arith.constant 0 : i32
    %11 = arith.cmpi ne, %10, %c0_i32_8 : i32
    scf.if %11 {
      %c0_9 = arith.constant 0 : index
      %c0_10 = arith.constant 0 : index
      %12 = vector.load %arg7[%c0_9, %c0_10] : memref<80x128xf32, #tpu.memory_space<vmem>>, vector<80x128xf32>
      %c0_11 = arith.constant 0 : index
      %c0_12 = arith.constant 0 : index
      %13 = vector.load %arg5[%c0_11, %c0_12] : memref<1x128xf32, #tpu.memory_space<vmem>>, vector<1x128xf32>
      %14 = vector.broadcast %13 : vector<1x128xf32> to vector<80x128xf32>
      %15 = arith.addf %12, %14 : vector<80x128xf32>
      %16 = arith.truncf %15 : vector<80x128xf32> to vector<80x128xbf16>
      %c0_13 = arith.constant 0 : index
      %c0_14 = arith.constant 0 : index
      %17 = vector.load %arg6[%c0_13, %c0_14] : memref<80x128xbf16, #tpu.memory_space<vmem>>, vector<80x128xbf16>
      tpu.vector_store %arg6[%c0_13, %c0_14], %16 {strides = array<i32>} : memref<80x128xbf16, #tpu.memory_space<vmem>>, vector<80x128xbf16>,
    } else {
    }
    return
  }
  func.func @transform_0(%arg0: i32, %arg1: i32, %arg2: i32) -> (i32, i32) {
    %c0_i32 = arith.constant 0 : i32
    return %arg0, %arg2 : i32, i32
  }
  func.func @transform_1(%arg0: i32, %arg1: i32, %arg2: i32) -> (i32, i32) {
    %c0_i32 = arith.constant 0 : i32
    return %arg2, %arg1 : i32, i32
  }
  func.func @transform_2(%arg0: i32, %arg1: i32, %arg2: i32) -> (i32, i32) {
    %c0_i32 = arith.constant 0 : i32
    %c0_i32_0 = arith.constant 0 : i32
    return %c0_i32, %arg1 : i32, i32
  }
  func.func @transform_3(%arg0: i32, %arg1: i32, %arg2: i32) -> (i32, i32) {
    %c0_i32 = arith.constant 0 : i32
    return %arg0, %arg1 : i32, i32
  }
}

module attributes {stable_mosaic.version = 11 : i64} {
  func.func @kernel(%arg0: i32, %arg1: i32, %arg2: memref<1x36x128xbf16, #tpu.memory_space<vmem>>, %arg3: memref<1x36x128xbf16, #tpu.memory_space<vmem>>) attributes {dimension_semantics = [#tpu.dimension_semantics<parallel>, #tpu.dimension_semantics<parallel>], iteration_bounds = array<i64: 2, 1>, scalar_prefetch = 0 : i64, scratch_operands = 0 : i64, tpu.core_type = #tpu.core_type<tc>, window_params = [{transform_indices = @transform_0, window_bounds = array<i64: 1, 36, 128>}, {transform_indices = @transform_1, window_bounds = array<i64: 1, 36, 128>}]} {
    %c0 = arith.constant 0 : index
    %c0_0 = arith.constant 0 : index
    %c0_1 = arith.constant 0 : index
    %0 = vector.load %arg2[%c0, %c0_0, %c0_1] : memref<1x36x128xbf16, #tpu.memory_space<vmem>>, vector<1x36x128xbf16>
    %1 = arith.extf %0 : vector<1x36x128xbf16> to vector<1x36x128xf32>
    %cst = arith.constant dense<0.000000e+00> : vector<1x128xf32>
    %2 = vector.multi_reduction <add>, %1, %cst [1] : vector<1x36x128xf32> to vector<1x128xf32>
    %3 = vector.shape_cast %2 : vector<1x128xf32> to vector<1x1x128xf32>
    %cst_2 = arith.constant 0.027777778 : f32
    %4 = vector.broadcast %cst_2 : f32 to vector<1x1x128xf32>
    %5 = arith.mulf %3, %4 : vector<1x1x128xf32>
    %6 = arith.mulf %1, %1 : vector<1x36x128xf32>
    %cst_3 = arith.constant dense<0.000000e+00> : vector<1x128xf32>
    %7 = vector.multi_reduction <add>, %6, %cst_3 [1] : vector<1x36x128xf32> to vector<1x128xf32>
    %8 = vector.shape_cast %7 : vector<1x128xf32> to vector<1x1x128xf32>
    %cst_4 = arith.constant 0.027777778 : f32
    %9 = vector.broadcast %cst_4 : f32 to vector<1x1x128xf32>
    %10 = arith.mulf %8, %9 : vector<1x1x128xf32>
    %11 = arith.mulf %5, %5 : vector<1x1x128xf32>
    %12 = arith.subf %10, %11 : vector<1x1x128xf32>
    %cst_5 = arith.constant 0.000000e+00 : f32
    %13 = vector.broadcast %cst_5 : f32 to vector<1x1x128xf32>
    %14 = arith.maximumf %12, %13 : vector<1x1x128xf32>
    %15 = vector.broadcast %5 : vector<1x1x128xf32> to vector<1x36x128xf32>
    %16 = arith.subf %1, %15 : vector<1x36x128xf32>
    %cst_6 = arith.constant 9.99999974E-6 : f32
    %17 = vector.broadcast %cst_6 : f32 to vector<1x1x128xf32>
    %18 = arith.addf %14, %17 : vector<1x1x128xf32>
    %19 = math.rsqrt %18 : vector<1x1x128xf32>
    %20 = vector.broadcast %19 : vector<1x1x128xf32> to vector<1x36x128xf32>
    %21 = arith.mulf %16, %20 : vector<1x36x128xf32>
    %cst_7 = arith.constant 0.000000e+00 : f32
    %22 = vector.broadcast %cst_7 : f32 to vector<1x36x128xf32>
    %23 = arith.maximumf %21, %22 : vector<1x36x128xf32>
    %24 = arith.truncf %23 : vector<1x36x128xf32> to vector<1x36x128xbf16>
    %c0_8 = arith.constant 0 : index
    %c0_9 = arith.constant 0 : index
    %c0_10 = arith.constant 0 : index
    %25 = vector.load %arg3[%c0_8, %c0_9, %c0_10] : memref<1x36x128xbf16, #tpu.memory_space<vmem>>, vector<1x36x128xbf16>
    tpu.vector_store %arg3[%c0_8, %c0_9, %c0_10], %24 {strides = array<i32>} : memref<1x36x128xbf16, #tpu.memory_space<vmem>>, vector<1x36x128xbf16>,
    return
  }
  func.func @transform_0(%arg0: i32, %arg1: i32) -> (i32, i32, i32) {
    %c0_i32 = arith.constant 0 : i32
    %c0_i32_0 = arith.constant 0 : i32
    return %arg0, %c0_i32, %arg1 : i32, i32, i32
  }
  func.func @transform_1(%arg0: i32, %arg1: i32) -> (i32, i32, i32) {
    %c0_i32 = arith.constant 0 : i32
    %c0_i32_0 = arith.constant 0 : i32
    return %arg0, %c0_i32, %arg1 : i32, i32, i32
  }
}

module attributes {stable_mosaic.version = 11 : i64} {
  func.func @_matmul_bias_kernel(%arg0: i32, %arg1: i32, %arg2: i32, %arg3: memref<32x128xbf16, #tpu.memory_space<vmem>>, %arg4: memref<128x128xbf16, #tpu.memory_space<vmem>>, %arg5: memref<1x128xf32, #tpu.memory_space<vmem>>, %arg6: memref<32x128xbf16, #tpu.memory_space<vmem>>, %arg7: memref<32x128xf32, #tpu.memory_space<vmem>>) attributes {dimension_semantics = [#tpu.dimension_semantics<parallel>, #tpu.dimension_semantics<parallel>, #tpu.dimension_semantics<arbitrary>], iteration_bounds = array<i64: 1, 1, 9>, scalar_prefetch = 0 : i64, scratch_operands = 1 : i64, tpu.core_type = #tpu.core_type<tc>, window_params = [{transform_indices = @transform_0, window_bounds = array<i64: 32, 128>}, {transform_indices = @transform_1, window_bounds = array<i64: 128, 128>}, {transform_indices = @transform_2, window_bounds = array<i64: 1, 128>}, {transform_indices = @transform_3, window_bounds = array<i64: 32, 128>}]} {
    %c0_i32 = arith.constant 0 : i32
    %0 = arith.cmpi eq, %arg2, %c0_i32 : i32
    %1 = arith.extui %0 : i1 to i32
    %c0_i32_0 = arith.constant 0 : i32
    %2 = arith.cmpi ne, %1, %c0_i32_0 : i32
    scf.if %2 {
      %cst_9 = arith.constant 0.000000e+00 : f32
      %12 = vector.broadcast %cst_9 : f32 to vector<32x128xf32>
      %c0_10 = arith.constant 0 : index
      %c0_11 = arith.constant 0 : index
      %13 = vector.load %arg7[%c0_10, %c0_11] : memref<32x128xf32, #tpu.memory_space<vmem>>, vector<32x128xf32>
      tpu.vector_store %arg7[%c0_10, %c0_11], %12 {strides = array<i32>} : memref<32x128xf32, #tpu.memory_space<vmem>>, vector<32x128xf32>,
    } else {
    }
    %c0 = arith.constant 0 : index
    %c0_1 = arith.constant 0 : index
    %3 = vector.load %arg7[%c0, %c0_1] : memref<32x128xf32, #tpu.memory_space<vmem>>, vector<32x128xf32>
    %c0_2 = arith.constant 0 : index
    %c0_3 = arith.constant 0 : index
    %4 = vector.load %arg3[%c0_2, %c0_3] : memref<32x128xbf16, #tpu.memory_space<vmem>>, vector<32x128xbf16>
    %c0_4 = arith.constant 0 : index
    %c0_5 = arith.constant 0 : index
    %5 = vector.load %arg4[%c0_4, %c0_5] : memref<128x128xbf16, #tpu.memory_space<vmem>>, vector<128x128xbf16>
    %cst = arith.constant dense<0.000000e+00> : vector<32x128xf32>
    %6 = tpu.matmul %4, %5, %cst {dimension_numbers = #tpu.dot_dimension_numbers<[1], [0], [0], [1], [0, 0, 1, 1], [], []>} : vector<32x128xbf16>, vector<128x128xbf16>, vector<32x128xf32> -> vector<32x128xf32>
    %7 = arith.addf %3, %6 : vector<32x128xf32>
    %c0_6 = arith.constant 0 : index
    %c0_7 = arith.constant 0 : index
    %8 = vector.load %arg7[%c0_6, %c0_7] : memref<32x128xf32, #tpu.memory_space<vmem>>, vector<32x128xf32>
    tpu.vector_store %arg7[%c0_6, %c0_7], %7 {strides = array<i32>} : memref<32x128xf32, #tpu.memory_space<vmem>>, vector<32x128xf32>,
    %c8_i32 = arith.constant 8 : i32
    %9 = arith.cmpi eq, %arg2, %c8_i32 : i32
    %10 = arith.extui %9 : i1 to i32
    %c0_i32_8 = arith.constant 0 : i32
    %11 = arith.cmpi ne, %10, %c0_i32_8 : i32
    scf.if %11 {
      %c0_9 = arith.constant 0 : index
      %c0_10 = arith.constant 0 : index
      %12 = vector.load %arg7[%c0_9, %c0_10] : memref<32x128xf32, #tpu.memory_space<vmem>>, vector<32x128xf32>
      %c0_11 = arith.constant 0 : index
      %c0_12 = arith.constant 0 : index
      %13 = vector.load %arg5[%c0_11, %c0_12] : memref<1x128xf32, #tpu.memory_space<vmem>>, vector<1x128xf32>
      %14 = vector.broadcast %13 : vector<1x128xf32> to vector<32x128xf32>
      %15 = arith.addf %12, %14 : vector<32x128xf32>
      %16 = arith.truncf %15 : vector<32x128xf32> to vector<32x128xbf16>
      %c0_13 = arith.constant 0 : index
      %c0_14 = arith.constant 0 : index
      %17 = vector.load %arg6[%c0_13, %c0_14] : memref<32x128xbf16, #tpu.memory_space<vmem>>, vector<32x128xbf16>
      tpu.vector_store %arg6[%c0_13, %c0_14], %16 {strides = array<i32>} : memref<32x128xbf16, #tpu.memory_space<vmem>>, vector<32x128xbf16>,
    } else {
    }
    return
  }
  func.func @transform_0(%arg0: i32, %arg1: i32, %arg2: i32) -> (i32, i32) {
    %c0_i32 = arith.constant 0 : i32
    return %arg0, %arg2 : i32, i32
  }
  func.func @transform_1(%arg0: i32, %arg1: i32, %arg2: i32) -> (i32, i32) {
    %c0_i32 = arith.constant 0 : i32
    return %arg2, %arg1 : i32, i32
  }
  func.func @transform_2(%arg0: i32, %arg1: i32, %arg2: i32) -> (i32, i32) {
    %c0_i32 = arith.constant 0 : i32
    %c0_i32_0 = arith.constant 0 : i32
    return %c0_i32, %arg1 : i32, i32
  }
  func.func @transform_3(%arg0: i32, %arg1: i32, %arg2: i32) -> (i32, i32) {
    %c0_i32 = arith.constant 0 : i32
    return %arg0, %arg1 : i32, i32
  }
}

module attributes {stable_mosaic.version = 11 : i64} {
  func.func @kernel(%arg0: i32, %arg1: i32, %arg2: memref<1x9x128xbf16, #tpu.memory_space<vmem>>, %arg3: memref<1x9x128xbf16, #tpu.memory_space<vmem>>) attributes {dimension_semantics = [#tpu.dimension_semantics<parallel>, #tpu.dimension_semantics<parallel>], iteration_bounds = array<i64: 2, 1>, scalar_prefetch = 0 : i64, scratch_operands = 0 : i64, tpu.core_type = #tpu.core_type<tc>, window_params = [{transform_indices = @transform_0, window_bounds = array<i64: 1, 9, 128>}, {transform_indices = @transform_1, window_bounds = array<i64: 1, 9, 128>}]} {
    %c0 = arith.constant 0 : index
    %c0_0 = arith.constant 0 : index
    %c0_1 = arith.constant 0 : index
    %0 = vector.load %arg2[%c0, %c0_0, %c0_1] : memref<1x9x128xbf16, #tpu.memory_space<vmem>>, vector<1x9x128xbf16>
    %1 = arith.extf %0 : vector<1x9x128xbf16> to vector<1x9x128xf32>
    %cst = arith.constant dense<0.000000e+00> : vector<1x128xf32>
    %2 = vector.multi_reduction <add>, %1, %cst [1] : vector<1x9x128xf32> to vector<1x128xf32>
    %3 = vector.shape_cast %2 : vector<1x128xf32> to vector<1x1x128xf32>
    %cst_2 = arith.constant 0.111111112 : f32
    %4 = vector.broadcast %cst_2 : f32 to vector<1x1x128xf32>
    %5 = arith.mulf %3, %4 : vector<1x1x128xf32>
    %6 = arith.mulf %1, %1 : vector<1x9x128xf32>
    %cst_3 = arith.constant dense<0.000000e+00> : vector<1x128xf32>
    %7 = vector.multi_reduction <add>, %6, %cst_3 [1] : vector<1x9x128xf32> to vector<1x128xf32>
    %8 = vector.shape_cast %7 : vector<1x128xf32> to vector<1x1x128xf32>
    %cst_4 = arith.constant 0.111111112 : f32
    %9 = vector.broadcast %cst_4 : f32 to vector<1x1x128xf32>
    %10 = arith.mulf %8, %9 : vector<1x1x128xf32>
    %11 = arith.mulf %5, %5 : vector<1x1x128xf32>
    %12 = arith.subf %10, %11 : vector<1x1x128xf32>
    %cst_5 = arith.constant 0.000000e+00 : f32
    %13 = vector.broadcast %cst_5 : f32 to vector<1x1x128xf32>
    %14 = arith.maximumf %12, %13 : vector<1x1x128xf32>
    %15 = vector.broadcast %5 : vector<1x1x128xf32> to vector<1x9x128xf32>
    %16 = arith.subf %1, %15 : vector<1x9x128xf32>
    %cst_6 = arith.constant 9.99999974E-6 : f32
    %17 = vector.broadcast %cst_6 : f32 to vector<1x1x128xf32>
    %18 = arith.addf %14, %17 : vector<1x1x128xf32>
    %19 = math.rsqrt %18 : vector<1x1x128xf32>
    %20 = vector.broadcast %19 : vector<1x1x128xf32> to vector<1x9x128xf32>
    %21 = arith.mulf %16, %20 : vector<1x9x128xf32>
    %cst_7 = arith.constant 0.000000e+00 : f32
    %22 = vector.broadcast %cst_7 : f32 to vector<1x9x128xf32>
    %23 = arith.maximumf %21, %22 : vector<1x9x128xf32>
    %24 = arith.truncf %23 : vector<1x9x128xf32> to vector<1x9x128xbf16>
    %c0_8 = arith.constant 0 : index
    %c0_9 = arith.constant 0 : index
    %c0_10 = arith.constant 0 : index
    %25 = vector.load %arg3[%c0_8, %c0_9, %c0_10] : memref<1x9x128xbf16, #tpu.memory_space<vmem>>, vector<1x9x128xbf16>
    tpu.vector_store %arg3[%c0_8, %c0_9, %c0_10], %24 {strides = array<i32>} : memref<1x9x128xbf16, #tpu.memory_space<vmem>>, vector<1x9x128xbf16>,
    return
  }
  func.func @transform_0(%arg0: i32, %arg1: i32) -> (i32, i32, i32) {
    %c0_i32 = arith.constant 0 : i32
    %c0_i32_0 = arith.constant 0 : i32
    return %arg0, %c0_i32, %arg1 : i32, i32, i32
  }
  func.func @transform_1(%arg0: i32, %arg1: i32) -> (i32, i32, i32) {
    %c0_i32 = arith.constant 0 : i32
    %c0_i32_0 = arith.constant 0 : i32
    return %arg0, %c0_i32, %arg1 : i32, i32, i32
  }
}

module attributes {stable_mosaic.version = 11 : i64} {
  func.func @kernel(%arg0: i32, %arg1: i32, %arg2: memref<1x9x128xbf16, #tpu.memory_space<vmem>>, %arg3: memref<1x9x128xbf16, #tpu.memory_space<vmem>>, %arg4: memref<1x9x128xbf16, #tpu.memory_space<vmem>>) attributes {dimension_semantics = [#tpu.dimension_semantics<parallel>, #tpu.dimension_semantics<parallel>], iteration_bounds = array<i64: 2, 1>, scalar_prefetch = 0 : i64, scratch_operands = 0 : i64, tpu.core_type = #tpu.core_type<tc>, window_params = [{transform_indices = @transform_0, window_bounds = array<i64: 1, 9, 128>}, {transform_indices = @transform_1, window_bounds = array<i64: 1, 9, 128>}, {transform_indices = @transform_2, window_bounds = array<i64: 1, 9, 128>}]} {
    %c0 = arith.constant 0 : index
    %c0_0 = arith.constant 0 : index
    %c0_1 = arith.constant 0 : index
    %0 = vector.load %arg2[%c0, %c0_0, %c0_1] : memref<1x9x128xbf16, #tpu.memory_space<vmem>>, vector<1x9x128xbf16>
    %1 = arith.extf %0 : vector<1x9x128xbf16> to vector<1x9x128xf32>
    %cst = arith.constant dense<0.000000e+00> : vector<1x128xf32>
    %2 = vector.multi_reduction <add>, %1, %cst [1] : vector<1x9x128xf32> to vector<1x128xf32>
    %3 = vector.shape_cast %2 : vector<1x128xf32> to vector<1x1x128xf32>
    %cst_2 = arith.constant 0.111111112 : f32
    %4 = vector.broadcast %cst_2 : f32 to vector<1x1x128xf32>
    %5 = arith.mulf %3, %4 : vector<1x1x128xf32>
    %6 = arith.mulf %1, %1 : vector<1x9x128xf32>
    %cst_3 = arith.constant dense<0.000000e+00> : vector<1x128xf32>
    %7 = vector.multi_reduction <add>, %6, %cst_3 [1] : vector<1x9x128xf32> to vector<1x128xf32>
    %8 = vector.shape_cast %7 : vector<1x128xf32> to vector<1x1x128xf32>
    %cst_4 = arith.constant 0.111111112 : f32
    %9 = vector.broadcast %cst_4 : f32 to vector<1x1x128xf32>
    %10 = arith.mulf %8, %9 : vector<1x1x128xf32>
    %11 = arith.mulf %5, %5 : vector<1x1x128xf32>
    %12 = arith.subf %10, %11 : vector<1x1x128xf32>
    %cst_5 = arith.constant 0.000000e+00 : f32
    %13 = vector.broadcast %cst_5 : f32 to vector<1x1x128xf32>
    %14 = arith.maximumf %12, %13 : vector<1x1x128xf32>
    %15 = vector.broadcast %5 : vector<1x1x128xf32> to vector<1x9x128xf32>
    %16 = arith.subf %1, %15 : vector<1x9x128xf32>
    %cst_6 = arith.constant 9.99999974E-6 : f32
    %17 = vector.broadcast %cst_6 : f32 to vector<1x1x128xf32>
    %18 = arith.addf %14, %17 : vector<1x1x128xf32>
    %19 = math.rsqrt %18 : vector<1x1x128xf32>
    %20 = vector.broadcast %19 : vector<1x1x128xf32> to vector<1x9x128xf32>
    %21 = arith.mulf %16, %20 : vector<1x9x128xf32>
    %cst_7 = arith.constant 0.000000e+00 : f32
    %22 = vector.broadcast %cst_7 : f32 to vector<1x9x128xf32>
    %23 = arith.maximumf %21, %22 : vector<1x9x128xf32>
    %c0_8 = arith.constant 0 : index
    %c0_9 = arith.constant 0 : index
    %c0_10 = arith.constant 0 : index
    %24 = vector.load %arg3[%c0_8, %c0_9, %c0_10] : memref<1x9x128xbf16, #tpu.memory_space<vmem>>, vector<1x9x128xbf16>
    %25 = arith.extf %24 : vector<1x9x128xbf16> to vector<1x9x128xf32>
    %26 = arith.addf %23, %25 : vector<1x9x128xf32>
    %27 = arith.truncf %26 : vector<1x9x128xf32> to vector<1x9x128xbf16>
    %c0_11 = arith.constant 0 : index
    %c0_12 = arith.constant 0 : index
    %c0_13 = arith.constant 0 : index
    %28 = vector.load %arg4[%c0_11, %c0_12, %c0_13] : memref<1x9x128xbf16, #tpu.memory_space<vmem>>, vector<1x9x128xbf16>
    tpu.vector_store %arg4[%c0_11, %c0_12, %c0_13], %27 {strides = array<i32>} : memref<1x9x128xbf16, #tpu.memory_space<vmem>>, vector<1x9x128xbf16>,
    return
  }
  func.func @transform_0(%arg0: i32, %arg1: i32) -> (i32, i32, i32) {
    %c0_i32 = arith.constant 0 : i32
    %c0_i32_0 = arith.constant 0 : i32
    return %arg0, %c0_i32, %arg1 : i32, i32, i32
  }
  func.func @transform_1(%arg0: i32, %arg1: i32) -> (i32, i32, i32) {
    %c0_i32 = arith.constant 0 : i32
    %c0_i32_0 = arith.constant 0 : i32
    return %arg0, %c0_i32, %arg1 : i32, i32, i32
  }
  func.func @transform_2(%arg0: i32, %arg1: i32) -> (i32, i32, i32) {
    %c0_i32 = arith.constant 0 : i32
    %c0_i32_0 = arith.constant 0 : i32
    return %arg0, %c0_i32, %arg1 : i32, i32, i32
  }
}

module attributes {stable_mosaic.version = 11 : i64} {
  func.func @_matmul_bias_kernel(%arg0: i32, %arg1: i32, %arg2: i32, %arg3: memref<256x128xbf16, #tpu.memory_space<vmem>>, %arg4: memref<128x128xbf16, #tpu.memory_space<vmem>>, %arg5: memref<1x128xf32, #tpu.memory_space<vmem>>, %arg6: memref<256x128xbf16, #tpu.memory_space<vmem>>, %arg7: memref<256x128xf32, #tpu.memory_space<vmem>>) attributes {dimension_semantics = [#tpu.dimension_semantics<parallel>, #tpu.dimension_semantics<parallel>, #tpu.dimension_semantics<arbitrary>], iteration_bounds = array<i64: 2, 1, 9>, scalar_prefetch = 0 : i64, scratch_operands = 1 : i64, tpu.core_type = #tpu.core_type<tc>, window_params = [{transform_indices = @transform_0, window_bounds = array<i64: 256, 128>}, {transform_indices = @transform_1, window_bounds = array<i64: 128, 128>}, {transform_indices = @transform_2, window_bounds = array<i64: 1, 128>}, {transform_indices = @transform_3, window_bounds = array<i64: 256, 128>}]} {
    %c0_i32 = arith.constant 0 : i32
    %0 = arith.cmpi eq, %arg2, %c0_i32 : i32
    %1 = arith.extui %0 : i1 to i32
    %c0_i32_0 = arith.constant 0 : i32
    %2 = arith.cmpi ne, %1, %c0_i32_0 : i32
    scf.if %2 {
      %cst_9 = arith.constant 0.000000e+00 : f32
      %12 = vector.broadcast %cst_9 : f32 to vector<256x128xf32>
      %c0_10 = arith.constant 0 : index
      %c0_11 = arith.constant 0 : index
      %13 = vector.load %arg7[%c0_10, %c0_11] : memref<256x128xf32, #tpu.memory_space<vmem>>, vector<256x128xf32>
      tpu.vector_store %arg7[%c0_10, %c0_11], %12 {strides = array<i32>} : memref<256x128xf32, #tpu.memory_space<vmem>>, vector<256x128xf32>,
    } else {
    }
    %c0 = arith.constant 0 : index
    %c0_1 = arith.constant 0 : index
    %3 = vector.load %arg7[%c0, %c0_1] : memref<256x128xf32, #tpu.memory_space<vmem>>, vector<256x128xf32>
    %c0_2 = arith.constant 0 : index
    %c0_3 = arith.constant 0 : index
    %4 = vector.load %arg3[%c0_2, %c0_3] : memref<256x128xbf16, #tpu.memory_space<vmem>>, vector<256x128xbf16>
    %c0_4 = arith.constant 0 : index
    %c0_5 = arith.constant 0 : index
    %5 = vector.load %arg4[%c0_4, %c0_5] : memref<128x128xbf16, #tpu.memory_space<vmem>>, vector<128x128xbf16>
    %cst = arith.constant dense<0.000000e+00> : vector<256x128xf32>
    %6 = tpu.matmul %4, %5, %cst {dimension_numbers = #tpu.dot_dimension_numbers<[1], [0], [0], [1], [0, 0, 1, 1], [], []>} : vector<256x128xbf16>, vector<128x128xbf16>, vector<256x128xf32> -> vector<256x128xf32>
    %7 = arith.addf %3, %6 : vector<256x128xf32>
    %c0_6 = arith.constant 0 : index
    %c0_7 = arith.constant 0 : index
    %8 = vector.load %arg7[%c0_6, %c0_7] : memref<256x128xf32, #tpu.memory_space<vmem>>, vector<256x128xf32>
    tpu.vector_store %arg7[%c0_6, %c0_7], %7 {strides = array<i32>} : memref<256x128xf32, #tpu.memory_space<vmem>>, vector<256x128xf32>,
    %c8_i32 = arith.constant 8 : i32
    %9 = arith.cmpi eq, %arg2, %c8_i32 : i32
    %10 = arith.extui %9 : i1 to i32
    %c0_i32_8 = arith.constant 0 : i32
    %11 = arith.cmpi ne, %10, %c0_i32_8 : i32
    scf.if %11 {
      %c0_9 = arith.constant 0 : index
      %c0_10 = arith.constant 0 : index
      %12 = vector.load %arg7[%c0_9, %c0_10] : memref<256x128xf32, #tpu.memory_space<vmem>>, vector<256x128xf32>
      %c0_11 = arith.constant 0 : index
      %c0_12 = arith.constant 0 : index
      %13 = vector.load %arg5[%c0_11, %c0_12] : memref<1x128xf32, #tpu.memory_space<vmem>>, vector<1x128xf32>
      %14 = vector.broadcast %13 : vector<1x128xf32> to vector<256x128xf32>
      %15 = arith.addf %12, %14 : vector<256x128xf32>
      %16 = arith.truncf %15 : vector<256x128xf32> to vector<256x128xbf16>
      %c0_13 = arith.constant 0 : index
      %c0_14 = arith.constant 0 : index
      %17 = vector.load %arg6[%c0_13, %c0_14] : memref<256x128xbf16, #tpu.memory_space<vmem>>, vector<256x128xbf16>
      tpu.vector_store %arg6[%c0_13, %c0_14], %16 {strides = array<i32>} : memref<256x128xbf16, #tpu.memory_space<vmem>>, vector<256x128xbf16>,
    } else {
    }
    return
  }
  func.func @transform_0(%arg0: i32, %arg1: i32, %arg2: i32) -> (i32, i32) {
    %c0_i32 = arith.constant 0 : i32
    return %arg0, %arg2 : i32, i32
  }
  func.func @transform_1(%arg0: i32, %arg1: i32, %arg2: i32) -> (i32, i32) {
    %c0_i32 = arith.constant 0 : i32
    return %arg2, %arg1 : i32, i32
  }
  func.func @transform_2(%arg0: i32, %arg1: i32, %arg2: i32) -> (i32, i32) {
    %c0_i32 = arith.constant 0 : i32
    %c0_i32_0 = arith.constant 0 : i32
    return %c0_i32, %arg1 : i32, i32
  }
  func.func @transform_3(%arg0: i32, %arg1: i32, %arg2: i32) -> (i32, i32) {
    %c0_i32 = arith.constant 0 : i32
    return %arg0, %arg1 : i32, i32
  }
}

module attributes {stable_mosaic.version = 11 : i64} {
  func.func @_matmul_bias_kernel(%arg0: i32, %arg1: i32, %arg2: i32, %arg3: memref<128x128xbf16, #tpu.memory_space<vmem>>, %arg4: memref<128x128xbf16, #tpu.memory_space<vmem>>, %arg5: memref<1x128xf32, #tpu.memory_space<vmem>>, %arg6: memref<128x128xbf16, #tpu.memory_space<vmem>>, %arg7: memref<128x128xf32, #tpu.memory_space<vmem>>) attributes {dimension_semantics = [#tpu.dimension_semantics<parallel>, #tpu.dimension_semantics<parallel>, #tpu.dimension_semantics<arbitrary>], iteration_bounds = array<i64: 1, 1, 49>, scalar_prefetch = 0 : i64, scratch_operands = 1 : i64, tpu.core_type = #tpu.core_type<tc>, window_params = [{transform_indices = @transform_0, window_bounds = array<i64: 128, 128>}, {transform_indices = @transform_1, window_bounds = array<i64: 128, 128>}, {transform_indices = @transform_2, window_bounds = array<i64: 1, 128>}, {transform_indices = @transform_3, window_bounds = array<i64: 128, 128>}]} {
    %c0_i32 = arith.constant 0 : i32
    %0 = arith.cmpi eq, %arg2, %c0_i32 : i32
    %1 = arith.extui %0 : i1 to i32
    %c0_i32_0 = arith.constant 0 : i32
    %2 = arith.cmpi ne, %1, %c0_i32_0 : i32
    scf.if %2 {
      %cst_9 = arith.constant 0.000000e+00 : f32
      %12 = vector.broadcast %cst_9 : f32 to vector<128x128xf32>
      %c0_10 = arith.constant 0 : index
      %c0_11 = arith.constant 0 : index
      %13 = vector.load %arg7[%c0_10, %c0_11] : memref<128x128xf32, #tpu.memory_space<vmem>>, vector<128x128xf32>
      tpu.vector_store %arg7[%c0_10, %c0_11], %12 {strides = array<i32>} : memref<128x128xf32, #tpu.memory_space<vmem>>, vector<128x128xf32>,
    } else {
    }
    %c0 = arith.constant 0 : index
    %c0_1 = arith.constant 0 : index
    %3 = vector.load %arg7[%c0, %c0_1] : memref<128x128xf32, #tpu.memory_space<vmem>>, vector<128x128xf32>
    %c0_2 = arith.constant 0 : index
    %c0_3 = arith.constant 0 : index
    %4 = vector.load %arg3[%c0_2, %c0_3] : memref<128x128xbf16, #tpu.memory_space<vmem>>, vector<128x128xbf16>
    %c0_4 = arith.constant 0 : index
    %c0_5 = arith.constant 0 : index
    %5 = vector.load %arg4[%c0_4, %c0_5] : memref<128x128xbf16, #tpu.memory_space<vmem>>, vector<128x128xbf16>
    %cst = arith.constant dense<0.000000e+00> : vector<128x128xf32>
    %6 = tpu.matmul %4, %5, %cst {dimension_numbers = #tpu.dot_dimension_numbers<[1], [0], [0], [1], [0, 0, 1, 1], [], []>} : vector<128x128xbf16>, vector<128x128xbf16>, vector<128x128xf32> -> vector<128x128xf32>
    %7 = arith.addf %3, %6 : vector<128x128xf32>
    %c0_6 = arith.constant 0 : index
    %c0_7 = arith.constant 0 : index
    %8 = vector.load %arg7[%c0_6, %c0_7] : memref<128x128xf32, #tpu.memory_space<vmem>>, vector<128x128xf32>
    tpu.vector_store %arg7[%c0_6, %c0_7], %7 {strides = array<i32>} : memref<128x128xf32, #tpu.memory_space<vmem>>, vector<128x128xf32>,
    %c48_i32 = arith.constant 48 : i32
    %9 = arith.cmpi eq, %arg2, %c48_i32 : i32
    %10 = arith.extui %9 : i1 to i32
    %c0_i32_8 = arith.constant 0 : i32
    %11 = arith.cmpi ne, %10, %c0_i32_8 : i32
    scf.if %11 {
      %c0_9 = arith.constant 0 : index
      %c0_10 = arith.constant 0 : index
      %12 = vector.load %arg7[%c0_9, %c0_10] : memref<128x128xf32, #tpu.memory_space<vmem>>, vector<128x128xf32>
      %c0_11 = arith.constant 0 : index
      %c0_12 = arith.constant 0 : index
      %13 = vector.load %arg5[%c0_11, %c0_12] : memref<1x128xf32, #tpu.memory_space<vmem>>, vector<1x128xf32>
      %14 = vector.broadcast %13 : vector<1x128xf32> to vector<128x128xf32>
      %15 = arith.addf %12, %14 : vector<128x128xf32>
      %16 = arith.truncf %15 : vector<128x128xf32> to vector<128x128xbf16>
      %c0_13 = arith.constant 0 : index
      %c0_14 = arith.constant 0 : index
      %17 = vector.load %arg6[%c0_13, %c0_14] : memref<128x128xbf16, #tpu.memory_space<vmem>>, vector<128x128xbf16>
      tpu.vector_store %arg6[%c0_13, %c0_14], %16 {strides = array<i32>} : memref<128x128xbf16, #tpu.memory_space<vmem>>, vector<128x128xbf16>,
    } else {
    }
    return
  }
  func.func @transform_0(%arg0: i32, %arg1: i32, %arg2: i32) -> (i32, i32) {
    %c0_i32 = arith.constant 0 : i32
    return %arg0, %arg2 : i32, i32
  }
  func.func @transform_1(%arg0: i32, %arg1: i32, %arg2: i32) -> (i32, i32) {
    %c0_i32 = arith.constant 0 : i32
    return %arg2, %arg1 : i32, i32
  }
  func.func @transform_2(%arg0: i32, %arg1: i32, %arg2: i32) -> (i32, i32) {
    %c0_i32 = arith.constant 0 : i32
    %c0_i32_0 = arith.constant 0 : i32
    return %c0_i32, %arg1 : i32, i32
  }
  func.func @transform_3(%arg0: i32, %arg1: i32, %arg2: i32) -> (i32, i32) {
    %c0_i32 = arith.constant 0 : i32
    return %arg0, %arg1 : i32, i32
  }
}

module attributes {stable_mosaic.version = 11 : i64} {
  func.func @kernel(%arg0: i32, %arg1: i32, %arg2: memref<1x64x128xbf16, #tpu.memory_space<vmem>>, %arg3: memref<1x64x128xf32, #tpu.memory_space<vmem>>) attributes {dimension_semantics = [#tpu.dimension_semantics<parallel>, #tpu.dimension_semantics<parallel>], iteration_bounds = array<i64: 2, 1>, scalar_prefetch = 0 : i64, scratch_operands = 0 : i64, tpu.core_type = #tpu.core_type<tc>, window_params = [{transform_indices = @transform_0, window_bounds = array<i64: 1, 64, 128>}, {transform_indices = @transform_1, window_bounds = array<i64: 1, 64, 128>}]} {
    %c0 = arith.constant 0 : index
    %c0_0 = arith.constant 0 : index
    %c0_1 = arith.constant 0 : index
    %0 = vector.load %arg2[%c0, %c0_0, %c0_1] : memref<1x64x128xbf16, #tpu.memory_space<vmem>>, vector<1x64x128xbf16>
    %1 = arith.extf %0 : vector<1x64x128xbf16> to vector<1x64x128xf32>
    %cst = arith.constant dense<0.000000e+00> : vector<1x128xf32>
    %2 = vector.multi_reduction <add>, %1, %cst [1] : vector<1x64x128xf32> to vector<1x128xf32>
    %3 = vector.shape_cast %2 : vector<1x128xf32> to vector<1x1x128xf32>
    %cst_2 = arith.constant 1.562500e-02 : f32
    %4 = vector.broadcast %cst_2 : f32 to vector<1x1x128xf32>
    %5 = arith.mulf %3, %4 : vector<1x1x128xf32>
    %6 = arith.mulf %1, %1 : vector<1x64x128xf32>
    %cst_3 = arith.constant dense<0.000000e+00> : vector<1x128xf32>
    %7 = vector.multi_reduction <add>, %6, %cst_3 [1] : vector<1x64x128xf32> to vector<1x128xf32>
    %8 = vector.shape_cast %7 : vector<1x128xf32> to vector<1x1x128xf32>
    %cst_4 = arith.constant 1.562500e-02 : f32
    %9 = vector.broadcast %cst_4 : f32 to vector<1x1x128xf32>
    %10 = arith.mulf %8, %9 : vector<1x1x128xf32>
    %11 = arith.mulf %5, %5 : vector<1x1x128xf32>
    %12 = arith.subf %10, %11 : vector<1x1x128xf32>
    %cst_5 = arith.constant 0.000000e+00 : f32
    %13 = vector.broadcast %cst_5 : f32 to vector<1x1x128xf32>
    %14 = arith.maximumf %12, %13 : vector<1x1x128xf32>
    %15 = vector.broadcast %5 : vector<1x1x128xf32> to vector<1x64x128xf32>
    %16 = arith.subf %1, %15 : vector<1x64x128xf32>
    %cst_6 = arith.constant 9.99999974E-6 : f32
    %17 = vector.broadcast %cst_6 : f32 to vector<1x1x128xf32>
    %18 = arith.addf %14, %17 : vector<1x1x128xf32>
    %19 = math.rsqrt %18 : vector<1x1x128xf32>
    %20 = vector.broadcast %19 : vector<1x1x128xf32> to vector<1x64x128xf32>
    %21 = arith.mulf %16, %20 : vector<1x64x128xf32>
    %cst_7 = arith.constant 0.000000e+00 : f32
    %22 = vector.broadcast %cst_7 : f32 to vector<1x64x128xf32>
    %23 = arith.maximumf %21, %22 : vector<1x64x128xf32>
    %24 = math.tanh %23 : vector<1x64x128xf32>
    %c0_8 = arith.constant 0 : index
    %c0_9 = arith.constant 0 : index
    %c0_10 = arith.constant 0 : index
    %25 = vector.load %arg3[%c0_8, %c0_9, %c0_10] : memref<1x64x128xf32, #tpu.memory_space<vmem>>, vector<1x64x128xf32>
    tpu.vector_store %arg3[%c0_8, %c0_9, %c0_10], %24 {strides = array<i32>} : memref<1x64x128xf32, #tpu.memory_space<vmem>>, vector<1x64x128xf32>,
    return
  }
  func.func @transform_0(%arg0: i32, %arg1: i32) -> (i32, i32, i32) {
    %c0_i32 = arith.constant 0 : i32
    %c0_i32_0 = arith.constant 0 : i32
    return %arg0, %c0_i32, %arg1 : i32, i32, i32
  }
  func.func @transform_1(%arg0: i32, %arg1: i32) -> (i32, i32, i32) {
    %c0_i32 = arith.constant 0 : i32
    %c0_i32_0 = arith.constant 0 : i32
    return %arg0, %c0_i32, %arg1 : i32, i32, i32
  }
}

</mosaic_0001>

<bundles_post_ra>
// kernel: _lambda_.16
= control target key start
LH: loop header
LB: loop body
LE: loop exit
PB: predicated region body
PF: predicated region fallthrough
CT: control target
= control target key end

     0   :  { %s1478_s12 = smov 0   ;;  %s1480_s13 = smov 0   ;;  %s1723_s0 = inlined_call_operand.vmem [shape: bf16[512,6272], index: 0, kind: input, shape index: {}]   ;;  %s1724_s1 = inlined_call_operand.vmem [shape: bf16[6272,128], index: 1, kind: input, shape index: {}]   ;;  %s1725_s2 = inlined_call_operand.vmem [shape: f32[1,128], index: 2, kind: input, shape index: {}]   ;;  %s1726_s3 = inlined_call_operand.vmem [shape: bf16[512,128], index: 3, kind: output, shape index: {}]  }
   0x1   :  { %s1482_s14 = smov 0   ;;  %s1484_s15 = smov 0  }
   0x2   :  { %s1486_s16 = smov 0   ;;  %s1488_s17 = smov 0  }
   0x3   :  { %s1490_s18 = smov 0  }
   0x4 LB: > { %s25_s19 = sadd.s32 1, %s1447_s16  ;;  %s32_s20 = sadd.s32 1, %s1451_s17  ;;  %s1455_s18 = sphi %s1490_s18, %s13_s18   ;;  %s1451_s17 = sphi %s1488_s17, %s1732_s17   ;;  %s1447_s16 = sphi %s1486_s16, %s1731_s16   ;;  %s1443_s15 = sphi %s1484_s15, %s1730_s15   ;;  %s1439_s14 = sphi %s1482_s14, %s1729_s14   ;;  %s1435_s13 = sphi %s1480_s13, %s1728_s13   ;;  %s1431_s12 = sphi %s1478_s12, %s1727_s12  }
   0x5   : > { %p26_p0 = scmp.ge.s32.totalorder %s25_s19, 49  ;;  %p48_p1 = scmp.ne.s32.totalorder %s1435_s13, %s1431_s12 }
   0x6   : > { %p49_p2 = scmp.eq.s32.totalorder %s1455_s18, 0  ;;  %s41_s24 = sadd.s32 1, %s1435_s13 }
   0x7   : > { %s1734_s19 = smov (%p26_p0, %s25_s19), 0  ;;  %s1736_s20 = smov (!%p26_p0, %s32_s20), %s1451_s17 }
   0x8   : > { %p50_p3 = por %p49_p2, %p48_p1  ;;  %p34_p4 = scmp.ge.s32.totalorder %s1736_s20, 2 }
   0x9   : > { %s37_s21 = ssub.s32 %s1447_s16, %s1734_s19  ;;  %p1088_p6 = scmp.ge.s32.totalorder %s1455_s18, 98 }
   0xa   : > { %s1738_s20 = smov (%p34_p4, %s1736_s20), 0 }
   0xb   : > { %s36_s22 = ssub.s32 %s1451_s17, %s1738_s20  ;;  %162 = sbr.rel (%p1088_p6) target bundleno = 55 (0x37), region = 20 }
   0xc   : > { %s38_s23 = sor.u32 %s37_s21, %s36_s22 }
   0xd   : > { %p39_p5 = scmp.eq.s32.totalorder %s38_s23, 0 }
   0xf   : > { %s1529_s25 = scalar_select %p39_p5, %s1435_s13, %s41_s24  }
  0x10   : > { %165 = sbr.rel (!%p50_p3) target bundleno = 55 (0x37), region = 24  ;;  %s167_s26 = sand.u32 (%p50_p3), 1, %s1435_s13  }
  0x11   : > { %s1342_s27 = smul.u32 (%p50_p3), 1568, %s1451_s17  ;;  %s1089_s28 = sshll.u32 (%p50_p3), %s167_s26, 7 }
  0x12   : > { %s1543_s7 = scalar_lea.vmem (%p50_p3), [#allocation3], %s1089_s28 }
  0x13   : > { %s172_s29 = sadd.s32 (%p50_p3), %s1447_s16, %s1342_s27 }
  0x14   : > { %s1092_s30 = sshll.u32 (%p50_p3), %s172_s29, 2 }
  0x15   : > { %s1538_s6 = scalar_lea.vmem %s1723_s0, %s1092_s30 }
  0x16   : > { %v191_v0 = vld [vmem:[%s1538_s6] sm:$0xf]  ;;  %v193_v1 = vld [vmem:[%s1538_s6 + $0xc4] sm:$0xf]  ;;  %v195_v2 = vld [vmem:[%s1538_s6 + $0x188] sm:$0xf] }
  0x17   : > { %192 = vst [vmem:[%s1543_s7] sm:$0xf] %v191_v0  ;;  %v197_v3 = vld [vmem:[%s1538_s6 + $0x24c] sm:$0xf]  ;;  %v199_v4 = vld [vmem:[%s1538_s6 + $0x310] sm:$0xf] }
  0x18   : > { %194 = vst [vmem:[%s1543_s7 + $0x4] sm:$0xf] %v193_v1  ;;  %v201_v5 = vld [vmem:[%s1538_s6 + $0x3d4] sm:$0xf]  ;;  %v203_v6 = vld [vmem:[%s1538_s6 + $0x498] sm:$0xf] }
  0x19   : > { %196 = vst [vmem:[%s1543_s7 + $0x8] sm:$0xf] %v195_v2  ;;  %v205_v7 = vld [vmem:[%s1538_s6 + $0x55c] sm:$0xf]  ;;  %v207_v8 = vld [vmem:[%s1538_s6 + $0x620] sm:$0xf] }
  0x1a   : > { %198 = vst [vmem:[%s1543_s7 + $0xc] sm:$0xf] %v197_v3  ;;  %v209_v9 = vld [vmem:[%s1538_s6 + $0x6e4] sm:$0xf]  ;;  %v211_v10 = vld [vmem:[%s1538_s6 + $0x7a8] sm:$0xf] }
  0x1b   : > { %200 = vst [vmem:[%s1543_s7 + $0x10] sm:$0xf] %v199_v4  ;;  %v213_v11 = vld [vmem:[%s1538_s6 + $0x86c] sm:$0xf]  ;;  %v215_v12 = vld [vmem:[%s1538_s6 + $0x930] sm:$0xf] }
  0x1c   : > { %202 = vst [vmem:[%s1543_s7 + $0x14] sm:$0xf] %v201_v5  ;;  %v217_v13 = vld [vmem:[%s1538_s6 + $0x9f4] sm:$0xf]  ;;  %v219_v14 = vld [vmem:[%s1538_s6 + $0xab8] sm:$0xf] }
  0x1d   : > { %204 = vst [vmem:[%s1543_s7 + $0x18] sm:$0xf] %v203_v6  ;;  %v221_v15 = vld [vmem:[%s1538_s6 + $0xb7c] sm:$0xf]  ;;  %v223_v16 = vld [vmem:[%s1538_s6 + $0xc40] sm:$0xf] }
  0x1e   : > { %206 = vst [vmem:[%s1543_s7 + $0x1c] sm:$0xf] %v205_v7  ;;  %v225_v17 = vld [vmem:[%s1538_s6 + $0xd04] sm:$0xf]  ;;  %v227_v18 = vld [vmem:[%s1538_s6 + $0xdc8] sm:$0xf] }
  0x1f   : > { %208 = vst [vmem:[%s1543_s7 + $0x20] sm:$0xf] %v207_v8  ;;  %v229_v19 = vld [vmem:[%s1538_s6 + $0xe8c] sm:$0xf]  ;;  %v231_v20 = vld [vmem:[%s1538_s6 + $0xf50] sm:$0xf] }
  0x20   : > { %210 = vst [vmem:[%s1543_s7 + $0x24] sm:$0xf] %v209_v9  ;;  %v233_v21 = vld [vmem:[%s1538_s6 + $0x1014] sm:$0xf]  ;;  %v235_v22 = vld [vmem:[%s1538_s6 + $0x10d8] sm:$0xf] }
  0x21   : > { %212 = vst [vmem:[%s1543_s7 + $0x28] sm:$0xf] %v211_v10  ;;  %v237_v23 = vld [vmem:[%s1538_s6 + $0x119c] sm:$0xf]  ;;  %v239_v24 = vld [vmem:[%s1538_s6 + $0x1260] sm:$0xf] }
  0x22   : > { %214 = vst [vmem:[%s1543_s7 + $0x2c] sm:$0xf] %v213_v11  ;;  %v241_v25 = vld [vmem:[%s1538_s6 + $0x1324] sm:$0xf]  ;;  %v243_v26 = vld [vmem:[%s1538_s6 + $0x13e8] sm:$0xf] }
  0x23   : > { %216 = vst [vmem:[%s1543_s7 + $0x30] sm:$0xf] %v215_v12  ;;  %v245_v27 = vld [vmem:[%s1538_s6 + $0x14ac] sm:$0xf]  ;;  %v247_v28 = vld [vmem:[%s1538_s6 + $0x1570] sm:$0xf] }
  0x24   : > { %218 = vst [vmem:[%s1543_s7 + $0x34] sm:$0xf] %v217_v13  ;;  %v249_v29 = vld [vmem:[%s1538_s6 + $0x1634] sm:$0xf]  ;;  %v251_v30 = vld [vmem:[%s1538_s6 + $0x16f8] sm:$0xf] }
  0x25   : > { %220 = vst [vmem:[%s1543_s7 + $0x38] sm:$0xf] %v219_v14  ;;  %v253_v31 = vld [vmem:[%s1538_s6 + $0x17bc] sm:$0xf] }
  0x26   : > { %222 = vst [vmem:[%s1543_s7 + $0x3c] sm:$0xf] %v221_v15 }
  0x27   : > { %224 = vst [vmem:[%s1543_s7 + $0x40] sm:$0xf] %v223_v16 }
  0x28   : > { %226 = vst [vmem:[%s1543_s7 + $0x44] sm:$0xf] %v225_v17 }
  0x29   : > { %228 = vst [vmem:[%s1543_s7 + $0x48] sm:$0xf] %v227_v18 }
  0x2a   : > { %230 = vst [vmem:[%s1543_s7 + $0x4c] sm:$0xf] %v229_v19 }
  0x2b   : > { %232 = vst [vmem:[%s1543_s7 + $0x50] sm:$0xf] %v231_v20 }
  0x2c   : > { %234 = vst [vmem:[%s1543_s7 + $0x54] sm:$0xf] %v233_v21 }
  0x2d   : > { %236 = vst [vmem:[%s1543_s7 + $0x58] sm:$0xf] %v235_v22 }
  0x2e   : > { %238 = vst [vmem:[%s1543_s7 + $0x5c] sm:$0xf] %v237_v23 }
  0x2f   : > { %240 = vst [vmem:[%s1543_s7 + $0x60] sm:$0xf] %v239_v24 }
  0x30   : > { %242 = vst [vmem:[%s1543_s7 + $0x64] sm:$0xf] %v241_v25 }
  0x31   : > { %244 = vst [vmem:[%s1543_s7 + $0x68] sm:$0xf] %v243_v26 }
  0x32   : > { %246 = vst [vmem:[%s1543_s7 + $0x6c] sm:$0xf] %v245_v27 }
  0x33   : > { %248 = vst [vmem:[%s1543_s7 + $0x70] sm:$0xf] %v247_v28 }
  0x34   : > { %250 = vst [vmem:[%s1543_s7 + $0x74] sm:$0xf] %v249_v29 }
  0x35   : > { %252 = vst [vmem:[%s1543_s7 + $0x78] sm:$0xf] %v251_v30 }
  0x36   : > { %254 = vst [vmem:[%s1543_s7 + $0x7c] sm:$0xf] %v253_v31 }
  0x37 PF: > { %p1093_p7 = scmp.ge.s32.totalorder %s1455_s18, 1  ;;  %p353_p8 = scmp.lt.s32.totalorder %s1455_s18, 99 }
  0x39   : > { %p354_p9 = pnand %p1093_p7, %p353_p8 }
  0x3a   : > { %s360_s8 = sand.u32 (!%p354_p9), 1, %s1431_s12   ;;  %s1095_s9 = sshll.u32 (!%p354_p9), %s1439_s14, 4 }
  0x3b   : > { %357 = sbr.rel (%p354_p9) target bundleno = 352 (0x160), region = 69  ;;  %s1094_s10 = sshll.u32 (!%p354_p9), %s360_s8, 7 }
  0x3c   : > { %p399_p10 = scmp.lt.s32.totalorder (!%p354_p9), %s1095_s9, 783  ;;  %s1097_s11 = sshll.u32 (!%p354_p9), %s1443_s15, 5 }
  0x3d   : > { %p411_p11 = scmp.lt.s32.totalorder (!%p354_p9), %s1097_s11, 63  ;;  %s1621_s12 = scalar_lea.vmem (!%p354_p9), [#allocation3], %s1094_s10 }
  0x3e   : > { %p1099_p12 = scmp.ne.s32.totalorder (!%p354_p9), %s1439_s14, 0 }
  0x40   : > { %s1740_s9 = smov (!%p399_p10, %s1095_s9), 783  ;;  %s1742_s11 = smov (!%p411_p11, %s1097_s11), 63 }
  0x41   : > { %s1096_s21 = sshll.u32 %s1740_s9, 2  ;;  %s1098_s26 = sshll.u32 %s1742_s11, 2 }
  0x42   : > { %s1614_s24 = scalar_lea.vmem %s1724_s1, %s1096_s21  ;;  %s1619_s29 = scalar_lea.vmem %s1726_s3, %s1098_s26 }
  0x43   : > { %422 = sbr.rel (%p1099_p12) target bundleno = 105 (0x69), region = 77 }
  0x48   : > { %v1457_v32 = vmov 0.0  }
  0x49   : > { %423 = vst [vmem:[#allocation2 + $0xb0] sm:$0xff] %v1457_v32 }
  0x4a   : > { %424 = vst [vmem:[#allocation2] sm:$0xff] %v1457_v32 }
  0x4b   : > { %425 = vst [vmem:[#allocation2 + $0xd8] sm:$0xff] %v1457_v32 }
  0x4c   : > { %426 = vst [vmem:[#allocation2 + $0x18] sm:$0xff] %v1457_v32 }
  0x4d   : > { %427 = vst [vmem:[#allocation2 + $0x50] sm:$0xff] %v1457_v32 }
  0x4e   : > { %428 = vst [vmem:[#allocation2 + $0x68] sm:$0xff] %v1457_v32 }
  0x4f   : > { %429 = vst [vmem:[#allocation2 + $0x30] sm:$0xff] %v1457_v32 }
  0x50   : > { %430 = vst [vmem:[#allocation2 + $0x48] sm:$0xff] %v1457_v32 }
  0x51   : > { %431 = vst [vmem:[#allocation2 + $0x80] sm:$0xff] %v1457_v32 }
  0x52   : > { %432 = vst [vmem:[#allocation2 + $0x88] sm:$0xff] %v1457_v32 }
  0x53   : > { %433 = vst [vmem:[#allocation2 + $0xe8] sm:$0xff] %v1457_v32 }
  0x54   : > { %434 = vst [vmem:[#allocation2 + $0xb8] sm:$0xff] %v1457_v32 }
  0x55   : > { %435 = vst [vmem:[#allocation2 + $0x60] sm:$0xff] %v1457_v32 }
  0x56   : > { %436 = vst [vmem:[#allocation2 + $0xf0] sm:$0xff] %v1457_v32 }
  0x57   : > { %437 = vst [vmem:[#allocation2 + $0x8] sm:$0xff] %v1457_v32 }
  0x58   : > { %438 = vst [vmem:[#allocation2 + $0x78] sm:$0xff] %v1457_v32 }
  0x59   : > { %439 = vst [vmem:[#allocation2 + $0x38] sm:$0xff] %v1457_v32 }
  0x5a   : > { %440 = vst [vmem:[#allocation2 + $0x58] sm:$0xff] %v1457_v32 }
  0x5b   : > { %441 = vst [vmem:[#allocation2 + $0x40] sm:$0xff] %v1457_v32 }
  0x5c   : > { %442 = vst [vmem:[#allocation2 + $0xc8] sm:$0xff] %v1457_v32 }
  0x5d   : > { %443 = vst [vmem:[#allocation2 + $0xe0] sm:$0xff] %v1457_v32 }
  0x5e   : > { %444 = vst [vmem:[#allocation2 + $0x90] sm:$0xff] %v1457_v32 }
  0x5f   : > { %445 = vst [vmem:[#allocation2 + $0x70] sm:$0xff] %v1457_v32 }
  0x60   : > { %446 = vst [vmem:[#allocation2 + $0xc0] sm:$0xff] %v1457_v32 }
  0x61   : > { %447 = vst [vmem:[#allocation2 + $0xa8] sm:$0xff] %v1457_v32 }
  0x62   : > { %448 = vst [vmem:[#allocation2 + $0xd0] sm:$0xff] %v1457_v32 }
  0x63   : > { %449 = vst [vmem:[#allocation2 + $0x10] sm:$0xff] %v1457_v32 }
  0x64   : > { %450 = vst [vmem:[#allocation2 + $0x28] sm:$0xff] %v1457_v32 }
  0x65   : > { %451 = vst [vmem:[#allocation2 + $0xa0] sm:$0xff] %v1457_v32 }
  0x66   : > { %452 = vst [vmem:[#allocation2 + $0xf8] sm:$0xff] %v1457_v32 }
  0x67   : > { %453 = vst [vmem:[#allocation2 + $0x20] sm:$0xff] %v1457_v32 }
  0x68   : > { %454 = vst [vmem:[#allocation2 + $0x98] sm:$0xff] %v1457_v32 }
  0x69 PF: > { %v1222_v33 = vld [vmem:[%s1614_s24 + $0x38] sm:$0xff]  ;;  %v1221_v34 = vld [vmem:[%s1614_s24 + $0x30] sm:$0xff]  ;;  %v1220_v35 = vld [vmem:[%s1614_s24 + $0x28] sm:$0xff]  ;;  %p1196_p13 = scmp.ne.s32.totalorder %s1439_s14, 48 }
  0x6a   : > { %679 = vmatpush.bf16.msra.mxu0 %v1222_v33  ;;  %1318 = vmatpush.bf16.msra.mxu1 %v1222_v33  ;;  %v1219_v36 = vld [vmem:[%s1614_s24 + $0x20] sm:$0xff]  ;;  %v1218_v37 = vld [vmem:[%s1614_s24 + $0x18] sm:$0xff]  ;;  %v1217_v38 = vld [vmem:[%s1614_s24 + $0x10] sm:$0xff] }
  0x6b   : > { %1319 = vmatpush.bf16.msra.mxu2 %v1222_v33  ;;  %1320 = vmatpush.bf16.msra.mxu3 %v1222_v33  ;;  %v1216_v39 = vld [vmem:[%s1614_s24 + $0x8] sm:$0xff]  ;;  %v1215_v40 = vld [vmem:[%s1614_s24] sm:$0xff]  ;;  %v1201_v49 = vld [vmem:[%s1621_s12 + $0x10] sm:$0xff] }
  0x6c   : > { %v1199_v41 = vld [vmem:[%s1621_s12] sm:$0xff]  ;;  %v1200_v45 = vld [vmem:[%s1621_s12 + $0x8] sm:$0xff]  ;;  %v1205_v50 = vld [vmem:[%s1621_s12 + $0x30] sm:$0xff] }
  0x6d   : > { %v1203_v42 = vld [vmem:[%s1621_s12 + $0x20] sm:$0xff]  ;;  %v1204_v46 = vld [vmem:[%s1621_s12 + $0x28] sm:$0xff]  ;;  %v1209_v51 = vld [vmem:[%s1621_s12 + $0x50] sm:$0xff] }
  0x6e   : > { %680 = vmatpush.bf16.msra.mxu0 %v1221_v34  ;;  %1321 = vmatpush.bf16.msra.mxu1 %v1221_v34  ;;  %v1207_v43 = vld [vmem:[%s1621_s12 + $0x40] sm:$0xff]  ;;  %v1208_v47 = vld [vmem:[%s1621_s12 + $0x48] sm:$0xff]  ;;  %v1213_v52 = vld [vmem:[%s1621_s12 + $0x70] sm:$0xff] }
  0x6f   : > { %1322 = vmatpush.bf16.msra.mxu2 %v1221_v34  ;;  %1323 = vmatpush.bf16.msra.mxu3 %v1221_v34  ;;  %v1211_v44 = vld [vmem:[%s1621_s12 + $0x60] sm:$0xff]  ;;  %v1212_v48 = vld [vmem:[%s1621_s12 + $0x68] sm:$0xff]  ;;  %v1202_v53 = vld [vmem:[%s1621_s12 + $0x18] sm:$0xff] }
  0x70   : > { %v1206_v54 = vld [vmem:[%s1621_s12 + $0x38] sm:$0xff]  ;;  %v455_v57 = vld [vmem:[#allocation2 + $0xb0] sm:$0xff]  ;;  %v463_v58 = vld [vmem:[#allocation2 + $0x80] sm:$0xff] }
  0x71   : > { %v1210_v55 = vld [vmem:[%s1621_s12 + $0x58] sm:$0xff]  ;;  %v479_v0 = vld [vmem:[#allocation2 + $0xa8] sm:$0xff]  ;;  %v456_v1 = vld [vmem:[#allocation2] sm:$0xff] }
  0x72   : > { %681 = vmatpush.bf16.msra.mxu0 %v1220_v35  ;;  %1324 = vmatpush.bf16.msra.mxu1 %v1220_v35  ;;  %v1214_v56 = vld [vmem:[%s1621_s12 + $0x78] sm:$0xff]  ;;  %v464_v2 = vld [vmem:[#allocation2 + $0x88] sm:$0xff]  ;;  %v480_v12 = vld [vmem:[#allocation2 + $0xd0] sm:$0xff] }
  0x73   : > { %1325 = vmatpush.bf16.msra.mxu2 %v1220_v35  ;;  %1326 = vmatpush.bf16.msra.mxu3 %v1220_v35  ;;  %v471_v63 = vld [vmem:[#allocation2 + $0x38] sm:$0xff]  ;;  %v465_v14 = vld [vmem:[#allocation2 + $0xe8] sm:$0xff]  ;;  %v473_v23 = vld [vmem:[#allocation2 + $0x40] sm:$0xff] }
  0x74   : > { %v472_v11 = vld [vmem:[#allocation2 + $0x58] sm:$0xff]  ;;  %v481_v24 = vld [vmem:[#allocation2 + $0x10] sm:$0xff]  ;;  %v474_v35 = vld [vmem:[#allocation2 + $0xc8] sm:$0xff] }
  0x75   : > { %v457_v13 = vld [vmem:[#allocation2 + $0xd8] sm:$0xff] }
  0x76   : > { %682 = vmatpush.bf16.msra.mxu0 %v1219_v36  ;;  %1327 = vmatpush.bf16.msra.mxu1 %v1219_v36  ;;  %v458_v25 = vld [vmem:[#allocation2 + $0x18] sm:$0xff] }
  0x77   : > { %1328 = vmatpush.bf16.msra.mxu2 %v1219_v36  ;;  %1329 = vmatpush.bf16.msra.mxu3 %v1219_v36  ;;  %v466_v26 = vld [vmem:[#allocation2 + $0xb8] sm:$0xff]  ;;  %v482_v36 = vld [vmem:[#allocation2 + $0x28] sm:$0xff] }
  0x7a   : > { %683 = vmatpush.bf16.msra.mxu0 %v1218_v37  ;;  %1330 = vmatpush.bf16.msra.mxu1 %v1218_v37 }
  0x7b   : > { %1331 = vmatpush.bf16.msra.mxu2 %v1218_v37  ;;  %1332 = vmatpush.bf16.msra.mxu3 %v1218_v37  ;;  %v459_v37 = vld [vmem:[#allocation2 + $0x50] sm:$0xff] }
  0x7e   : > { %684 = vmatpush.bf16.msra.mxu0 %v1217_v38  ;;  %1333 = vmatpush.bf16.msra.mxu1 %v1217_v38 }
  0x7f   : > { %1334 = vmatpush.bf16.msra.mxu2 %v1217_v38  ;;  %1335 = vmatpush.bf16.msra.mxu3 %v1217_v38  ;;  %v467_v38 = vld [vmem:[#allocation2 + $0x60] sm:$0xff] }
  0x82   : > { %685 = vmatpush.bf16.msra.mxu0 %v1216_v39  ;;  %1336 = vmatpush.bf16.msra.mxu1 %v1216_v39 }
  0x83   : > { %1337 = vmatpush.bf16.msra.mxu2 %v1216_v39  ;;  %1338 = vmatpush.bf16.msra.mxu3 %v1216_v39 }
  0x86   : > { %686 = vmatpush.bf16.msra.mxu0 %v1215_v40  ;;  %1339 = vmatpush.bf16.msra.mxu1 %v1215_v40 }
  0x87   : > { %1340 = vmatpush.bf16.msra.mxu2 %v1215_v40  ;;  %1341 = vmatpush.bf16.msra.mxu3 %v1215_v40 }
  0x89   : > { %687 = vmatmul.bf16.vlgmr.msra.gmra.mxu0 %v1199_v41  ;;  %707 = vmatmul.bf16.vlgmr.msra.gmra.mxu1 %v1203_v42 }
  0x8a   : > { %727 = vmatmul.bf16.vlgmr.msra.gmra.mxu2 %v1207_v43  ;;  %747 = vmatmul.bf16.vlgmr.msra.gmra.mxu3 %v1211_v44 }
  0x99   : > { %692 = vmatmul.bf16.gmra.mxu0 %v1200_v45  ;;  %712 = vmatmul.bf16.gmra.mxu1 %v1204_v46 }
  0x9a   : > { %732 = vmatmul.bf16.gmra.mxu2 %v1208_v47  ;;  %752 = vmatmul.bf16.gmra.mxu3 %v1212_v48  ;;  %v475_v47 = vld [vmem:[#allocation2 + $0xe0] sm:$0xff] }
  0x9b   : > { %v483_v48 = vld [vmem:[#allocation2 + $0xa0] sm:$0xff] }
  0xa9   : > { %697 = vmatmul.bf16.gmra.mxu0 %v1201_v49  ;;  %717 = vmatmul.bf16.gmra.mxu1 %v1205_v50  ;;  %v460_v49 = vld [vmem:[#allocation2 + $0x68] sm:$0xff]  ;;  %v468_v50 = vld [vmem:[#allocation2 + $0xf0] sm:$0xff] }
  0xaa   : > { %737 = vmatmul.bf16.gmra.mxu2 %v1209_v51  ;;  %757 = vmatmul.bf16.gmra.mxu3 %v1213_v52 }
  0xb9   : > { %702 = vmatmul.bf16.gmra.mxu0 %v1202_v53  ;;  %722 = vmatmul.bf16.gmra.mxu1 %v1206_v54 }
  0xba   : > { %742 = vmatmul.bf16.gmra.mxu2 %v1210_v55  ;;  %762 = vmatmul.bf16.gmra.mxu3 %v1214_v56 }
 0x106   : > { %v688_v59 = vpop.f32.mrf.mxu0  ;;  %v708_v60 = vpop.f32.mrf.mxu1 }
 0x107   : > { %v768_v61 = vadd.f32 %v688_v59, %v455_v57  ;;  %v776_v62 = vadd.f32 %v708_v60, %v463_v58  ;;  %v476_v59 = vld [vmem:[#allocation2 + $0x90] sm:$0xff]  ;;  %v484_v60 = vld [vmem:[#allocation2 + $0xf8] sm:$0xff] }
 0x109   : > { %800 = vst [vmem:[#allocation2 + $0xb0] sm:$0xff] %v768_v61  ;;  %v461_v61 = vld [vmem:[#allocation2 + $0x30] sm:$0xff] }
 0x10a   : > { %808 = vst [vmem:[#allocation2 + $0x80] sm:$0xff] %v776_v62  ;;  %v469_v62 = vld [vmem:[#allocation2 + $0x8] sm:$0xff] }
 0x10d   : > { %v728_v3 = vpop.f32.mrf.mxu2  ;;  %v748_v4 = vpop.f32.mrf.mxu3 }
 0x10e   : > { %v784_v5 = vadd.f32 %v728_v3, %v471_v63  ;;  %v792_v6 = vadd.f32 %v748_v4, %v479_v0  ;;  %v690_v7 = vpop.f32.mrf.mxu0  ;;  %v710_v8 = vpop.f32.mrf.mxu1 }
 0x10f   : > { %v769_v9 = vadd.f32 %v690_v7, %v456_v1  ;;  %v777_v10 = vadd.f32 %v710_v8, %v464_v2  ;;  %v477_v7 = vld [vmem:[#allocation2 + $0x70] sm:$0xff]  ;;  %v485_v8 = vld [vmem:[#allocation2 + $0x20] sm:$0xff] }
 0x110   : > { %816 = vst [vmem:[#allocation2 + $0x38] sm:$0xff] %v784_v5 }
 0x111   : > { %824 = vst [vmem:[#allocation2 + $0xa8] sm:$0xff] %v792_v6 }
 0x112   : > { %801 = vst [vmem:[#allocation2] sm:$0xff] %v769_v9  ;;  %v462_v9 = vld [vmem:[#allocation2 + $0x48] sm:$0xff] }
 0x113   : > { %809 = vst [vmem:[#allocation2 + $0x88] sm:$0xff] %v777_v10  ;;  %v470_v10 = vld [vmem:[#allocation2 + $0x78] sm:$0xff] }
 0x115   : > { %v730_v15 = vpop.f32.mrf.mxu2  ;;  %v750_v16 = vpop.f32.mrf.mxu3 }
 0x116   : > { %v785_v17 = vadd.f32 %v730_v15, %v472_v11  ;;  %v793_v18 = vadd.f32 %v750_v16, %v480_v12  ;;  %v693_v19 = vpop.f32.mrf.mxu0  ;;  %v713_v20 = vpop.f32.mrf.mxu1 }
 0x117   : > { %v770_v21 = vadd.f32 %v693_v19, %v457_v13  ;;  %v778_v22 = vadd.f32 %v713_v20, %v465_v14  ;;  %v478_v19 = vld [vmem:[#allocation2 + $0xc0] sm:$0xff]  ;;  %v486_v20 = vld [vmem:[#allocation2 + $0x98] sm:$0xff] }
 0x118   : > { %817 = vst [vmem:[#allocation2 + $0x58] sm:$0xff] %v785_v17 }
 0x119   : > { %825 = vst [vmem:[#allocation2 + $0xd0] sm:$0xff] %v793_v18 }
 0x11a   : > { %802 = vst [vmem:[#allocation2 + $0xd8] sm:$0xff] %v770_v21 }
 0x11b   : > { %810 = vst [vmem:[#allocation2 + $0xe8] sm:$0xff] %v778_v22 }
 0x11d   : > { %v733_v27 = vpop.f32.mrf.mxu2  ;;  %v753_v28 = vpop.f32.mrf.mxu3 }
 0x11e   : > { %v786_v29 = vadd.f32 %v733_v27, %v473_v23  ;;  %v794_v30 = vadd.f32 %v753_v28, %v481_v24  ;;  %v695_v31 = vpop.f32.mrf.mxu0  ;;  %v715_v32 = vpop.f32.mrf.mxu1 }
 0x11f   : > { %v771_v33 = vadd.f32 %v695_v31, %v458_v25  ;;  %v779_v34 = vadd.f32 %v715_v32, %v466_v26 }
 0x120   : > { %818 = vst [vmem:[#allocation2 + $0x40] sm:$0xff] %v786_v29 }
 0x121   : > { %826 = vst [vmem:[#allocation2 + $0x10] sm:$0xff] %v794_v30 }
 0x122   : > { %803 = vst [vmem:[#allocation2 + $0x18] sm:$0xff] %v771_v33 }
 0x123   : > { %811 = vst [vmem:[#allocation2 + $0xb8] sm:$0xff] %v779_v34 }
 0x125   : > { %v735_v39 = vpop.f32.mrf.mxu2  ;;  %v755_v40 = vpop.f32.mrf.mxu3 }
 0x126   : > { %v787_v41 = vadd.f32 %v735_v39, %v474_v35  ;;  %v795_v42 = vadd.f32 %v755_v40, %v482_v36  ;;  %v698_v43 = vpop.f32.mrf.mxu0  ;;  %v718_v44 = vpop.f32.mrf.mxu1 }
 0x127   : > { %v772_v45 = vadd.f32 %v698_v43, %v459_v37  ;;  %v780_v46 = vadd.f32 %v718_v44, %v467_v38 }
 0x128   : > { %819 = vst [vmem:[#allocation2 + $0xc8] sm:$0xff] %v787_v41 }
 0x129   : > { %827 = vst [vmem:[#allocation2 + $0x28] sm:$0xff] %v795_v42 }
 0x12a   : > { %804 = vst [vmem:[#allocation2 + $0x50] sm:$0xff] %v772_v45 }
 0x12b   : > { %812 = vst [vmem:[#allocation2 + $0x60] sm:$0xff] %v780_v46 }
 0x12d   : > { %v738_v51 = vpop.f32.mrf.mxu2  ;;  %v758_v52 = vpop.f32.mrf.mxu3 }
 0x12e   : > { %v788_v53 = vadd.f32 %v738_v51, %v475_v47  ;;  %v796_v54 = vadd.f32 %v758_v52, %v483_v48  ;;  %v700_v55 = vpop.f32.mrf.mxu0  ;;  %v720_v56 = vpop.f32.mrf.mxu1 }
 0x12f   : > { %v773_v57 = vadd.f32 %v700_v55, %v460_v49  ;;  %v781_v58 = vadd.f32 %v720_v56, %v468_v50 }
 0x130   : > { %820 = vst [vmem:[#allocation2 + $0xe0] sm:$0xff] %v788_v53 }
 0x131   : > { %828 = vst [vmem:[#allocation2 + $0xa0] sm:$0xff] %v796_v54 }
 0x132   : > { %805 = vst [vmem:[#allocation2 + $0x68] sm:$0xff] %v773_v57 }
 0x133   : > { %813 = vst [vmem:[#allocation2 + $0xf0] sm:$0xff] %v781_v58 }
 0x135   : > { %v740_v63 = vpop.f32.mrf.mxu2  ;;  %v760_v0 = vpop.f32.mrf.mxu3 }
 0x136   : > { %v789_v1 = vadd.f32 %v740_v63, %v476_v59  ;;  %v797_v2 = vadd.f32 %v760_v0, %v484_v60  ;;  %v703_v3 = vpop.f32.mrf.mxu0  ;;  %v723_v4 = vpop.f32.mrf.mxu1 }
 0x137   : > { %v774_v5 = vadd.f32 %v703_v3, %v461_v61  ;;  %v782_v6 = vadd.f32 %v723_v4, %v469_v62 }
 0x138   : > { %821 = vst [vmem:[#allocation2 + $0x90] sm:$0xff] %v789_v1 }
 0x139   : > { %829 = vst [vmem:[#allocation2 + $0xf8] sm:$0xff] %v797_v2 }
 0x13a   : > { %806 = vst [vmem:[#allocation2 + $0x30] sm:$0xff] %v774_v5 }
 0x13b   : > { %814 = vst [vmem:[#allocation2 + $0x8] sm:$0xff] %v782_v6 }
 0x13d   : > { %v743_v11 = vpop.f32.mrf.mxu2  ;;  %v763_v12 = vpop.f32.mrf.mxu3 }
 0x13e   : > { %v790_v13 = vadd.f32 %v743_v11, %v477_v7  ;;  %v798_v14 = vadd.f32 %v763_v12, %v485_v8  ;;  %v705_v15 = vpop.f32.mrf.mxu0  ;;  %v725_v16 = vpop.f32.mrf.mxu1 }
 0x13f   : > { %v775_v17 = vadd.f32 %v705_v15, %v462_v9  ;;  %v783_v18 = vadd.f32 %v725_v16, %v470_v10 }
 0x140   : > { %822 = vst [vmem:[#allocation2 + $0x70] sm:$0xff] %v790_v13 }
 0x141   : > { %830 = vst [vmem:[#allocation2 + $0x20] sm:$0xff] %v798_v14 }
 0x142   : > { %807 = vst [vmem:[#allocation2 + $0x48] sm:$0xff] %v775_v17 }
 0x143   : > { %815 = vst [vmem:[#allocation2 + $0x78] sm:$0xff] %v783_v18 }
 0x145   : > { %v745_v21 = vpop.f32.mrf.mxu2  ;;  %v765_v22 = vpop.f32.mrf.mxu3  ;;  %835 = sbr.rel (%p1196_p13) target bundleno = 352 (0x160), region = 81 }
 0x146   : > { %v791_v23 = vadd.f32 %v745_v21, %v478_v19  ;;  %v799_v24 = vadd.f32 %v765_v22, %v486_v20 }
 0x148   : > { %823 = vst [vmem:[#allocation2 + $0xc0] sm:$0xff] %v791_v23 }
 0x149   : > { %831 = vst [vmem:[#allocation2 + $0x98] sm:$0xff] %v799_v24 }
 0x14a   : > { %v836_v25 = vld [vmem:[#allocation2 + $0xb0] sm:$0xff]  ;;  %v837_v26 = vld [vmem:[#allocation2] sm:$0xff]  ;;  %v838_v28 = vld [vmem:[#allocation2 + $0xd8] sm:$0xff] }
 0x14b   : > { %v1652_v27 = vld [vmem:[%s1725_s2] ss:$0 sm:$0xff]  ;;  %v839_v29 = vld [vmem:[#allocation2 + $0x18] sm:$0xff]  ;;  %v840_v30 = vld [vmem:[#allocation2 + $0x50] sm:$0xff] }
 0x14c   : > { %v841_v31 = vld [vmem:[#allocation2 + $0x68] sm:$0xff]  ;;  %v842_v32 = vld [vmem:[#allocation2 + $0x30] sm:$0xff]  ;;  %v872_v33 = vadd.f32 %v1652_v27, %v836_v25  ;;  %v873_v34 = vadd.f32 %v1652_v27, %v837_v26  ;;  %v874_v35 = vadd.f32 %v1652_v27, %v838_v28  ;;  %v875_v36 = vadd.f32 %v1652_v27, %v839_v29  ;;  %v844_v38 = vld [vmem:[#allocation2 + $0x80] sm:$0xff] }
 0x14d   : > { %v843_v37 = vld [vmem:[#allocation2 + $0x48] sm:$0xff]  ;;  %v876_v40 = vadd.f32 %v1652_v27, %v840_v30  ;;  %v877_v41 = vadd.f32 %v1652_v27, %v841_v31  ;;  %v878_v42 = vadd.f32 %v1652_v27, %v842_v32  ;;  %v847_v45 = vld [vmem:[#allocation2 + $0xb8] sm:$0xff]  ;;  %v848_v46 = vld [vmem:[#allocation2 + $0x60] sm:$0xff]  ;;  %v880_v49 = vadd.f32 %v1652_v27, %v844_v38 }
 0x14e   : > { %v845_v39 = vld [vmem:[#allocation2 + $0x88] sm:$0xff]  ;;  %v879_v43 = vadd.f32 %v1652_v27, %v843_v37  ;;  %v1226_v47 = vpack.c.bf16 %v873_v34, %v872_v33  ;;  %v1231_v48 = vpack.c.bf16 %v875_v36, %v874_v35  ;;  %v849_v51 = vld [vmem:[#allocation2 + $0xf0] sm:$0xff]  ;;  %v851_v53 = vld [vmem:[#allocation2 + $0x78] sm:$0xff]  ;;  %v883_v57 = vadd.f32 %v1652_v27, %v847_v45 }
 0x14f   : > { %v846_v44 = vld [vmem:[#allocation2 + $0xe8] sm:$0xff]  ;;  %v881_v50 = vadd.f32 %v1652_v27, %v845_v39  ;;  %v1236_v54 = vpack.c.bf16 %v877_v41, %v876_v40  ;;  %v852_v58 = vld [vmem:[#allocation2 + $0x38] sm:$0xff]  ;;  %v854_v60 = vld [vmem:[#allocation2 + $0x40] sm:$0xff]  ;;  %v884_v62 = vadd.f32 %v1652_v27, %v848_v46  ;;  %v885_v63 = vadd.f32 %v1652_v27, %v849_v51 }
 0x150   : > { %v850_v52 = vld [vmem:[#allocation2 + $0x8] sm:$0xff]  ;;  %v1241_v55 = vpack.c.bf16 %v879_v43, %v878_v42  ;;  %v882_v56 = vadd.f32 %v1652_v27, %v846_v44  ;;  %v853_v59 = vld [vmem:[#allocation2 + $0x58] sm:$0xff]  ;;  %1227 = vst [vmem:[%s1619_s29] sm:$0xff] %v1226_v47   ;;  %v856_v2 = vld [vmem:[#allocation2 + $0xe0] sm:$0xff]  ;;  %v887_v5 = vadd.f32 %v1652_v27, %v851_v53  ;;  %v888_v6 = vadd.f32 %v1652_v27, %v852_v58 }
 0x151   : > { %v1246_v61 = vpack.c.bf16 %v881_v50, %v880_v49  ;;  %v886_v0 = vadd.f32 %v1652_v27, %v850_v52  ;;  %v855_v1 = vld [vmem:[#allocation2 + $0xc8] sm:$0xff]  ;;  %v857_v3 = vld [vmem:[#allocation2 + $0x90] sm:$0xff]  ;;  %1303 = vst [vmem:[%s1619_s29 + $0x8] sm:$0xff] %v1231_v48   ;;  %v889_v7 = vadd.f32 %v1652_v27, %v853_v59  ;;  %v859_v9 = vld [vmem:[#allocation2 + $0xc0] sm:$0xff]  ;;  %v1256_v11 = vpack.c.bf16 %v885_v63, %v884_v62 }
 0x152   : > { %v1251_v4 = vpack.c.bf16 %v883_v57, %v882_v56  ;;  %v858_v8 = vld [vmem:[#allocation2 + $0x70] sm:$0xff]  ;;  %v860_v10 = vld [vmem:[#allocation2 + $0xa8] sm:$0xff]  ;;  %1304 = vst [vmem:[%s1619_s29 + $0x10] sm:$0xff] %v1236_v54   ;;  %v890_v12 = vadd.f32 %v1652_v27, %v854_v60  ;;  %v891_v13 = vadd.f32 %v1652_v27, %v855_v1  ;;  %v892_v14 = vadd.f32 %v1652_v27, %v856_v2  ;;  %v864_v21 = vld [vmem:[#allocation2 + $0xa0] sm:$0xff] }
 0x153   : > { %v861_v15 = vld [vmem:[#allocation2 + $0xd0] sm:$0xff]  ;;  %v863_v17 = vld [vmem:[#allocation2 + $0x28] sm:$0xff]  ;;  %1305 = vst [vmem:[%s1619_s29 + $0x18] sm:$0xff] %v1241_v55   ;;  %v1261_v18 = vpack.c.bf16 %v887_v5, %v886_v0  ;;  %v893_v19 = vadd.f32 %v1652_v27, %v857_v3  ;;  %v894_v20 = vadd.f32 %v1652_v27, %v858_v8  ;;  %v865_v22 = vld [vmem:[#allocation2 + $0xf8] sm:$0xff]  ;;  %v1266_v23 = vpack.c.bf16 %v889_v7, %v888_v6 }
 0x154   : > { %v862_v16 = vld [vmem:[#allocation2 + $0x10] sm:$0xff]  ;;  %1306 = vst [vmem:[%s1619_s29 + $0x20] sm:$0xff] %v1246_v61   ;;  %v895_v24 = vadd.f32 %v1652_v27, %v859_v9  ;;  %v896_v25 = vadd.f32 %v1652_v27, %v860_v10  ;;  %v897_v26 = vadd.f32 %v1652_v27, %v861_v15  ;;  %v866_v28 = vld [vmem:[#allocation2 + $0x20] sm:$0xff]  ;;  %v867_v29 = vld [vmem:[#allocation2 + $0x98] sm:$0xff]  ;;  %v1271_v30 = vpack.c.bf16 %v891_v13, %v890_v12 }
 0x155   : > { %1307 = vst [vmem:[%s1619_s29 + $0x28] sm:$0xff] %v1251_v4   ;;  %v898_v31 = vadd.f32 %v1652_v27, %v862_v16  ;;  %v899_v32 = vadd.f32 %v1652_v27, %v863_v17  ;;  %v1276_v33 = vpack.c.bf16 %v893_v19, %v892_v14  ;;  %v900_v34 = vadd.f32 %v1652_v27, %v864_v21 }
 0x156   : > { %1308 = vst [vmem:[%s1619_s29 + $0x30] sm:$0xff] %v1256_v11   ;;  %v901_v35 = vadd.f32 %v1652_v27, %v865_v22  ;;  %v1281_v36 = vpack.c.bf16 %v895_v24, %v894_v20  ;;  %v902_v37 = vadd.f32 %v1652_v27, %v866_v28  ;;  %v903_v38 = vadd.f32 %v1652_v27, %v867_v29 }
 0x157   : > { %1309 = vst [vmem:[%s1619_s29 + $0x38] sm:$0xff] %v1261_v18   ;;  %v1286_v39 = vpack.c.bf16 %v897_v26, %v896_v25  ;;  %v1291_v40 = vpack.c.bf16 %v899_v32, %v898_v31 }
 0x158   : > { %1310 = vst [vmem:[%s1619_s29 + $0x40] sm:$0xff] %v1266_v23   ;;  %v1296_v41 = vpack.c.bf16 %v901_v35, %v900_v34  ;;  %v1301_v42 = vpack.c.bf16 %v903_v38, %v902_v37 }
 0x159   : > { %1311 = vst [vmem:[%s1619_s29 + $0x48] sm:$0xff] %v1271_v30  }
 0x15a   : > { %1312 = vst [vmem:[%s1619_s29 + $0x50] sm:$0xff] %v1276_v33  }
 0x15b   : > { %1313 = vst [vmem:[%s1619_s29 + $0x58] sm:$0xff] %v1281_v36  }
 0x15c   : > { %1314 = vst [vmem:[%s1619_s29 + $0x60] sm:$0xff] %v1286_v39  }
 0x15d   : > { %1315 = vst [vmem:[%s1619_s29 + $0x68] sm:$0xff] %v1291_v40  }
 0x15e   : > { %1316 = vst [vmem:[%s1619_s29 + $0x70] sm:$0xff] %v1296_v41  }
 0x15f   : > { %1317 = vst [vmem:[%s1619_s29 + $0x78] sm:$0xff] %v1301_v42  }
 0x160 PF: > { %s13_s18 = sadd.s32 1, %s1455_s18   ;;  %s1727_s12 = smov %s1435_s13 }
 0x161   : > { %p10_p0 = scmp.ge.s32.totalorder %s13_s18, 100   ;;  %s1728_s13 = smov %s1529_s25 }
 0x162   : > { %s1729_s14 = smov %s1447_s16  ;;  %s1730_s15 = smov %s1451_s17 }
 0x163   : > { %s1731_s16 = smov %s1734_s19  ;;  %s1732_s17 = smov %s1738_s20 }
 0x164   :  { %12 = sbr.rel (!%p10_p0) target bundleno = 4 (0x4), region = 122 }

// kernel: _lambda_.17
= control target key start
LH: loop header
LB: loop body
LE: loop exit
PB: predicated region body
PF: predicated region fallthrough
CT: control target
= control target key end

     0   :  { %s604_s6 = smov 0   ;;  %s606_s7 = smov 0   ;;  %s796_s0 = inlined_call_operand.vmem [shape: bf16[2,144,128], index: 0, kind: input, shape index: {}]   ;;  %s797_s1 = inlined_call_operand.vmem [shape: bf16[2,144,128], index: 1, kind: output, shape index: {}]  }
   0x1   :  { %s608_s8 = smov 0  }
   0x2 LB: > { %s23_s9 = sadd.s32 1, %s588_s7  ;;  %p441_p0 = scmp.ge.s32.totalorder %s592_s8, 1  ;;  %s592_s8 = sphi %s608_s8, %s11_s8   ;;  %s588_s7 = sphi %s606_s7, %s799_s7   ;;  %s584_s6 = sphi %s604_s6, %s798_s6  }
   0x3   : > { %p25_p1 = scmp.ge.s32.totalorder %s23_s9, 2  ;;  %p106_p2 = scmp.lt.s32.totalorder %s592_s8, 3 }
   0x5   : > { %s801_s9 = smov (%p25_p1, %s23_s9), 0  ;;  %p107_p3 = pnand %p441_p0, %p106_p2 }
   0x6   : > { %p132_p4 = scmp.lt.s32.totalorder (!%p107_p3), %s584_s6, 1 }
   0x7   : > { %110 = sbr.rel (%p107_p3) target bundleno = 109 (0x6d), region = 24 }
   0xc   : > { %s803_s6 = smov (!%p132_p4, %s584_s6), 1 }
   0xd   : > { %s543_s10 = smul.u32 72, %s803_s6 }
   0xf   : > { %s630_s13 = scalar_lea.vmem %s796_s0, %s543_s10  ;;  %s776_s16 = scalar_lea.vmem %s797_s1, %s543_s10 }
  0x10   : > { %v447_v0 = vld [vmem:[%s630_s13] sm:$0xff]   ;;  %v527_v1 = vld [vmem:[%s630_s13 + $0x8] sm:$0xff]   ;;  %v528_v5 = vld [vmem:[%s630_s13 + $0x10] sm:$0xff]  }
  0x11   : > { %v634_v2 = vunpack.c.l.bf16 %v447_v0  ;;  %v636_v3 = vunpack.c.h.bf16 %v447_v0  ;;  %v638_v4 = vunpack.c.l.bf16 %v527_v1  ;;  %v641_v6 = vunpack.c.h.bf16 %v527_v1  ;;  %v529_v12 = vld [vmem:[%s630_s13 + $0x18] sm:$0xff]   ;;  %v530_v20 = vld [vmem:[%s630_s13 + $0x20] sm:$0xff]   ;;  %v531_v29 = vld [vmem:[%s630_s13 + $0x28] sm:$0xff]  }
  0x12   : > { %v649_v10 = vunpack.c.l.bf16 %v528_v5  ;;  %v655_v14 = vunpack.c.h.bf16 %v528_v5  ;;  %v660_v18 = vunpack.c.l.bf16 %v529_v12  ;;  %v666_v23 = vunpack.c.h.bf16 %v529_v12  ;;  %v532_v38 = vld [vmem:[%s630_s13 + $0x30] sm:$0xff]   ;;  %v533_v47 = vld [vmem:[%s630_s13 + $0x38] sm:$0xff]   ;;  %v534_v56 = vld [vmem:[%s630_s13 + $0x40] sm:$0xff]  }
  0x13   : > { %v184_v7 = vadd.f32 %v636_v3, %v634_v2  ;;  %v208_v8 = vmul.f32 %v634_v2, %v634_v2  ;;  %v209_v9 = vmul.f32 %v636_v3, %v636_v3  ;;  %v210_v13 = vmul.f32 %v638_v4, %v638_v4 }
  0x14   : > { %v211_v16 = vmul.f32 %v641_v6, %v641_v6  ;;  %v212_v21 = vmul.f32 %v649_v10, %v649_v10  ;;  %v213_v25 = vmul.f32 %v655_v14, %v655_v14  ;;  %v671_v27 = vunpack.c.l.bf16 %v530_v20 }
  0x15   : > { %v185_v11 = vadd.f32 %v638_v4, %v184_v7  ;;  %v226_v17 = vadd.f32 %v209_v9, %v208_v8  ;;  %v214_v30 = vmul.f32 %v660_v18, %v660_v18  ;;  %v677_v32 = vunpack.c.h.bf16 %v530_v20 }
  0x16   : > { %v215_v34 = vmul.f32 %v666_v23, %v666_v23  ;;  %v682_v36 = vunpack.c.l.bf16 %v531_v29  ;;  %v216_v39 = vmul.f32 %v671_v27, %v671_v27  ;;  %v688_v41 = vunpack.c.h.bf16 %v531_v29 }
  0x17   : > { %v186_v15 = vadd.f32 %v641_v6, %v185_v11  ;;  %v227_v22 = vadd.f32 %v226_v17, %v210_v13  ;;  %v217_v43 = vmul.f32 %v677_v32, %v677_v32  ;;  %v693_v45 = vunpack.c.l.bf16 %v532_v38 }
  0x18   : > { %v218_v48 = vmul.f32 %v682_v36, %v682_v36  ;;  %v699_v50 = vunpack.c.h.bf16 %v532_v38  ;;  %v219_v52 = vmul.f32 %v688_v41, %v688_v41  ;;  %v704_v54 = vunpack.c.l.bf16 %v533_v47 }
  0x19   : > { %v187_v19 = vadd.f32 %v649_v10, %v186_v15  ;;  %v228_v26 = vadd.f32 %v227_v22, %v211_v16  ;;  %v220_v57 = vmul.f32 %v693_v45, %v693_v45  ;;  %v710_v59 = vunpack.c.h.bf16 %v533_v47 }
  0x1a   : > { %v221_v61 = vmul.f32 %v699_v50, %v699_v50  ;;  %v715_v63 = vunpack.c.l.bf16 %v534_v56  ;;  %v222_v1 = vmul.f32 %v704_v54, %v704_v54  ;;  %v720_v7 = vunpack.c.h.bf16 %v534_v56 }
  0x1b   : > { %v188_v24 = vadd.f32 %v655_v14, %v187_v19  ;;  %v229_v31 = vadd.f32 %v228_v26, %v212_v21  ;;  %v223_v9 = vmul.f32 %v710_v59, %v710_v59 }
  0x1c   : > { %v224_v13 = vmul.f32 %v715_v63, %v715_v63  ;;  %v225_v17 = vmul.f32 %v720_v7, %v720_v7 }
  0x1d   : > { %v189_v28 = vadd.f32 %v660_v18, %v188_v24  ;;  %v230_v35 = vadd.f32 %v229_v31, %v213_v25 }
  0x1f   : > { %v190_v33 = vadd.f32 %v666_v23, %v189_v28  ;;  %v231_v40 = vadd.f32 %v230_v35, %v214_v30 }
  0x21   : > { %v191_v37 = vadd.f32 %v671_v27, %v190_v33  ;;  %v232_v44 = vadd.f32 %v231_v40, %v215_v34 }
  0x23   : > { %v192_v42 = vadd.f32 %v677_v32, %v191_v37  ;;  %v233_v49 = vadd.f32 %v232_v44, %v216_v39 }
  0x25   : > { %v193_v46 = vadd.f32 %v682_v36, %v192_v42  ;;  %v234_v53 = vadd.f32 %v233_v49, %v217_v43 }
  0x27   : > { %v194_v51 = vadd.f32 %v688_v41, %v193_v46  ;;  %v235_v58 = vadd.f32 %v234_v53, %v218_v48 }
  0x29   : > { %v195_v55 = vadd.f32 %v693_v45, %v194_v51  ;;  %v236_v62 = vadd.f32 %v235_v58, %v219_v52 }
  0x2b   : > { %v196_v60 = vadd.f32 %v699_v50, %v195_v55  ;;  %v237_v5 = vadd.f32 %v236_v62, %v220_v57 }
  0x2d   : > { %v197_v0 = vadd.f32 %v704_v54, %v196_v60  ;;  %v238_v11 = vadd.f32 %v237_v5, %v221_v61 }
  0x2f   : > { %v198_v8 = vadd.f32 %v710_v59, %v197_v0  ;;  %v239_v15 = vadd.f32 %v238_v11, %v222_v1 }
  0x31   : > { %v199_v12 = vadd.f32 %v715_v63, %v198_v8  ;;  %v240_v19 = vadd.f32 %v239_v15, %v223_v9 }
  0x33   : > { %v200_v16 = vadd.f32 %v720_v7, %v199_v12  ;;  %v241_v21 = vadd.f32 %v240_v19, %v224_v13 }
  0x35   : > { %v201_v20 = vrot.slane %v200_v16, 4  ;;  %v242_v24 = vadd.f32 %v241_v21, %v225_v17 }
  0x37   : > { %v202_v22 = vadd.f32 %v201_v20, %v200_v16  ;;  %v243_v26 = vrot.slane %v242_v24, 4 }
  0x39   : > { %v203_v25 = vrot.slane %v202_v22, 2  ;;  %v244_v29 = vadd.f32 %v243_v26, %v242_v24 }
  0x3b   : > { %v204_v28 = vadd.f32 %v203_v25, %v202_v22  ;;  %v245_v31 = vrot.slane %v244_v29, 2 }
  0x3d   : > { %v205_v30 = vrot.slane %v204_v28, 1  ;;  %v246_v34 = vadd.f32 %v245_v31, %v244_v29 }
  0x3f   : > { %v206_v33 = vadd.f32 %v205_v30, %v204_v28  ;;  %v247_v37 = vrot.slane %v246_v34, 1 }
  0x41   : > { %v731_v35 = vmul.f32 0.0069444445, %v206_v33  ;;  %v248_v38 = vadd.f32 %v247_v37, %v246_v34 }
  0x43   : > { %v250_v39 = vmul.f32 %v731_v35, %v731_v35  ;;  %v249_v40 = vmul.f32 0.0069444445, %v248_v38  ;;  %v253_v51 = vsub.f32 %v634_v2, %v731_v35  ;;  %v254_v52 = vsub.f32 %v636_v3, %v731_v35 }
  0x44   : > { %v255_v55 = vsub.f32 %v638_v4, %v731_v35  ;;  %v256_v56 = vsub.f32 %v641_v6, %v731_v35  ;;  %v257_v57 = vsub.f32 %v649_v10, %v731_v35  ;;  %v258_v58 = vsub.f32 %v655_v14, %v731_v35 }
  0x45   : > { %v251_v42 = vsub.f32 %v249_v40, %v250_v39  ;;  %v259_v2 = vsub.f32 %v660_v18, %v731_v35  ;;  %v260_v3 = vsub.f32 %v666_v23, %v731_v35  ;;  %v261_v4 = vsub.f32 %v671_v27, %v731_v35 }
  0x46   : > { %v262_v6 = vsub.f32 %v677_v32, %v731_v35  ;;  %v263_v61 = vsub.f32 %v682_v36, %v731_v35  ;;  %v264_v10 = vsub.f32 %v688_v41, %v731_v35  ;;  %v265_v14 = vsub.f32 %v693_v45, %v731_v35 }
  0x47   : > { %v252_v43 = vmax.f32 %v251_v42, 0.0  ;;  %v266_v18 = vsub.f32 %v699_v50, %v731_v35  ;;  %v267_v23 = vsub.f32 %v704_v54, %v731_v35  ;;  %v268_v27 = vsub.f32 %v710_v59, %v731_v35 }
  0x48   : > { %v269_v32 = vsub.f32 %v715_v63, %v731_v35  ;;  %v270_v36 = vsub.f32 %v720_v7, %v731_v35 }
  0x49   : > { %v271_v44 = vadd.f32 1e-05, %v252_v43 }
  0x4b   : > { %568 = vrsqrt.f32 %v271_v44  ;;  %vm278_vm0 = vweird.f32 %v271_v44 }
  0x51   : > { %v569_v46 = vpop.eup %568 }
  0x52   : > { %v273_v47 = vmul.f32 %v569_v46, %v271_v44  ;;  %vm279_vm1 = vweird.f32 %v569_v46 }
  0x53   : > { %vm280_vm2 = vmor %vm278_vm0, %vm279_vm1 }
  0x54   : > { %v274_v48 = vmul.f32 %v569_v46, %v273_v47 }
  0x56   : > { %v275_v49 = vmul.f32 0.5, %v274_v48 }
  0x58   : > { %v276_v53 = vsub.f32 1.5, %v275_v49 }
  0x5a   : > { %v277_v60 = vmul.f32 %v569_v46, %v276_v53 }
  0x5c   : > { %v281_v62 = vsel %vm280_vm2, %v569_v46, %v277_v60 }
  0x5d   : > { %v282_v41 = vmul.f32 %v281_v62, %v253_v51  ;;  %v283_v0 = vmul.f32 %v281_v62, %v254_v52  ;;  %v284_v45 = vmul.f32 %v281_v62, %v255_v55  ;;  %v285_v1 = vmul.f32 %v281_v62, %v256_v56 }
  0x5e   : > { %v286_v5 = vmul.f32 %v281_v62, %v257_v57  ;;  %v287_v50 = vmul.f32 %v281_v62, %v258_v58  ;;  %v288_v8 = vmul.f32 %v281_v62, %v259_v2  ;;  %v289_v9 = vmul.f32 %v281_v62, %v260_v3 }
  0x5f   : > { %v300_v54 = vmax.f32 %v282_v41, 0.0  ;;  %v301_v11 = vmax.f32 %v283_v0, 0.0  ;;  %v302_v12 = vmax.f32 %v284_v45, 0.0  ;;  %v303_v13 = vmax.f32 %v285_v1, 0.0 }
  0x60   : > { %v304_v59 = vmax.f32 %v286_v5, 0.0  ;;  %v305_v63 = vmax.f32 %v287_v50, 0.0  ;;  %v306_v7 = vmax.f32 %v288_v8, 0.0  ;;  %v307_v15 = vmax.f32 %v289_v9, 0.0 }
  0x61   : > { %v485_v16 = vpack.c.bf16 %v301_v11, %v300_v54  ;;  %v490_v17 = vpack.c.bf16 %v303_v13, %v302_v12  ;;  %v290_v19 = vmul.f32 %v281_v62, %v261_v4  ;;  %v291_v20 = vmul.f32 %v281_v62, %v262_v6 }
  0x62   : > { %v495_v21 = vpack.c.bf16 %v305_v63, %v304_v59  ;;  %v500_v22 = vpack.c.bf16 %v307_v15, %v306_v7  ;;  %v292_v24 = vmul.f32 %v281_v62, %v263_v61  ;;  %v293_v25 = vmul.f32 %v281_v62, %v264_v10 }
  0x63   : > { %486 = vst [vmem:[%s776_s16] sm:$0xff] %v485_v16   ;;  %v308_v26 = vmax.f32 %v290_v19, 0.0  ;;  %v309_v28 = vmax.f32 %v291_v20, 0.0  ;;  %v294_v29 = vmul.f32 %v281_v62, %v265_v14  ;;  %v295_v30 = vmul.f32 %v281_v62, %v266_v18 }
  0x64   : > { %535 = vst [vmem:[%s776_s16 + $0x8] sm:$0xff] %v490_v17   ;;  %v310_v31 = vmax.f32 %v292_v24, 0.0  ;;  %v311_v33 = vmax.f32 %v293_v25, 0.0  ;;  %v296_v34 = vmul.f32 %v281_v62, %v267_v23  ;;  %v297_v35 = vmul.f32 %v281_v62, %v268_v27 }
  0x65   : > { %536 = vst [vmem:[%s776_s16 + $0x10] sm:$0xff] %v495_v21   ;;  %v505_v37 = vpack.c.bf16 %v309_v28, %v308_v26  ;;  %v312_v38 = vmax.f32 %v294_v29, 0.0  ;;  %v313_v39 = vmax.f32 %v295_v30, 0.0  ;;  %v298_v40 = vmul.f32 %v281_v62, %v269_v32 }
  0x66   : > { %537 = vst [vmem:[%s776_s16 + $0x18] sm:$0xff] %v500_v22   ;;  %v510_v42 = vpack.c.bf16 %v311_v33, %v310_v31  ;;  %v314_v43 = vmax.f32 %v296_v34, 0.0  ;;  %v315_v44 = vmax.f32 %v297_v35, 0.0  ;;  %v299_v46 = vmul.f32 %v281_v62, %v270_v36 }
  0x67   : > { %538 = vst [vmem:[%s776_s16 + $0x20] sm:$0xff] %v505_v37   ;;  %v515_v47 = vpack.c.bf16 %v313_v39, %v312_v38  ;;  %v316_v48 = vmax.f32 %v298_v40, 0.0 }
  0x68   : > { %539 = vst [vmem:[%s776_s16 + $0x28] sm:$0xff] %v510_v42   ;;  %v520_v49 = vpack.c.bf16 %v315_v44, %v314_v43  ;;  %v317_v51 = vmax.f32 %v299_v46, 0.0 }
  0x69   : > { %540 = vst [vmem:[%s776_s16 + $0x30] sm:$0xff] %v515_v47  }
  0x6a   : > { %541 = vst [vmem:[%s776_s16 + $0x38] sm:$0xff] %v520_v49   ;;  %v525_v52 = vpack.c.bf16 %v317_v51, %v316_v48 }
  0x6c   : > { %542 = vst [vmem:[%s776_s16 + $0x40] sm:$0xff] %v525_v52  }
  0x6d PF: > { %s11_s8 = sadd.s32 1, %s592_s8   ;;  %s798_s6 = smov %s588_s7 }
  0x6e   : > { %p8_p5 = scmp.ge.s32.totalorder %s11_s8, 4   ;;  %s799_s7 = smov %s801_s9 }
  0x70   :  { %10 = sbr.rel (!%p8_p5) target bundleno = 2 (0x2), region = 54 }

// kernel: _lambda_.18
= control target key start
LH: loop header
LB: loop body
LE: loop exit
PB: predicated region body
PF: predicated region fallthrough
CT: control target
= control target key end

     0   :  { %s908_s12 = smov 0   ;;  %s910_s13 = smov 0   ;;  %s1010_s0 = inlined_call_operand.vmem [shape: bf16[80,1152], index: 0, kind: input, shape index: {}]   ;;  %s1011_s1 = inlined_call_operand.vmem [shape: bf16[1152,128], index: 1, kind: input, shape index: {}]   ;;  %s1012_s2 = inlined_call_operand.vmem [shape: f32[1,128], index: 2, kind: input, shape index: {}]   ;;  %s1013_s3 = inlined_call_operand.vmem [shape: bf16[80,128], index: 3, kind: output, shape index: {}]  }
   0x1   :  { %s912_s14 = smov 0   ;;  %s914_s15 = smov 0  }
   0x2   :  { %s916_s16 = smov 0  }
   0x3 LB: > { %s25_s17 = sadd.s32 1, %s881_s15  ;;  %p48_p1 = scmp.ne.s32.totalorder %s873_s13, %s869_s12  ;;  %s885_s16 = sphi %s916_s16, %s13_s16   ;;  %s881_s15 = sphi %s914_s15, %s1017_s15   ;;  %s877_s14 = sphi %s912_s14, %s1016_s14   ;;  %s873_s13 = sphi %s910_s13, %s1015_s13   ;;  %s869_s12 = sphi %s908_s12, %s1014_s12  }
   0x4   : > { %p26_p0 = scmp.ge.s32.totalorder %s25_s17, 9  ;;  %p49_p2 = scmp.eq.s32.totalorder %s885_s16, 0 }
   0x5   : > { %s41_s19 = sadd.s32 1, %s873_s13  ;;  %p674_p5 = scmp.ge.s32.totalorder %s885_s16, 9 }
   0x6   : > { %s1019_s17 = smov (%p26_p0, %s25_s17), 0  ;;  %p50_p3 = por %p49_p2, %p48_p1 }
   0x7   : > { %s37_s18 = ssub.s32 %s881_s15, %s1019_s17  ;;  %162 = sbr.rel (%p674_p5) target bundleno = 27 (0x1b), region = 20 }
   0x8   : > { %p39_p4 = scmp.eq.s32.totalorder %s37_s18, 0 }
   0xa   : > { %s943_s20 = scalar_select %p39_p4, %s873_s13, %s41_s19  }
   0xc   : > { %165 = sbr.rel (!%p50_p3) target bundleno = 27 (0x1b), region = 24  ;;  %s167_s21 = sand.u32 (%p50_p3), 1, %s873_s13  }
   0xd   : > { %s675_s22 = sshll.u32 (%p50_p3), %s881_s15, 2  ;;  %s803_s23 = smul.u32 (%p50_p3), 40, %s167_s21 }
   0xe   : > { %s174_s26 = scalar_lea.vmem (%p50_p3), %s1010_s0, %s675_s22 }
   0xf   : > { %v191_v0 = vld [vmem:[%s174_s26] sm:$0xf] (%p50_p3)  ;;  %v193_v1 = vld [vmem:[%s174_s26 + $0x24] sm:$0xf] (%p50_p3)  ;;  %v195_v2 = vld [vmem:[%s174_s26 + $0x48] sm:$0xf] (%p50_p3) }
  0x10   : > { %s169_s27 = scalar_lea.vmem (%p50_p3), [#allocation3], %s803_s23  ;;  %v197_v3 = vld [vmem:[%s174_s26 + $0x6c] sm:$0xf] (%p50_p3)  ;;  %v199_v4 = vld [vmem:[%s174_s26 + $0x90] sm:$0xf] (%p50_p3) }
  0x11   : > { %192 = vst [vmem:[%s169_s27] sm:$0xf] %v191_v0  ;;  %v201_v5 = vld [vmem:[%s174_s26 + $0xb4] sm:$0xf]  ;;  %v203_v6 = vld [vmem:[%s174_s26 + $0xd8] sm:$0xf] }
  0x12   : > { %194 = vst [vmem:[%s169_s27 + $0x4] sm:$0xf] %v193_v1  ;;  %v205_v7 = vld [vmem:[%s174_s26 + $0xfc] sm:$0xf]  ;;  %v207_v8 = vld [vmem:[%s174_s26 + $0x120] sm:$0xf] }
  0x13   : > { %196 = vst [vmem:[%s169_s27 + $0x8] sm:$0xf] %v195_v2  ;;  %v209_v9 = vld [vmem:[%s174_s26 + $0x144] sm:$0xf] }
  0x14   : > { %198 = vst [vmem:[%s169_s27 + $0xc] sm:$0xf] %v197_v3 }
  0x15   : > { %200 = vst [vmem:[%s169_s27 + $0x10] sm:$0xf] %v199_v4 }
  0x16   : > { %202 = vst [vmem:[%s169_s27 + $0x14] sm:$0xf] %v201_v5 }
  0x17   : > { %204 = vst [vmem:[%s169_s27 + $0x18] sm:$0xf] %v203_v6 }
  0x18   : > { %206 = vst [vmem:[%s169_s27 + $0x1c] sm:$0xf] %v205_v7 }
  0x19   : > { %208 = vst [vmem:[%s169_s27 + $0x20] sm:$0xf] %v207_v8 }
  0x1a   : > { %210 = vst [vmem:[%s169_s27 + $0x24] sm:$0xf] %v209_v9 }
  0x1b PF: > { %p676_p6 = scmp.ge.s32.totalorder %s885_s16, 1  ;;  %p265_p7 = scmp.lt.s32.totalorder %s885_s16, 10 }
  0x1d   : > { %p266_p8 = pnand %p676_p6, %p265_p7 }
  0x1e   : > { %s272_s28 = sand.u32 (!%p266_p8), 1, %s869_s12   ;;  %s677_s29 = sshll.u32 (!%p266_p8), %s877_s14, 4 }
  0x1f   : > { %269 = sbr.rel (%p266_p8) target bundleno = 255 (0xff), region = 69  ;;  %p311_p9 = scmp.lt.s32.totalorder (!%p266_p8), %s677_s29, 143 }
  0x20   : > { %s804_s30 = smul.u32 (!%p266_p8), 40, %s272_s28  ;;  %p679_p10 = scmp.ne.s32.totalorder (!%p266_p8), %s877_s14, 0 }
  0x22   : > { %s960_s8 = scalar_lea.vmem (!%p266_p8), [#allocation3], %s804_s30 }
  0x24   : > { %s1021_s29 = smov (!%p311_p9, %s677_s29), 143  ;;  %334 = sbr.rel (%p679_p10) target bundleno = 52 (0x34), region = 77 }
  0x25   : > { %s678_s4 = sshll.u32 %s1021_s29, 2 }
  0x26   : > { %s958_s7 = scalar_lea.vmem %s1011_s1, %s678_s4 }
  0x29   : > { %v887_v10 = vmov 0.0  }
  0x2a   : > { %335 = vst [vmem:[#allocation2 + $0x30] sm:$0xff] %v887_v10 }
  0x2b   : > { %336 = vst [vmem:[#allocation2] sm:$0xff] %v887_v10 }
  0x2c   : > { %337 = vst [vmem:[#allocation2 + $0x18] sm:$0xff] %v887_v10 }
  0x2d   : > { %338 = vst [vmem:[#allocation2 + $0x10] sm:$0xff] %v887_v10 }
  0x2e   : > { %339 = vst [vmem:[#allocation2 + $0x48] sm:$0xff] %v887_v10 }
  0x2f   : > { %340 = vst [vmem:[#allocation2 + $0x28] sm:$0xff] %v887_v10 }
  0x30   : > { %341 = vst [vmem:[#allocation2 + $0x8] sm:$0xff] %v887_v10 }
  0x31   : > { %342 = vst [vmem:[#allocation2 + $0x20] sm:$0xff] %v887_v10 }
  0x32   : > { %343 = vst [vmem:[#allocation2 + $0x40] sm:$0xff] %v887_v10 }
  0x33   : > { %344 = vst [vmem:[#allocation2 + $0x38] sm:$0xff] %v887_v10 }
  0x34 PF: > { %v749_v11 = vld [vmem:[%s958_s7 + $0x38] sm:$0xff]  ;;  %v748_v12 = vld [vmem:[%s958_s7 + $0x30] sm:$0xff]  ;;  %v747_v13 = vld [vmem:[%s958_s7 + $0x28] sm:$0xff]  ;;  %p732_p11 = scmp.ne.s32.totalorder %s877_s14, 8 }
  0x35   : > { %781 = vmatpush.bf16.msra.mxu3 %v749_v11  ;;  %780 = vmatpush.bf16.msra.mxu2 %v749_v11  ;;  %v746_v14 = vld [vmem:[%s958_s7 + $0x20] sm:$0xff]  ;;  %v745_v15 = vld [vmem:[%s958_s7 + $0x18] sm:$0xff]  ;;  %v744_v16 = vld [vmem:[%s958_s7 + $0x10] sm:$0xff] }
  0x36   : > { %459 = vmatpush.bf16.msra.mxu0 %v749_v11  ;;  %779 = vmatpush.bf16.msra.mxu1 %v749_v11  ;;  %v743_v17 = vld [vmem:[%s958_s7 + $0x8] sm:$0xff]  ;;  %v742_v18 = vld [vmem:[%s958_s7] sm:$0xff]  ;;  %v737_v21 = vld [vmem:[%s960_s8] sm:$0xff] }
  0x37   : > { %v740_v19 = vld [vmem:[%s960_s8 + $0x18] sm:$0xff]  ;;  %v739_v20 = vld [vmem:[%s960_s8 + $0x10] sm:$0xff]  ;;  %v738_v22 = vld [vmem:[%s960_s8 + $0x8] sm:$0xff] }
  0x38   : > { %v741_v23 = vld [vmem:[%s960_s8 + $0x20] sm:$0xff]  ;;  %v351_v30 = vld [vmem:[#allocation2 + $0x8] sm:$0xff]  ;;  %v346_v36 = vld [vmem:[#allocation2] sm:$0xff] }
  0x39   : > { %784 = vmatpush.bf16.msra.mxu3 %v748_v12  ;;  %783 = vmatpush.bf16.msra.mxu2 %v748_v12  ;;  %v345_v24 = vld [vmem:[#allocation2 + $0x30] sm:$0xff]  ;;  %v347_v25 = vld [vmem:[#allocation2 + $0x18] sm:$0xff]  ;;  %v349_v31 = vld [vmem:[#allocation2 + $0x48] sm:$0xff] }
  0x3a   : > { %460 = vmatpush.bf16.msra.mxu0 %v748_v12  ;;  %782 = vmatpush.bf16.msra.mxu1 %v748_v12  ;;  %v348_v37 = vld [vmem:[#allocation2 + $0x10] sm:$0xff]  ;;  %v352_v42 = vld [vmem:[#allocation2 + $0x20] sm:$0xff]  ;;  %v350_v43 = vld [vmem:[#allocation2 + $0x28] sm:$0xff] }
  0x3b   : > { %v353_v48 = vld [vmem:[#allocation2 + $0x40] sm:$0xff]  ;;  %v354_v51 = vld [vmem:[#allocation2 + $0x38] sm:$0xff] }
  0x3d   : > { %787 = vmatpush.bf16.msra.mxu3 %v747_v13  ;;  %786 = vmatpush.bf16.msra.mxu2 %v747_v13 }
  0x3e   : > { %461 = vmatpush.bf16.msra.mxu0 %v747_v13  ;;  %785 = vmatpush.bf16.msra.mxu1 %v747_v13 }
  0x41   : > { %790 = vmatpush.bf16.msra.mxu3 %v746_v14  ;;  %789 = vmatpush.bf16.msra.mxu2 %v746_v14 }
  0x42   : > { %462 = vmatpush.bf16.msra.mxu0 %v746_v14  ;;  %788 = vmatpush.bf16.msra.mxu1 %v746_v14 }
  0x45   : > { %793 = vmatpush.bf16.msra.mxu3 %v745_v15  ;;  %792 = vmatpush.bf16.msra.mxu2 %v745_v15 }
  0x46   : > { %463 = vmatpush.bf16.msra.mxu0 %v745_v15  ;;  %791 = vmatpush.bf16.msra.mxu1 %v745_v15 }
  0x49   : > { %796 = vmatpush.bf16.msra.mxu3 %v744_v16  ;;  %795 = vmatpush.bf16.msra.mxu2 %v744_v16 }
  0x4a   : > { %464 = vmatpush.bf16.msra.mxu0 %v744_v16  ;;  %794 = vmatpush.bf16.msra.mxu1 %v744_v16 }
  0x4d   : > { %799 = vmatpush.bf16.msra.mxu3 %v743_v17  ;;  %798 = vmatpush.bf16.msra.mxu2 %v743_v17 }
  0x4e   : > { %465 = vmatpush.bf16.msra.mxu0 %v743_v17  ;;  %797 = vmatpush.bf16.msra.mxu1 %v743_v17 }
  0x51   : > { %802 = vmatpush.bf16.msra.mxu3 %v742_v18  ;;  %801 = vmatpush.bf16.msra.mxu2 %v742_v18 }
  0x52   : > { %466 = vmatpush.bf16.msra.mxu0 %v742_v18  ;;  %800 = vmatpush.bf16.msra.mxu1 %v742_v18 }
  0x54   : > { %482 = vmatmul.bf16.vlgmr.msra.gmra.mxu3 %v740_v19  ;;  %477 = vmatmul.bf16.vlgmr.msra.gmra.mxu2 %v739_v20 }
  0x55   : > { %467 = vmatmul.bf16.vlgmr.msra.gmra.mxu0 %v737_v21  ;;  %472 = vmatmul.bf16.vlgmr.msra.gmra.mxu1 %v738_v22 }
  0x64   : > { %487 = vmatmul.bf16.gmra.mxu3 %v741_v23 }
  0xd2   : > { %v468_v26 = vpop.f32.mrf.mxu0  ;;  %v473_v27 = vpop.f32.mrf.mxu1 }
  0xd3   : > { %v493_v28 = vadd.f32 %v468_v26, %v345_v24  ;;  %v495_v29 = vadd.f32 %v473_v27, %v347_v25 }
  0xd5   : > { %503 = vst [vmem:[#allocation2 + $0x30] sm:$0xff] %v493_v28 }
  0xd6   : > { %505 = vst [vmem:[#allocation2 + $0x18] sm:$0xff] %v495_v29 }
  0xd7   : > { %v483_v32 = vpop.f32.mrf.mxu3  ;;  %v478_v33 = vpop.f32.mrf.mxu2 }
  0xd8   : > { %v499_v34 = vadd.f32 %v483_v32, %v351_v30  ;;  %v497_v35 = vadd.f32 %v478_v33, %v349_v31 }
  0xda   : > { %509 = vst [vmem:[#allocation2 + $0x8] sm:$0xff] %v499_v34  ;;  %v470_v38 = vpop.f32.mrf.mxu0  ;;  %v475_v39 = vpop.f32.mrf.mxu1 }
  0xdb   : > { %507 = vst [vmem:[#allocation2 + $0x48] sm:$0xff] %v497_v35  ;;  %v494_v40 = vadd.f32 %v470_v38, %v346_v36  ;;  %v496_v41 = vadd.f32 %v475_v39, %v348_v37 }
  0xdd   : > { %504 = vst [vmem:[#allocation2] sm:$0xff] %v494_v40 }
  0xde   : > { %506 = vst [vmem:[#allocation2 + $0x10] sm:$0xff] %v496_v41 }
  0xdf   : > { %v485_v44 = vpop.f32.mrf.mxu3  ;;  %v480_v45 = vpop.f32.mrf.mxu2 }
  0xe0   : > { %v500_v46 = vadd.f32 %v485_v44, %v352_v42  ;;  %v498_v47 = vadd.f32 %v480_v45, %v350_v43 }
  0xe2   : > { %510 = vst [vmem:[#allocation2 + $0x20] sm:$0xff] %v500_v46 }
  0xe3   : > { %508 = vst [vmem:[#allocation2 + $0x28] sm:$0xff] %v498_v47 }
  0xe7   : > { %v488_v49 = vpop.f32.mrf.mxu3 }
  0xe8   : > { %v501_v50 = vadd.f32 %v488_v49, %v353_v48 }
  0xea   : > { %511 = vst [vmem:[#allocation2 + $0x40] sm:$0xff] %v501_v50 }
  0xee   : > { %516 = sbr.rel (%p732_p11) target bundleno = 255 (0xff), region = 81 }
  0xef   : > { %v490_v52 = vpop.f32.mrf.mxu3 }
  0xf0   : > { %v502_v53 = vadd.f32 %v490_v52, %v354_v51 }
  0xf2   : > { %512 = vst [vmem:[#allocation2 + $0x38] sm:$0xff] %v502_v53 }
  0xf3   : > { %v517_v54 = vld [vmem:[#allocation2 + $0x30] sm:$0xff]  ;;  %v518_v55 = vld [vmem:[#allocation2] sm:$0xff]  ;;  %v519_v57 = vld [vmem:[#allocation2 + $0x18] sm:$0xff] }
  0xf4   : > { %v846_v56 = vld [vmem:[%s1012_s2] ss:$0 sm:$0xff]  ;;  %v520_v58 = vld [vmem:[#allocation2 + $0x10] sm:$0xff]  ;;  %v521_v59 = vld [vmem:[#allocation2 + $0x48] sm:$0xff] }
  0xf5   : > { %v522_v60 = vld [vmem:[#allocation2 + $0x28] sm:$0xff]  ;;  %v531_v62 = vadd.f32 %v846_v56, %v517_v54  ;;  %v532_v63 = vadd.f32 %v846_v56, %v518_v55  ;;  %v533_v0 = vadd.f32 %v846_v56, %v519_v57  ;;  %v534_v1 = vadd.f32 %v846_v56, %v520_v58  ;;  %v524_v2 = vld [vmem:[#allocation2 + $0x20] sm:$0xff] }
  0xf6   : > { %v523_v61 = vld [vmem:[#allocation2 + $0x8] sm:$0xff]  ;;  %v525_v3 = vld [vmem:[#allocation2 + $0x40] sm:$0xff]  ;;  %v535_v5 = vadd.f32 %v846_v56, %v521_v59  ;;  %v536_v6 = vadd.f32 %v846_v56, %v522_v60  ;;  %v538_v8 = vadd.f32 %v846_v56, %v524_v2 }
  0xf7   : > { %v537_v7 = vadd.f32 %v846_v56, %v523_v61  ;;  %v753_v9 = vpack.c.bf16 %v532_v63, %v531_v62  ;;  %v758_v10 = vpack.c.bf16 %v534_v1, %v533_v0  ;;  %v539_v11 = vadd.f32 %v846_v56, %v525_v3 }
  0xf8   : > { %v763_v13 = vpack.c.bf16 %v536_v6, %v535_v5 }
  0xf9   : > { %v526_v4 = vld [vmem:[#allocation2 + $0x38] sm:$0xff]  ;;  %v768_v14 = vpack.c.bf16 %v538_v8, %v537_v7  ;;  %754 = vst [vmem:[%s1013_s3] sm:$0xff] %v753_v9  }
  0xfa   : > { %v540_v12 = vadd.f32 %v846_v56, %v526_v4  ;;  %775 = vst [vmem:[%s1013_s3 + $0x8] sm:$0xff] %v758_v10  }
  0xfb   : > { %776 = vst [vmem:[%s1013_s3 + $0x10] sm:$0xff] %v763_v13  }
  0xfc   : > { %v773_v15 = vpack.c.bf16 %v540_v12, %v539_v11  ;;  %777 = vst [vmem:[%s1013_s3 + $0x18] sm:$0xff] %v768_v14  }
  0xfe   : > { %778 = vst [vmem:[%s1013_s3 + $0x20] sm:$0xff] %v773_v15  }
  0xff PF: > { %s13_s16 = sadd.s32 1, %s885_s16   ;;  %s1014_s12 = smov %s873_s13 }
 0x100   : > { %p10_p12 = scmp.ge.s32.totalorder %s13_s16, 11   ;;  %s1015_s13 = smov %s943_s20 }
 0x101   : > { %s1016_s14 = smov %s881_s15  ;;  %s1017_s15 = smov %s1019_s17 }
 0x102   :  { %12 = sbr.rel (!%p10_p12) target bundleno = 3 (0x3), region = 122 }

// kernel: _lambda_.19
= control target key start
LH: loop header
LB: loop body
LE: loop exit
PB: predicated region body
PF: predicated region fallthrough
CT: control target
= control target key end

     0   :  { %s400_s6 = smov 0   ;;  %s402_s7 = smov 0   ;;  %s440_s0 = inlined_call_operand.vmem [shape: bf16[2,36,128], index: 0, kind: input, shape index: {}]   ;;  %s441_s1 = inlined_call_operand.vmem [shape: bf16[2,36,128], index: 1, kind: output, shape index: {}]  }
   0x1   :  { %s404_s8 = smov 0  }
   0x2 LB: > { %s23_s9 = sadd.s32 1, %s384_s7  ;;  %p314_p0 = scmp.ge.s32.totalorder %s388_s8, 1  ;;  %s388_s8 = sphi %s404_s8, %s11_s8   ;;  %s384_s7 = sphi %s402_s7, %s443_s7   ;;  %s380_s6 = sphi %s400_s6, %s442_s6  }
   0x3   : > { %p25_p1 = scmp.ge.s32.totalorder %s23_s9, 2  ;;  %p106_p2 = scmp.lt.s32.totalorder %s388_s8, 3 }
   0x5   : > { %s445_s9 = smov (%p25_p1, %s23_s9), 0  ;;  %p107_p3 = pnand %p314_p0, %p106_p2 }
   0x6   : > { %p132_p4 = scmp.lt.s32.totalorder (!%p107_p3), %s380_s6, 1 }
   0x7   : > { %110 = sbr.rel (%p107_p3) target bundleno = 76 (0x4c), region = 24 }
   0xc   : > { %s447_s6 = smov (!%p132_p4, %s380_s6), 1  ;;  %vm161_vm0 = vcmask 1043456  }
   0xd   : > { %s339_s10 = smul.u32 20, %s447_s6 }
   0xf   : > { %s139_s13 = scalar_lea.vmem %s440_s0, %s339_s10  ;;  %s147_s16 = scalar_lea.vmem %s441_s1, %s339_s10 }
  0x10   : > { %v320_v0 = vld [vmem:[%s139_s13] sm:$0xff]   ;;  %v337_v1 = vld [vmem:[%s139_s13 + $0x8] sm:$0xff]   ;;  %v152_v2 = vld [vmem:[%s139_s13 + $0x10] sm:$0x3] }
  0x11   : > { %v321_v3 = vunpack.c.l.bf16 %v320_v0  ;;  %v322_v4 = vunpack.c.h.bf16 %v320_v0  ;;  %v325_v5 = vunpack.c.l.bf16 %v337_v1  ;;  %v326_v6 = vunpack.c.h.bf16 %v337_v1 }
  0x12   : > { %v157_v7 = vunpack.c.l.bf16 %v152_v2 }
  0x13   : > { %v158_v8 = vadd.f32 %v322_v4, %v321_v3  ;;  %v171_v9 = vmul.f32 %v321_v3, %v321_v3  ;;  %v172_v10 = vmul.f32 %v322_v4, %v322_v4  ;;  %v173_v11 = vmul.f32 %v325_v5, %v325_v5 }
  0x14   : > { %v175_v12 = vmul.f32 %v157_v7, %v157_v7  ;;  %v174_v14 = vmul.f32 %v326_v6, %v326_v6  ;;  %v162_v16 = vsel %vm161_vm0, %v157_v7, 0.0 }
  0x15   : > { %v159_v13 = vadd.f32 %v325_v5, %v158_v8  ;;  %v176_v15 = vadd.f32 %v172_v10, %v171_v9 }
  0x16   : > { %v179_v19 = vsel %vm161_vm0, %v175_v12, 0.0 }
  0x17   : > { %v160_v17 = vadd.f32 %v326_v6, %v159_v13  ;;  %v177_v18 = vadd.f32 %v176_v15, %v173_v11 }
  0x19   : > { %v163_v20 = vadd.f32 %v162_v16, %v160_v17  ;;  %v178_v21 = vadd.f32 %v177_v18, %v174_v14 }
  0x1b   : > { %v164_v22 = vrot.slane %v163_v20, 4  ;;  %v180_v23 = vadd.f32 %v179_v19, %v178_v21 }
  0x1d   : > { %v165_v24 = vadd.f32 %v164_v22, %v163_v20  ;;  %v181_v25 = vrot.slane %v180_v23, 4 }
  0x1f   : > { %v166_v26 = vrot.slane %v165_v24, 2  ;;  %v182_v27 = vadd.f32 %v181_v25, %v180_v23 }
  0x21   : > { %v167_v28 = vadd.f32 %v166_v26, %v165_v24  ;;  %v183_v29 = vrot.slane %v182_v27, 2 }
  0x23   : > { %v168_v30 = vrot.slane %v167_v28, 1  ;;  %v184_v31 = vadd.f32 %v183_v29, %v182_v27 }
  0x25   : > { %v169_v32 = vadd.f32 %v168_v30, %v167_v28  ;;  %v185_v33 = vrot.slane %v184_v31, 1 }
  0x27   : > { %v170_v34 = vmul.f32 0.027777778, %v169_v32  ;;  %v186_v35 = vadd.f32 %v185_v33, %v184_v31 }
  0x29   : > { %v187_v36 = vmul.f32 0.027777778, %v186_v35  ;;  %v188_v37 = vmul.f32 %v170_v34, %v170_v34  ;;  %v191_v46 = vsub.f32 %v321_v3, %v170_v34  ;;  %v192_v47 = vsub.f32 %v322_v4, %v170_v34 }
  0x2a   : > { %v193_v48 = vsub.f32 %v325_v5, %v170_v34  ;;  %v194_v49 = vsub.f32 %v326_v6, %v170_v34  ;;  %v195_v51 = vsub.f32 %v157_v7, %v170_v34 }
  0x2b   : > { %v189_v38 = vsub.f32 %v187_v36, %v188_v37 }
  0x2d   : > { %v190_v39 = vmax.f32 %v189_v38, 0.0 }
  0x2f   : > { %v196_v40 = vadd.f32 1e-05, %v190_v39 }
  0x31   : > { %364 = vrsqrt.f32 %v196_v40  ;;  %vm203_vm1 = vweird.f32 %v196_v40 }
  0x37   : > { %v365_v41 = vpop.eup %364 }
  0x38   : > { %v198_v42 = vmul.f32 %v365_v41, %v196_v40  ;;  %vm204_vm2 = vweird.f32 %v365_v41 }
  0x39   : > { %vm205_vm3 = vmor %vm203_vm1, %vm204_vm2 }
  0x3a   : > { %v199_v43 = vmul.f32 %v365_v41, %v198_v42 }
  0x3c   : > { %v200_v44 = vmul.f32 0.5, %v199_v43 }
  0x3e   : > { %v201_v45 = vsub.f32 1.5, %v200_v44 }
  0x40   : > { %v202_v50 = vmul.f32 %v365_v41, %v201_v45 }
  0x42   : > { %v206_v52 = vsel %vm205_vm3, %v365_v41, %v202_v50 }
  0x43   : > { %v207_v53 = vmul.f32 %v206_v52, %v191_v46  ;;  %v208_v54 = vmul.f32 %v206_v52, %v192_v47  ;;  %v209_v55 = vmul.f32 %v206_v52, %v193_v48  ;;  %v210_v56 = vmul.f32 %v206_v52, %v194_v49 }
  0x44   : > { %v211_v57 = vmul.f32 %v206_v52, %v195_v51 }
  0x45   : > { %v212_v58 = vmax.f32 %v207_v53, 0.0  ;;  %v213_v59 = vmax.f32 %v208_v54, 0.0  ;;  %v214_v60 = vmax.f32 %v209_v55, 0.0  ;;  %v215_v61 = vmax.f32 %v210_v56, 0.0 }
  0x46   : > { %v216_v62 = vmax.f32 %v211_v57, 0.0 }
  0x47   : > { %v330_v63 = vpack.c.bf16 %v213_v59, %v212_v58  ;;  %v335_v0 = vpack.c.bf16 %v215_v61, %v214_v60 }
  0x48   : > { %v221_v1 = vpack.c.bf16 %v216_v62, %v216_v62 }
  0x49   : > { %331 = vst [vmem:[%s147_s16] sm:$0xff] %v330_v63  }
  0x4a   : > { %338 = vst [vmem:[%s147_s16 + $0x8] sm:$0xff] %v335_v0  }
  0x4b   : > { %226 = vst [vmem:[%s147_s16 + $0x10] sm:$0x3] %v221_v1 }
  0x4c PF: > { %s11_s8 = sadd.s32 1, %s388_s8   ;;  %s442_s6 = smov %s384_s7 }
  0x4d   : > { %p8_p5 = scmp.ge.s32.totalorder %s11_s8, 4   ;;  %s443_s7 = smov %s445_s9 }
  0x4f   :  { %10 = sbr.rel (!%p8_p5) target bundleno = 2 (0x2), region = 54 }

// kernel: _lambda_.20
= control target key start
LH: loop header
LB: loop body
LE: loop exit
PB: predicated region body
PF: predicated region fallthrough
CT: control target
= control target key end

     0   :  { %s748_s12 = smov 0   ;;  %s750_s13 = smov 0   ;;  %s841_s0 = inlined_call_operand.vmem [shape: bf16[32,1152], index: 0, kind: input, shape index: {}]   ;;  %s842_s1 = inlined_call_operand.vmem [shape: bf16[1152,128], index: 1, kind: input, shape index: {}]   ;;  %s843_s2 = inlined_call_operand.vmem [shape: f32[1,128], index: 2, kind: input, shape index: {}]   ;;  %s844_s3 = inlined_call_operand.vmem [shape: bf16[32,128], index: 3, kind: output, shape index: {}]  }
   0x1   :  { %s752_s14 = smov 0   ;;  %s754_s15 = smov 0  }
   0x2   :  { %s756_s16 = smov 0  }
   0x3 LB: > { %s25_s17 = sadd.s32 1, %s721_s15  ;;  %p48_p1 = scmp.ne.s32.totalorder %s713_s13, %s709_s12  ;;  %s725_s16 = sphi %s756_s16, %s13_s16   ;;  %s721_s15 = sphi %s754_s15, %s848_s15   ;;  %s717_s14 = sphi %s752_s14, %s847_s14   ;;  %s713_s13 = sphi %s750_s13, %s846_s13   ;;  %s709_s12 = sphi %s748_s12, %s845_s12  }
   0x4   : > { %p26_p0 = scmp.ge.s32.totalorder %s25_s17, 9  ;;  %p49_p2 = scmp.eq.s32.totalorder %s725_s16, 0 }
   0x5   : > { %s41_s19 = sadd.s32 1, %s713_s13  ;;  %p563_p5 = scmp.ge.s32.totalorder %s725_s16, 9 }
   0x6   : > { %s850_s17 = smov (%p26_p0, %s25_s17), 0  ;;  %p50_p3 = por %p49_p2, %p48_p1 }
   0x7   : > { %s37_s18 = ssub.s32 %s721_s15, %s850_s17  ;;  %162 = sbr.rel (%p563_p5) target bundleno = 20 (0x14), region = 20 }
   0x8   : > { %p39_p4 = scmp.eq.s32.totalorder %s37_s18, 0 }
   0xa   : > { %s783_s20 = scalar_select %p39_p4, %s713_s13, %s41_s19  }
   0xc   : > { %165 = sbr.rel (!%p50_p3) target bundleno = 20 (0x14), region = 24  ;;  %s167_s21 = sand.u32 (%p50_p3), 1, %s713_s13  }
   0xd   : > { %s565_s22 = sshll.u32 (%p50_p3), %s721_s15, 2  ;;  %s564_s23 = sshll.u32 (%p50_p3), %s167_s21, 4 }
   0xe   : > { %s174_s26 = scalar_lea.vmem (%p50_p3), %s841_s0, %s565_s22  ;;  %s169_s27 = scalar_lea.vmem (%p50_p3), [#allocation3], %s564_s23 }
   0xf   : > { %v191_v0 = vld [vmem:[%s174_s26] sm:$0xf] (%p50_p3)  ;;  %v193_v1 = vld [vmem:[%s174_s26 + $0x24] sm:$0xf] (%p50_p3)  ;;  %v195_v2 = vld [vmem:[%s174_s26 + $0x48] sm:$0xf] (%p50_p3) }
  0x10   : > { %192 = vst [vmem:[%s169_s27] sm:$0xf] (%p50_p3), %v191_v0  ;;  %v197_v3 = vld [vmem:[%s174_s26 + $0x6c] sm:$0xf] (%p50_p3) }
  0x11   : > { %194 = vst [vmem:[%s169_s27 + $0x4] sm:$0xf] %v193_v1 }
  0x12   : > { %196 = vst [vmem:[%s169_s27 + $0x8] sm:$0xf] %v195_v2 }
  0x13   : > { %198 = vst [vmem:[%s169_s27 + $0xc] sm:$0xf] %v197_v3 }
  0x14 PF: > { %p566_p6 = scmp.ge.s32.totalorder %s725_s16, 1  ;;  %p241_p7 = scmp.lt.s32.totalorder %s725_s16, 10 }
  0x16   : > { %p242_p8 = pnand %p566_p6, %p241_p7 }
  0x17   : > { %s248_s28 = sand.u32 (!%p242_p8), 1, %s709_s12   ;;  %s568_s29 = sshll.u32 (!%p242_p8), %s717_s14, 4 }
  0x18   : > { %245 = sbr.rel (%p242_p8) target bundleno = 221 (0xdd), region = 69  ;;  %s795_s30 = sshll.u32 (!%p242_p8), %s248_s28, 4 }
  0x19   : > { %p287_p9 = scmp.lt.s32.totalorder (!%p242_p8), %s568_s29, 143  ;;  %s250_s8 = scalar_lea.vmem (!%p242_p8), [#allocation3], %s795_s30 }
  0x1a   : > { %p570_p10 = scmp.ne.s32.totalorder (!%p242_p8), %s717_s14, 0 }
  0x1d   : > { %s852_s29 = smov (!%p287_p9, %s568_s29), 143  ;;  %310 = sbr.rel (%p570_p10) target bundleno = 39 (0x27), region = 77 }
  0x1e   : > { %s569_s4 = sshll.u32 %s852_s29, 2 }
  0x1f   : > { %s800_s7 = scalar_lea.vmem %s842_s1, %s569_s4 }
  0x22   : > { %v727_v4 = vmov 0.0  }
  0x23   : > { %311 = vst [vmem:[#allocation2 + $0x10] sm:$0xff] %v727_v4 }
  0x24   : > { %312 = vst [vmem:[#allocation2] sm:$0xff] %v727_v4 }
  0x25   : > { %313 = vst [vmem:[#allocation2 + $0x18] sm:$0xff] %v727_v4 }
  0x26   : > { %314 = vst [vmem:[#allocation2 + $0x8] sm:$0xff] %v727_v4 }
  0x27 PF: > { %v625_v5 = vld [vmem:[%s800_s7 + $0x38] sm:$0xff]  ;;  %v624_v6 = vld [vmem:[%s800_s7 + $0x30] sm:$0xff]  ;;  %v623_v7 = vld [vmem:[%s800_s7 + $0x28] sm:$0xff]  ;;  %p611_p11 = scmp.ne.s32.totalorder %s717_s14, 8 }
  0x28   : > { %399 = vmatpush.bf16.msra.mxu0 %v625_v5  ;;  %637 = vmatpush.bf16.msra.mxu1 %v625_v5  ;;  %v622_v8 = vld [vmem:[%s800_s7 + $0x20] sm:$0xff]  ;;  %v621_v9 = vld [vmem:[%s800_s7 + $0x18] sm:$0xff]  ;;  %v620_v10 = vld [vmem:[%s800_s7 + $0x10] sm:$0xff] }
  0x29   : > { %v619_v11 = vld [vmem:[%s800_s7 + $0x8] sm:$0xff]  ;;  %v618_v12 = vld [vmem:[%s800_s7] sm:$0xff] }
  0x2a   : > { %v616_v13 = vld [vmem:[%s250_s8] sm:$0xff]  ;;  %v617_v14 = vld [vmem:[%s250_s8 + $0x8] sm:$0xff] }
  0x2b   : > { %v315_v15 = vld [vmem:[#allocation2 + $0x10] sm:$0xff]  ;;  %v316_v21 = vld [vmem:[#allocation2] sm:$0xff] }
  0x2c   : > { %400 = vmatpush.bf16.msra.mxu0 %v624_v6  ;;  %638 = vmatpush.bf16.msra.mxu1 %v624_v6  ;;  %v317_v16 = vld [vmem:[#allocation2 + $0x18] sm:$0xff] }
  0x2d   : > { %v318_v22 = vld [vmem:[#allocation2 + $0x8] sm:$0xff] }
  0x30   : > { %401 = vmatpush.bf16.msra.mxu0 %v623_v7  ;;  %639 = vmatpush.bf16.msra.mxu1 %v623_v7 }
  0x34   : > { %402 = vmatpush.bf16.msra.mxu0 %v622_v8  ;;  %640 = vmatpush.bf16.msra.mxu1 %v622_v8 }
  0x38   : > { %403 = vmatpush.bf16.msra.mxu0 %v621_v9  ;;  %641 = vmatpush.bf16.msra.mxu1 %v621_v9 }
  0x3c   : > { %404 = vmatpush.bf16.msra.mxu0 %v620_v10  ;;  %642 = vmatpush.bf16.msra.mxu1 %v620_v10 }
  0x40   : > { %405 = vmatpush.bf16.msra.mxu0 %v619_v11  ;;  %643 = vmatpush.bf16.msra.mxu1 %v619_v11 }
  0x44   : > { %406 = vmatpush.bf16.msra.mxu0 %v618_v12  ;;  %644 = vmatpush.bf16.msra.mxu1 %v618_v12 }
  0x47   : > { %407 = vmatmul.bf16.vlgmr.msra.gmra.mxu0 %v616_v13  ;;  %412 = vmatmul.bf16.vlgmr.msra.gmra.mxu1 %v617_v14 }
  0xc4   : > { %v408_v17 = vpop.f32.mrf.mxu0  ;;  %v413_v18 = vpop.f32.mrf.mxu1 }
  0xc5   : > { %v418_v19 = vadd.f32 %v408_v17, %v315_v15  ;;  %v420_v20 = vadd.f32 %v413_v18, %v317_v16 }
  0xc7   : > { %422 = vst [vmem:[#allocation2 + $0x10] sm:$0xff] %v418_v19 }
  0xc8   : > { %424 = vst [vmem:[#allocation2 + $0x18] sm:$0xff] %v420_v20 }
  0xcc   : > { %v410_v23 = vpop.f32.mrf.mxu0  ;;  %v415_v24 = vpop.f32.mrf.mxu1  ;;  %429 = sbr.rel (%p611_p11) target bundleno = 221 (0xdd), region = 81 }
  0xcd   : > { %v419_v25 = vadd.f32 %v410_v23, %v316_v21  ;;  %v421_v26 = vadd.f32 %v415_v24, %v318_v22 }
  0xcf   : > { %423 = vst [vmem:[#allocation2] sm:$0xff] %v419_v25 }
  0xd0   : > { %425 = vst [vmem:[#allocation2 + $0x8] sm:$0xff] %v421_v26 }
  0xd1   : > { %v430_v27 = vld [vmem:[#allocation2 + $0x10] sm:$0xff]  ;;  %v686_v29 = vld [vmem:[%s843_s2] ss:$0 sm:$0xff]  ;;  %v432_v30 = vld [vmem:[#allocation2 + $0x18] sm:$0xff] }
  0xd2   : > { %v438_v32 = vadd.f32 %v686_v29, %v430_v27  ;;  %v440_v34 = vadd.f32 %v686_v29, %v432_v30 }
  0xd6   : > { %v431_v28 = vld [vmem:[#allocation2] sm:$0xff] }
  0xd7   : > { %v433_v31 = vld [vmem:[#allocation2 + $0x8] sm:$0xff]  ;;  %v439_v33 = vadd.f32 %v686_v29, %v431_v28 }
  0xd8   : > { %v441_v35 = vadd.f32 %v686_v29, %v433_v31 }
  0xd9   : > { %v629_v36 = vpack.c.bf16 %v439_v33, %v438_v32 }
  0xda   : > { %v634_v37 = vpack.c.bf16 %v441_v35, %v440_v34 }
  0xdb   : > { %630 = vst [vmem:[%s844_s3] sm:$0xff] %v629_v36  }
  0xdc   : > { %636 = vst [vmem:[%s844_s3 + $0x8] sm:$0xff] %v634_v37  }
  0xdd PF: > { %s13_s16 = sadd.s32 1, %s725_s16   ;;  %s845_s12 = smov %s713_s13 }
  0xde   : > { %p10_p12 = scmp.ge.s32.totalorder %s13_s16, 11   ;;  %s846_s13 = smov %s783_s20 }
  0xdf   : > { %s847_s14 = smov %s721_s15  ;;  %s848_s15 = smov %s850_s17 }
  0xe0   :  { %12 = sbr.rel (!%p10_p12) target bundleno = 3 (0x3), region = 122 }

// kernel: _lambda_.21
= control target key start
LH: loop header
LB: loop body
LE: loop exit
PB: predicated region body
PF: predicated region fallthrough
CT: control target
= control target key end

     0   :  { %s358_s6 = smov 0   ;;  %s360_s7 = smov 0   ;;  %s401_s0 = inlined_call_operand.vmem [shape: bf16[2,9,128], index: 0, kind: input, shape index: {}]   ;;  %s402_s1 = inlined_call_operand.vmem [shape: bf16[2,9,128], index: 1, kind: output, shape index: {}]  }
   0x1   :  { %s362_s8 = smov 0  }
   0x2 LB: > { %s23_s9 = sadd.s32 1, %s342_s7  ;;  %p289_p0 = scmp.ge.s32.totalorder %s346_s8, 1  ;;  %s346_s8 = sphi %s362_s8, %s11_s8   ;;  %s342_s7 = sphi %s360_s7, %s404_s7   ;;  %s338_s6 = sphi %s358_s6, %s403_s6  }
   0x3   : > { %p25_p1 = scmp.ge.s32.totalorder %s23_s9, 2  ;;  %p106_p2 = scmp.lt.s32.totalorder %s346_s8, 3 }
   0x5   : > { %s406_s9 = smov (%p25_p1, %s23_s9), 0  ;;  %p107_p3 = pnand %p289_p0, %p106_p2 }
   0x6   : > { %p132_p4 = scmp.lt.s32.totalorder (!%p107_p3), %s338_s6, 1 }
   0x7   : > { %110 = sbr.rel (%p107_p3) target bundleno = 69 (0x45), region = 24 }
   0xc   : > { %s408_s6 = smov (!%p132_p4, %s338_s6), 1  ;;  %vm152_vm0 = vcmask 1040384   ;;  %vm197_vm4 = vsmask.f32 256 }
   0xd   : > { %s296_s10 = sshll.u32 %s408_s6, 3  ;;  %vm198_vm5 = vmand %vm152_vm0, %vm197_vm4 }
   0xe   : > { %s139_s13 = scalar_lea.vmem %s401_s0, %s296_s10  ;;  %s147_s16 = scalar_lea.vmem %s402_s1, %s296_s10 }
   0xf   : > { %v148_v0 = vld [vmem:[%s139_s13] sm:$0xf]  ;;  %v149_v1 = vld [vmem:[%s139_s13 + $0x4] sm:$0x1] }
  0x10   : > { %v150_v2 = vunpack.c.l.bf16 %v148_v0  ;;  %v151_v3 = vunpack.c.l.bf16 %v149_v1  ;;  %v199_v41 = vld [vmem:[%s147_s16 + $0x4] sm:$0x1] }
  0x12   : > { %v153_v4 = vsel %vm152_vm0, %v151_v3, 0.0  ;;  %v162_v5 = vmul.f32 %v150_v2, %v150_v2  ;;  %v163_v6 = vmul.f32 %v151_v3, %v151_v3 }
  0x13   : > { %v154_v7 = vadd.f32 %v153_v4, %v150_v2 }
  0x14   : > { %v164_v8 = vsel %vm152_vm0, %v163_v6, 0.0 }
  0x15   : > { %v155_v9 = vrot.slane %v154_v7, 4  ;;  %v165_v10 = vadd.f32 %v164_v8, %v162_v5 }
  0x17   : > { %v156_v11 = vadd.f32 %v155_v9, %v154_v7  ;;  %v166_v12 = vrot.slane %v165_v10, 4 }
  0x19   : > { %v157_v13 = vrot.slane %v156_v11, 2  ;;  %v167_v14 = vadd.f32 %v166_v12, %v165_v10 }
  0x1b   : > { %v158_v15 = vadd.f32 %v157_v13, %v156_v11  ;;  %v168_v16 = vrot.slane %v167_v14, 2 }
  0x1d   : > { %v159_v17 = vrot.slane %v158_v15, 1  ;;  %v169_v18 = vadd.f32 %v168_v16, %v167_v14 }
  0x1f   : > { %v160_v19 = vadd.f32 %v159_v17, %v158_v15  ;;  %v170_v20 = vrot.slane %v169_v18, 1 }
  0x21   : > { %v161_v21 = vmul.f32 0.11111111, %v160_v19  ;;  %v171_v22 = vadd.f32 %v170_v20, %v169_v18 }
  0x23   : > { %v172_v23 = vmul.f32 0.11111111, %v171_v22  ;;  %v173_v24 = vmul.f32 %v161_v21, %v161_v21  ;;  %v176_v33 = vsub.f32 %v150_v2, %v161_v21  ;;  %v177_v34 = vsub.f32 %v151_v3, %v161_v21 }
  0x25   : > { %v174_v25 = vsub.f32 %v172_v23, %v173_v24 }
  0x27   : > { %v175_v26 = vmax.f32 %v174_v25, 0.0 }
  0x29   : > { %v178_v27 = vadd.f32 1e-05, %v175_v26 }
  0x2b   : > { %322 = vrsqrt.f32 %v178_v27  ;;  %vm185_vm1 = vweird.f32 %v178_v27 }
  0x31   : > { %v323_v28 = vpop.eup %322 }
  0x32   : > { %v180_v29 = vmul.f32 %v323_v28, %v178_v27  ;;  %vm186_vm2 = vweird.f32 %v323_v28 }
  0x33   : > { %vm187_vm3 = vmor %vm185_vm1, %vm186_vm2 }
  0x34   : > { %v181_v30 = vmul.f32 %v323_v28, %v180_v29 }
  0x36   : > { %v182_v31 = vmul.f32 0.5, %v181_v30 }
  0x38   : > { %v183_v32 = vsub.f32 1.5, %v182_v31 }
  0x3a   : > { %v184_v35 = vmul.f32 %v323_v28, %v183_v32 }
  0x3c   : > { %v188_v36 = vsel %vm187_vm3, %v323_v28, %v184_v35 }
  0x3d   : > { %v189_v37 = vmul.f32 %v188_v36, %v176_v33  ;;  %v190_v38 = vmul.f32 %v188_v36, %v177_v34 }
  0x3f   : > { %v191_v39 = vmax.f32 %v189_v37, 0.0  ;;  %v192_v40 = vmax.f32 %v190_v38, 0.0 }
  0x41   : > { %v193_v42 = vpack.c.bf16 %v191_v39, %v191_v39  ;;  %v194_v43 = vpack.c.bf16 %v192_v40, %v192_v40 }
  0x43   : > { %195 = vst [vmem:[%s147_s16] sm:$0xf] %v193_v42  ;;  %v200_v44 = vsel %vm198_vm5, %v194_v43, %v199_v41 }
  0x44   : > { %201 = vst [vmem:[%s147_s16 + $0x4] sm:$0x1] %v200_v44 }
  0x45 PF: > { %s11_s8 = sadd.s32 1, %s346_s8   ;;  %s403_s6 = smov %s342_s7 }
  0x46   : > { %p8_p5 = scmp.ge.s32.totalorder %s11_s8, 4   ;;  %s404_s7 = smov %s406_s9 }
  0x48   :  { %10 = sbr.rel (!%p8_p5) target bundleno = 2 (0x2), region = 54 }

// kernel: _lambda_.23
= control target key start
LH: loop header
LB: loop body
LE: loop exit
PB: predicated region body
PF: predicated region fallthrough
CT: control target
= control target key end

     0   :  { %s448_s9 = smov 0   ;;  %s450_s10 = smov 0   ;;  %s492_s0 = inlined_call_operand.vmem [shape: bf16[2,9,128], index: 0, kind: input, shape index: {}]   ;;  %s493_s1 = inlined_call_operand.vmem [shape: bf16[2,9,128], index: 1, kind: input, shape index: {}]   ;;  %s494_s2 = inlined_call_operand.vmem [shape: bf16[2,9,128], index: 2, kind: output, shape index: {}]  }
   0x1   :  { %s452_s11 = smov 0  }
   0x2 LB: > { %s24_s12 = sadd.s32 1, %s427_s10  ;;  %p371_p0 = scmp.ge.s32.totalorder %s431_s11, 1  ;;  %s431_s11 = sphi %s452_s11, %s12_s11   ;;  %s427_s10 = sphi %s450_s10, %s496_s10   ;;  %s423_s9 = sphi %s448_s9, %s495_s9  }
   0x3   : > { %p26_p1 = scmp.ge.s32.totalorder %s24_s12, 2  ;;  %p146_p2 = scmp.lt.s32.totalorder %s431_s11, 3 }
   0x5   : > { %s498_s12 = smov (%p26_p1, %s24_s12), 0  ;;  %p147_p3 = pnand %p371_p0, %p146_p2 }
   0x6   : > { %p182_p4 = scmp.lt.s32.totalorder (!%p147_p3), %s423_s9, 1 }
   0x7   : > { %150 = sbr.rel (%p147_p3) target bundleno = 71 (0x47), region = 28 }
   0xc   : > { %s500_s9 = smov (!%p182_p4, %s423_s9), 1  ;;  %vm210_vm0 = vcmask 1040384   ;;  %vm261_vm4 = vsmask.f32 256 }
   0xd   : > { %s466_s13 = sshll.u32 %s500_s9, 3  ;;  %vm262_vm5 = vmand %vm210_vm0, %vm261_vm4 }
   0xe   : > { %s189_s16 = scalar_lea.vmem %s492_s0, %s466_s13  ;;  %s197_s19 = scalar_lea.vmem %s493_s1, %s466_s13 }
   0xf   : > { %v206_v0 = vld [vmem:[%s189_s16] sm:$0xf]  ;;  %v207_v1 = vld [vmem:[%s189_s16 + $0x4] sm:$0x1]  ;;  %s205_s22 = scalar_lea.vmem %s494_s2, %s466_s13 }
  0x10   : > { %v208_v2 = vunpack.c.l.bf16 %v206_v0  ;;  %v209_v3 = vunpack.c.l.bf16 %v207_v1  ;;  %v251_v36 = vld [vmem:[%s197_s19] sm:$0xf]  ;;  %v252_v37 = vld [vmem:[%s197_s19 + $0x4] sm:$0x1] }
  0x11   : > { %v253_v41 = vunpack.c.l.bf16 %v251_v36  ;;  %v254_v42 = vunpack.c.l.bf16 %v252_v37  ;;  %v263_v47 = vld [vmem:[%s205_s22 + $0x4] sm:$0x1] }
  0x12   : > { %v211_v4 = vsel %vm210_vm0, %v209_v3, 0.0  ;;  %v220_v5 = vmul.f32 %v208_v2, %v208_v2  ;;  %v221_v6 = vmul.f32 %v209_v3, %v209_v3 }
  0x13   : > { %v212_v7 = vadd.f32 %v211_v4, %v208_v2 }
  0x14   : > { %v222_v8 = vsel %vm210_vm0, %v221_v6, 0.0 }
  0x15   : > { %v213_v9 = vrot.slane %v212_v7, 4  ;;  %v223_v10 = vadd.f32 %v222_v8, %v220_v5 }
  0x17   : > { %v214_v11 = vadd.f32 %v213_v9, %v212_v7  ;;  %v224_v12 = vrot.slane %v223_v10, 4 }
  0x19   : > { %v215_v13 = vrot.slane %v214_v11, 2  ;;  %v225_v14 = vadd.f32 %v224_v12, %v223_v10 }
  0x1b   : > { %v216_v15 = vadd.f32 %v215_v13, %v214_v11  ;;  %v226_v16 = vrot.slane %v225_v14, 2 }
  0x1d   : > { %v217_v17 = vrot.slane %v216_v15, 1  ;;  %v227_v18 = vadd.f32 %v226_v16, %v225_v14 }
  0x1f   : > { %v218_v19 = vadd.f32 %v217_v17, %v216_v15  ;;  %v228_v20 = vrot.slane %v227_v18, 1 }
  0x21   : > { %v219_v21 = vmul.f32 0.11111111, %v218_v19  ;;  %v229_v22 = vadd.f32 %v228_v20, %v227_v18 }
  0x23   : > { %v230_v23 = vmul.f32 0.11111111, %v229_v22  ;;  %v231_v24 = vmul.f32 %v219_v21, %v219_v21  ;;  %v234_v33 = vsub.f32 %v208_v2, %v219_v21  ;;  %v235_v34 = vsub.f32 %v209_v3, %v219_v21 }
  0x25   : > { %v232_v25 = vsub.f32 %v230_v23, %v231_v24 }
  0x27   : > { %v233_v26 = vmax.f32 %v232_v25, 0.0 }
  0x29   : > { %v236_v27 = vadd.f32 1e-05, %v233_v26 }
  0x2b   : > { %407 = vrsqrt.f32 %v236_v27  ;;  %vm243_vm1 = vweird.f32 %v236_v27 }
  0x31   : > { %v408_v28 = vpop.eup %407 }
  0x32   : > { %v238_v29 = vmul.f32 %v408_v28, %v236_v27  ;;  %vm244_vm2 = vweird.f32 %v408_v28 }
  0x33   : > { %vm245_vm3 = vmor %vm243_vm1, %vm244_vm2 }
  0x34   : > { %v239_v30 = vmul.f32 %v408_v28, %v238_v29 }
  0x36   : > { %v240_v31 = vmul.f32 0.5, %v239_v30 }
  0x38   : > { %v241_v32 = vsub.f32 1.5, %v240_v31 }
  0x3a   : > { %v242_v35 = vmul.f32 %v408_v28, %v241_v32 }
  0x3c   : > { %v246_v38 = vsel %vm245_vm3, %v408_v28, %v242_v35 }
  0x3d   : > { %v247_v39 = vmul.f32 %v246_v38, %v234_v33  ;;  %v248_v40 = vmul.f32 %v246_v38, %v235_v34 }
  0x3f   : > { %v249_v43 = vmax.f32 %v247_v39, 0.0  ;;  %v250_v44 = vmax.f32 %v248_v40, 0.0 }
  0x41   : > { %v255_v45 = vadd.f32 %v253_v41, %v249_v43  ;;  %v256_v46 = vadd.f32 %v254_v42, %v250_v44 }
  0x43   : > { %v257_v48 = vpack.c.bf16 %v255_v45, %v255_v45  ;;  %v258_v49 = vpack.c.bf16 %v256_v46, %v256_v46 }
  0x45   : > { %259 = vst [vmem:[%s205_s22] sm:$0xf] %v257_v48  ;;  %v264_v50 = vsel %vm262_vm5, %v258_v49, %v263_v47 }
  0x46   : > { %265 = vst [vmem:[%s205_s22 + $0x4] sm:$0x1] %v264_v50 }
  0x47 PF: > { %s12_s11 = sadd.s32 1, %s431_s11   ;;  %s495_s9 = smov %s427_s10 }
  0x48   : > { %p9_p5 = scmp.ge.s32.totalorder %s12_s11, 4   ;;  %s496_s10 = smov %s498_s12 }
  0x4a   :  { %11 = sbr.rel (!%p9_p5) target bundleno = 2 (0x2), region = 61 }

// kernel: _lambda_.28
= control target key start
LH: loop header
LB: loop body
LE: loop exit
PB: predicated region body
PF: predicated region fallthrough
CT: control target
= control target key end

     0   :  { %s1478_s12 = smov 0   ;;  %s1480_s13 = smov 0   ;;  %s1723_s0 = inlined_call_operand.vmem [shape: bf16[512,1152], index: 0, kind: input, shape index: {}]   ;;  %s1724_s1 = inlined_call_operand.vmem [shape: bf16[1152,128], index: 1, kind: input, shape index: {}]   ;;  %s1725_s2 = inlined_call_operand.vmem [shape: f32[1,128], index: 2, kind: input, shape index: {}]   ;;  %s1726_s3 = inlined_call_operand.vmem [shape: bf16[512,128], index: 3, kind: output, shape index: {}]  }
   0x1   :  { %s1482_s14 = smov 0   ;;  %s1484_s15 = smov 0  }
   0x2   :  { %s1486_s16 = smov 0   ;;  %s1488_s17 = smov 0  }
   0x3   :  { %s1490_s18 = smov 0  }
   0x4 LB: > { %s25_s19 = sadd.s32 1, %s1447_s16  ;;  %s32_s20 = sadd.s32 1, %s1451_s17  ;;  %s1455_s18 = sphi %s1490_s18, %s13_s18   ;;  %s1451_s17 = sphi %s1488_s17, %s1732_s17   ;;  %s1447_s16 = sphi %s1486_s16, %s1731_s16   ;;  %s1443_s15 = sphi %s1484_s15, %s1730_s15   ;;  %s1439_s14 = sphi %s1482_s14, %s1729_s14   ;;  %s1435_s13 = sphi %s1480_s13, %s1728_s13   ;;  %s1431_s12 = sphi %s1478_s12, %s1727_s12  }
   0x5   : > { %p26_p0 = scmp.ge.s32.totalorder %s25_s19, 9  ;;  %p48_p1 = scmp.ne.s32.totalorder %s1435_s13, %s1431_s12 }
   0x6   : > { %p49_p2 = scmp.eq.s32.totalorder %s1455_s18, 0  ;;  %s41_s24 = sadd.s32 1, %s1435_s13 }
   0x7   : > { %s1734_s19 = smov (%p26_p0, %s25_s19), 0  ;;  %s1736_s20 = smov (!%p26_p0, %s32_s20), %s1451_s17 }
   0x8   : > { %p50_p3 = por %p49_p2, %p48_p1  ;;  %p34_p4 = scmp.ge.s32.totalorder %s1736_s20, 2 }
   0x9   : > { %s37_s21 = ssub.s32 %s1447_s16, %s1734_s19  ;;  %p1088_p6 = scmp.ge.s32.totalorder %s1455_s18, 18 }
   0xa   : > { %s1738_s20 = smov (%p34_p4, %s1736_s20), 0 }
   0xb   : > { %s36_s22 = ssub.s32 %s1451_s17, %s1738_s20  ;;  %162 = sbr.rel (%p1088_p6) target bundleno = 55 (0x37), region = 20 }
   0xc   : > { %s38_s23 = sor.u32 %s37_s21, %s36_s22 }
   0xd   : > { %p39_p5 = scmp.eq.s32.totalorder %s38_s23, 0 }
   0xf   : > { %s1529_s25 = scalar_select %p39_p5, %s1435_s13, %s41_s24  }
  0x10   : > { %165 = sbr.rel (!%p50_p3) target bundleno = 55 (0x37), region = 24  ;;  %s167_s26 = sand.u32 (%p50_p3), 1, %s1435_s13  }
  0x11   : > { %s1342_s27 = smul.u32 (%p50_p3), 288, %s1451_s17  ;;  %s1089_s28 = sshll.u32 (%p50_p3), %s167_s26, 7 }
  0x12   : > { %s1543_s7 = scalar_lea.vmem (%p50_p3), [#allocation3], %s1089_s28 }
  0x13   : > { %s172_s29 = sadd.s32 (%p50_p3), %s1447_s16, %s1342_s27 }
  0x14   : > { %s1092_s30 = sshll.u32 (%p50_p3), %s172_s29, 2 }
  0x15   : > { %s1538_s6 = scalar_lea.vmem %s1723_s0, %s1092_s30 }
  0x16   : > { %v191_v0 = vld [vmem:[%s1538_s6] sm:$0xf]  ;;  %v193_v1 = vld [vmem:[%s1538_s6 + $0x24] sm:$0xf]  ;;  %v195_v2 = vld [vmem:[%s1538_s6 + $0x48] sm:$0xf] }
  0x17   : > { %192 = vst [vmem:[%s1543_s7] sm:$0xf] %v191_v0  ;;  %v197_v3 = vld [vmem:[%s1538_s6 + $0x6c] sm:$0xf]  ;;  %v199_v4 = vld [vmem:[%s1538_s6 + $0x90] sm:$0xf] }
  0x18   : > { %194 = vst [vmem:[%s1543_s7 + $0x4] sm:$0xf] %v193_v1  ;;  %v201_v5 = vld [vmem:[%s1538_s6 + $0xb4] sm:$0xf]  ;;  %v203_v6 = vld [vmem:[%s1538_s6 + $0xd8] sm:$0xf] }
  0x19   : > { %196 = vst [vmem:[%s1543_s7 + $0x8] sm:$0xf] %v195_v2  ;;  %v205_v7 = vld [vmem:[%s1538_s6 + $0xfc] sm:$0xf]  ;;  %v207_v8 = vld [vmem:[%s1538_s6 + $0x120] sm:$0xf] }
  0x1a   : > { %198 = vst [vmem:[%s1543_s7 + $0xc] sm:$0xf] %v197_v3  ;;  %v209_v9 = vld [vmem:[%s1538_s6 + $0x144] sm:$0xf]  ;;  %v211_v10 = vld [vmem:[%s1538_s6 + $0x168] sm:$0xf] }
  0x1b   : > { %200 = vst [vmem:[%s1543_s7 + $0x10] sm:$0xf] %v199_v4  ;;  %v213_v11 = vld [vmem:[%s1538_s6 + $0x18c] sm:$0xf]  ;;  %v215_v12 = vld [vmem:[%s1538_s6 + $0x1b0] sm:$0xf] }
  0x1c   : > { %202 = vst [vmem:[%s1543_s7 + $0x14] sm:$0xf] %v201_v5  ;;  %v217_v13 = vld [vmem:[%s1538_s6 + $0x1d4] sm:$0xf]  ;;  %v219_v14 = vld [vmem:[%s1538_s6 + $0x1f8] sm:$0xf] }
  0x1d   : > { %204 = vst [vmem:[%s1543_s7 + $0x18] sm:$0xf] %v203_v6  ;;  %v221_v15 = vld [vmem:[%s1538_s6 + $0x21c] sm:$0xf]  ;;  %v223_v16 = vld [vmem:[%s1538_s6 + $0x240] sm:$0xf] }
  0x1e   : > { %206 = vst [vmem:[%s1543_s7 + $0x1c] sm:$0xf] %v205_v7  ;;  %v225_v17 = vld [vmem:[%s1538_s6 + $0x264] sm:$0xf]  ;;  %v227_v18 = vld [vmem:[%s1538_s6 + $0x288] sm:$0xf] }
  0x1f   : > { %208 = vst [vmem:[%s1543_s7 + $0x20] sm:$0xf] %v207_v8  ;;  %v229_v19 = vld [vmem:[%s1538_s6 + $0x2ac] sm:$0xf]  ;;  %v231_v20 = vld [vmem:[%s1538_s6 + $0x2d0] sm:$0xf] }
  0x20   : > { %210 = vst [vmem:[%s1543_s7 + $0x24] sm:$0xf] %v209_v9  ;;  %v233_v21 = vld [vmem:[%s1538_s6 + $0x2f4] sm:$0xf]  ;;  %v235_v22 = vld [vmem:[%s1538_s6 + $0x318] sm:$0xf] }
  0x21   : > { %212 = vst [vmem:[%s1543_s7 + $0x28] sm:$0xf] %v211_v10  ;;  %v237_v23 = vld [vmem:[%s1538_s6 + $0x33c] sm:$0xf]  ;;  %v239_v24 = vld [vmem:[%s1538_s6 + $0x360] sm:$0xf] }
  0x22   : > { %214 = vst [vmem:[%s1543_s7 + $0x2c] sm:$0xf] %v213_v11  ;;  %v241_v25 = vld [vmem:[%s1538_s6 + $0x384] sm:$0xf]  ;;  %v243_v26 = vld [vmem:[%s1538_s6 + $0x3a8] sm:$0xf] }
  0x23   : > { %216 = vst [vmem:[%s1543_s7 + $0x30] sm:$0xf] %v215_v12  ;;  %v245_v27 = vld [vmem:[%s1538_s6 + $0x3cc] sm:$0xf]  ;;  %v247_v28 = vld [vmem:[%s1538_s6 + $0x3f0] sm:$0xf] }
  0x24   : > { %218 = vst [vmem:[%s1543_s7 + $0x34] sm:$0xf] %v217_v13  ;;  %v249_v29 = vld [vmem:[%s1538_s6 + $0x414] sm:$0xf]  ;;  %v251_v30 = vld [vmem:[%s1538_s6 + $0x438] sm:$0xf] }
  0x25   : > { %220 = vst [vmem:[%s1543_s7 + $0x38] sm:$0xf] %v219_v14  ;;  %v253_v31 = vld [vmem:[%s1538_s6 + $0x45c] sm:$0xf] }
  0x26   : > { %222 = vst [vmem:[%s1543_s7 + $0x3c] sm:$0xf] %v221_v15 }
  0x27   : > { %224 = vst [vmem:[%s1543_s7 + $0x40] sm:$0xf] %v223_v16 }
  0x28   : > { %226 = vst [vmem:[%s1543_s7 + $0x44] sm:$0xf] %v225_v17 }
  0x29   : > { %228 = vst [vmem:[%s1543_s7 + $0x48] sm:$0xf] %v227_v18 }
  0x2a   : > { %230 = vst [vmem:[%s1543_s7 + $0x4c] sm:$0xf] %v229_v19 }
  0x2b   : > { %232 = vst [vmem:[%s1543_s7 + $0x50] sm:$0xf] %v231_v20 }
  0x2c   : > { %234 = vst [vmem:[%s1543_s7 + $0x54] sm:$0xf] %v233_v21 }
  0x2d   : > { %236 = vst [vmem:[%s1543_s7 + $0x58] sm:$0xf] %v235_v22 }
  0x2e   : > { %238 = vst [vmem:[%s1543_s7 + $0x5c] sm:$0xf] %v237_v23 }
  0x2f   : > { %240 = vst [vmem:[%s1543_s7 + $0x60] sm:$0xf] %v239_v24 }
  0x30   : > { %242 = vst [vmem:[%s1543_s7 + $0x64] sm:$0xf] %v241_v25 }
  0x31   : > { %244 = vst [vmem:[%s1543_s7 + $0x68] sm:$0xf] %v243_v26 }
  0x32   : > { %246 = vst [vmem:[%s1543_s7 + $0x6c] sm:$0xf] %v245_v27 }
  0x33   : > { %248 = vst [vmem:[%s1543_s7 + $0x70] sm:$0xf] %v247_v28 }
  0x34   : > { %250 = vst [vmem:[%s1543_s7 + $0x74] sm:$0xf] %v249_v29 }
  0x35   : > { %252 = vst [vmem:[%s1543_s7 + $0x78] sm:$0xf] %v251_v30 }
  0x36   : > { %254 = vst [vmem:[%s1543_s7 + $0x7c] sm:$0xf] %v253_v31 }
  0x37 PF: > { %p1093_p7 = scmp.ge.s32.totalorder %s1455_s18, 1  ;;  %p353_p8 = scmp.lt.s32.totalorder %s1455_s18, 19 }
  0x39   : > { %p354_p9 = pnand %p1093_p7, %p353_p8 }
  0x3a   : > { %s360_s8 = sand.u32 (!%p354_p9), 1, %s1431_s12   ;;  %s1095_s9 = sshll.u32 (!%p354_p9), %s1439_s14, 4 }
  0x3b   : > { %357 = sbr.rel (%p354_p9) target bundleno = 352 (0x160), region = 69  ;;  %s1094_s10 = sshll.u32 (!%p354_p9), %s360_s8, 7 }
  0x3c   : > { %p399_p10 = scmp.lt.s32.totalorder (!%p354_p9), %s1095_s9, 143  ;;  %s1097_s11 = sshll.u32 (!%p354_p9), %s1443_s15, 5 }
  0x3d   : > { %p411_p11 = scmp.lt.s32.totalorder (!%p354_p9), %s1097_s11, 63  ;;  %s1621_s12 = scalar_lea.vmem (!%p354_p9), [#allocation3], %s1094_s10 }
  0x3e   : > { %p1099_p12 = scmp.ne.s32.totalorder (!%p354_p9), %s1439_s14, 0 }
  0x40   : > { %s1740_s9 = smov (!%p399_p10, %s1095_s9), 143  ;;  %s1742_s11 = smov (!%p411_p11, %s1097_s11), 63 }
  0x41   : > { %s1096_s21 = sshll.u32 %s1740_s9, 2  ;;  %s1098_s26 = sshll.u32 %s1742_s11, 2 }
  0x42   : > { %s1614_s24 = scalar_lea.vmem %s1724_s1, %s1096_s21  ;;  %s1619_s29 = scalar_lea.vmem %s1726_s3, %s1098_s26 }
  0x43   : > { %422 = sbr.rel (%p1099_p12) target bundleno = 105 (0x69), region = 77 }
  0x48   : > { %v1457_v32 = vmov 0.0  }
  0x49   : > { %423 = vst [vmem:[#allocation2 + $0xb0] sm:$0xff] %v1457_v32 }
  0x4a   : > { %424 = vst [vmem:[#allocation2] sm:$0xff] %v1457_v32 }
  0x4b   : > { %425 = vst [vmem:[#allocation2 + $0xd8] sm:$0xff] %v1457_v32 }
  0x4c   : > { %426 = vst [vmem:[#allocation2 + $0x18] sm:$0xff] %v1457_v32 }
  0x4d   : > { %427 = vst [vmem:[#allocation2 + $0x50] sm:$0xff] %v1457_v32 }
  0x4e   : > { %428 = vst [vmem:[#allocation2 + $0x68] sm:$0xff] %v1457_v32 }
  0x4f   : > { %429 = vst [vmem:[#allocation2 + $0x30] sm:$0xff] %v1457_v32 }
  0x50   : > { %430 = vst [vmem:[#allocation2 + $0x48] sm:$0xff] %v1457_v32 }
  0x51   : > { %431 = vst [vmem:[#allocation2 + $0x80] sm:$0xff] %v1457_v32 }
  0x52   : > { %432 = vst [vmem:[#allocation2 + $0x88] sm:$0xff] %v1457_v32 }
  0x53   : > { %433 = vst [vmem:[#allocation2 + $0xe8] sm:$0xff] %v1457_v32 }
  0x54   : > { %434 = vst [vmem:[#allocation2 + $0xb8] sm:$0xff] %v1457_v32 }
  0x55   : > { %435 = vst [vmem:[#allocation2 + $0x60] sm:$0xff] %v1457_v32 }
  0x56   : > { %436 = vst [vmem:[#allocation2 + $0xf0] sm:$0xff] %v1457_v32 }
  0x57   : > { %437 = vst [vmem:[#allocation2 + $0x8] sm:$0xff] %v1457_v32 }
  0x58   : > { %438 = vst [vmem:[#allocation2 + $0x78] sm:$0xff] %v1457_v32 }
  0x59   : > { %439 = vst [vmem:[#allocation2 + $0x38] sm:$0xff] %v1457_v32 }
  0x5a   : > { %440 = vst [vmem:[#allocation2 + $0x58] sm:$0xff] %v1457_v32 }
  0x5b   : > { %441 = vst [vmem:[#allocation2 + $0x40] sm:$0xff] %v1457_v32 }
  0x5c   : > { %442 = vst [vmem:[#allocation2 + $0xc8] sm:$0xff] %v1457_v32 }
  0x5d   : > { %443 = vst [vmem:[#allocation2 + $0xe0] sm:$0xff] %v1457_v32 }
  0x5e   : > { %444 = vst [vmem:[#allocation2 + $0x90] sm:$0xff] %v1457_v32 }
  0x5f   : > { %445 = vst [vmem:[#allocation2 + $0x70] sm:$0xff] %v1457_v32 }
  0x60   : > { %446 = vst [vmem:[#allocation2 + $0xc0] sm:$0xff] %v1457_v32 }
  0x61   : > { %447 = vst [vmem:[#allocation2 + $0xa8] sm:$0xff] %v1457_v32 }
  0x62   : > { %448 = vst [vmem:[#allocation2 + $0xd0] sm:$0xff] %v1457_v32 }
  0x63   : > { %449 = vst [vmem:[#allocation2 + $0x10] sm:$0xff] %v1457_v32 }
  0x64   : > { %450 = vst [vmem:[#allocation2 + $0x28] sm:$0xff] %v1457_v32 }
  0x65   : > { %451 = vst [vmem:[#allocation2 + $0xa0] sm:$0xff] %v1457_v32 }
  0x66   : > { %452 = vst [vmem:[#allocation2 + $0xf8] sm:$0xff] %v1457_v32 }
  0x67   : > { %453 = vst [vmem:[#allocation2 + $0x20] sm:$0xff] %v1457_v32 }
  0x68   : > { %454 = vst [vmem:[#allocation2 + $0x98] sm:$0xff] %v1457_v32 }
  0x69 PF: > { %v1222_v33 = vld [vmem:[%s1614_s24 + $0x38] sm:$0xff]  ;;  %v1221_v34 = vld [vmem:[%s1614_s24 + $0x30] sm:$0xff]  ;;  %v1220_v35 = vld [vmem:[%s1614_s24 + $0x28] sm:$0xff]  ;;  %p1196_p13 = scmp.ne.s32.totalorder %s1439_s14, 8 }
  0x6a   : > { %679 = vmatpush.bf16.msra.mxu0 %v1222_v33  ;;  %1318 = vmatpush.bf16.msra.mxu1 %v1222_v33  ;;  %v1219_v36 = vld [vmem:[%s1614_s24 + $0x20] sm:$0xff]  ;;  %v1218_v37 = vld [vmem:[%s1614_s24 + $0x18] sm:$0xff]  ;;  %v1217_v38 = vld [vmem:[%s1614_s24 + $0x10] sm:$0xff] }
  0x6b   : > { %1319 = vmatpush.bf16.msra.mxu2 %v1222_v33  ;;  %1320 = vmatpush.bf16.msra.mxu3 %v1222_v33  ;;  %v1216_v39 = vld [vmem:[%s1614_s24 + $0x8] sm:$0xff]  ;;  %v1215_v40 = vld [vmem:[%s1614_s24] sm:$0xff]  ;;  %v1201_v49 = vld [vmem:[%s1621_s12 + $0x10] sm:$0xff] }
  0x6c   : > { %v1199_v41 = vld [vmem:[%s1621_s12] sm:$0xff]  ;;  %v1200_v45 = vld [vmem:[%s1621_s12 + $0x8] sm:$0xff]  ;;  %v1205_v50 = vld [vmem:[%s1621_s12 + $0x30] sm:$0xff] }
  0x6d   : > { %v1203_v42 = vld [vmem:[%s1621_s12 + $0x20] sm:$0xff]  ;;  %v1204_v46 = vld [vmem:[%s1621_s12 + $0x28] sm:$0xff]  ;;  %v1209_v51 = vld [vmem:[%s1621_s12 + $0x50] sm:$0xff] }
  0x6e   : > { %680 = vmatpush.bf16.msra.mxu0 %v1221_v34  ;;  %1321 = vmatpush.bf16.msra.mxu1 %v1221_v34  ;;  %v1207_v43 = vld [vmem:[%s1621_s12 + $0x40] sm:$0xff]  ;;  %v1208_v47 = vld [vmem:[%s1621_s12 + $0x48] sm:$0xff]  ;;  %v1213_v52 = vld [vmem:[%s1621_s12 + $0x70] sm:$0xff] }
  0x6f   : > { %1322 = vmatpush.bf16.msra.mxu2 %v1221_v34  ;;  %1323 = vmatpush.bf16.msra.mxu3 %v1221_v34  ;;  %v1211_v44 = vld [vmem:[%s1621_s12 + $0x60] sm:$0xff]  ;;  %v1212_v48 = vld [vmem:[%s1621_s12 + $0x68] sm:$0xff]  ;;  %v1202_v53 = vld [vmem:[%s1621_s12 + $0x18] sm:$0xff] }
  0x70   : > { %v1206_v54 = vld [vmem:[%s1621_s12 + $0x38] sm:$0xff]  ;;  %v455_v57 = vld [vmem:[#allocation2 + $0xb0] sm:$0xff]  ;;  %v463_v58 = vld [vmem:[#allocation2 + $0x80] sm:$0xff] }
  0x71   : > { %v1210_v55 = vld [vmem:[%s1621_s12 + $0x58] sm:$0xff]  ;;  %v479_v0 = vld [vmem:[#allocation2 + $0xa8] sm:$0xff]  ;;  %v456_v1 = vld [vmem:[#allocation2] sm:$0xff] }
  0x72   : > { %681 = vmatpush.bf16.msra.mxu0 %v1220_v35  ;;  %1324 = vmatpush.bf16.msra.mxu1 %v1220_v35  ;;  %v1214_v56 = vld [vmem:[%s1621_s12 + $0x78] sm:$0xff]  ;;  %v464_v2 = vld [vmem:[#allocation2 + $0x88] sm:$0xff]  ;;  %v480_v12 = vld [vmem:[#allocation2 + $0xd0] sm:$0xff] }
  0x73   : > { %1325 = vmatpush.bf16.msra.mxu2 %v1220_v35  ;;  %1326 = vmatpush.bf16.msra.mxu3 %v1220_v35  ;;  %v471_v63 = vld [vmem:[#allocation2 + $0x38] sm:$0xff]  ;;  %v465_v14 = vld [vmem:[#allocation2 + $0xe8] sm:$0xff]  ;;  %v473_v23 = vld [vmem:[#allocation2 + $0x40] sm:$0xff] }
  0x74   : > { %v472_v11 = vld [vmem:[#allocation2 + $0x58] sm:$0xff]  ;;  %v481_v24 = vld [vmem:[#allocation2 + $0x10] sm:$0xff]  ;;  %v474_v35 = vld [vmem:[#allocation2 + $0xc8] sm:$0xff] }
  0x75   : > { %v457_v13 = vld [vmem:[#allocation2 + $0xd8] sm:$0xff] }
  0x76   : > { %682 = vmatpush.bf16.msra.mxu0 %v1219_v36  ;;  %1327 = vmatpush.bf16.msra.mxu1 %v1219_v36  ;;  %v458_v25 = vld [vmem:[#allocation2 + $0x18] sm:$0xff] }
  0x77   : > { %1328 = vmatpush.bf16.msra.mxu2 %v1219_v36  ;;  %1329 = vmatpush.bf16.msra.mxu3 %v1219_v36  ;;  %v466_v26 = vld [vmem:[#allocation2 + $0xb8] sm:$0xff]  ;;  %v482_v36 = vld [vmem:[#allocation2 + $0x28] sm:$0xff] }
  0x7a   : > { %683 = vmatpush.bf16.msra.mxu0 %v1218_v37  ;;  %1330 = vmatpush.bf16.msra.mxu1 %v1218_v37 }
  0x7b   : > { %1331 = vmatpush.bf16.msra.mxu2 %v1218_v37  ;;  %1332 = vmatpush.bf16.msra.mxu3 %v1218_v37  ;;  %v459_v37 = vld [vmem:[#allocation2 + $0x50] sm:$0xff] }
  0x7e   : > { %684 = vmatpush.bf16.msra.mxu0 %v1217_v38  ;;  %1333 = vmatpush.bf16.msra.mxu1 %v1217_v38 }
  0x7f   : > { %1334 = vmatpush.bf16.msra.mxu2 %v1217_v38  ;;  %1335 = vmatpush.bf16.msra.mxu3 %v1217_v38  ;;  %v467_v38 = vld [vmem:[#allocation2 + $0x60] sm:$0xff] }
  0x82   : > { %685 = vmatpush.bf16.msra.mxu0 %v1216_v39  ;;  %1336 = vmatpush.bf16.msra.mxu1 %v1216_v39 }
  0x83   : > { %1337 = vmatpush.bf16.msra.mxu2 %v1216_v39  ;;  %1338 = vmatpush.bf16.msra.mxu3 %v1216_v39 }
  0x86   : > { %686 = vmatpush.bf16.msra.mxu0 %v1215_v40  ;;  %1339 = vmatpush.bf16.msra.mxu1 %v1215_v40 }
  0x87   : > { %1340 = vmatpush.bf16.msra.mxu2 %v1215_v40  ;;  %1341 = vmatpush.bf16.msra.mxu3 %v1215_v40 }
  0x89   : > { %687 = vmatmul.bf16.vlgmr.msra.gmra.mxu0 %v1199_v41  ;;  %707 = vmatmul.bf16.vlgmr.msra.gmra.mxu1 %v1203_v42 }
  0x8a   : > { %727 = vmatmul.bf16.vlgmr.msra.gmra.mxu2 %v1207_v43  ;;  %747 = vmatmul.bf16.vlgmr.msra.gmra.mxu3 %v1211_v44 }
  0x99   : > { %692 = vmatmul.bf16.gmra.mxu0 %v1200_v45  ;;  %712 = vmatmul.bf16.gmra.mxu1 %v1204_v46 }
  0x9a   : > { %732 = vmatmul.bf16.gmra.mxu2 %v1208_v47  ;;  %752 = vmatmul.bf16.gmra.mxu3 %v1212_v48  ;;  %v475_v47 = vld [vmem:[#allocation2 + $0xe0] sm:$0xff] }
  0x9b   : > { %v483_v48 = vld [vmem:[#allocation2 + $0xa0] sm:$0xff] }
  0xa9   : > { %697 = vmatmul.bf16.gmra.mxu0 %v1201_v49  ;;  %717 = vmatmul.bf16.gmra.mxu1 %v1205_v50  ;;  %v460_v49 = vld [vmem:[#allocation2 + $0x68] sm:$0xff]  ;;  %v468_v50 = vld [vmem:[#allocation2 + $0xf0] sm:$0xff] }
  0xaa   : > { %737 = vmatmul.bf16.gmra.mxu2 %v1209_v51  ;;  %757 = vmatmul.bf16.gmra.mxu3 %v1213_v52 }
  0xb9   : > { %702 = vmatmul.bf16.gmra.mxu0 %v1202_v53  ;;  %722 = vmatmul.bf16.gmra.mxu1 %v1206_v54 }
  0xba   : > { %742 = vmatmul.bf16.gmra.mxu2 %v1210_v55  ;;  %762 = vmatmul.bf16.gmra.mxu3 %v1214_v56 }
 0x106   : > { %v688_v59 = vpop.f32.mrf.mxu0  ;;  %v708_v60 = vpop.f32.mrf.mxu1 }
 0x107   : > { %v768_v61 = vadd.f32 %v688_v59, %v455_v57  ;;  %v776_v62 = vadd.f32 %v708_v60, %v463_v58  ;;  %v476_v59 = vld [vmem:[#allocation2 + $0x90] sm:$0xff]  ;;  %v484_v60 = vld [vmem:[#allocation2 + $0xf8] sm:$0xff] }
 0x109   : > { %800 = vst [vmem:[#allocation2 + $0xb0] sm:$0xff] %v768_v61  ;;  %v461_v61 = vld [vmem:[#allocation2 + $0x30] sm:$0xff] }
 0x10a   : > { %808 = vst [vmem:[#allocation2 + $0x80] sm:$0xff] %v776_v62  ;;  %v469_v62 = vld [vmem:[#allocation2 + $0x8] sm:$0xff] }
 0x10d   : > { %v728_v3 = vpop.f32.mrf.mxu2  ;;  %v748_v4 = vpop.f32.mrf.mxu3 }
 0x10e   : > { %v784_v5 = vadd.f32 %v728_v3, %v471_v63  ;;  %v792_v6 = vadd.f32 %v748_v4, %v479_v0  ;;  %v690_v7 = vpop.f32.mrf.mxu0  ;;  %v710_v8 = vpop.f32.mrf.mxu1 }
 0x10f   : > { %v769_v9 = vadd.f32 %v690_v7, %v456_v1  ;;  %v777_v10 = vadd.f32 %v710_v8, %v464_v2  ;;  %v477_v7 = vld [vmem:[#allocation2 + $0x70] sm:$0xff]  ;;  %v485_v8 = vld [vmem:[#allocation2 + $0x20] sm:$0xff] }
 0x110   : > { %816 = vst [vmem:[#allocation2 + $0x38] sm:$0xff] %v784_v5 }
 0x111   : > { %824 = vst [vmem:[#allocation2 + $0xa8] sm:$0xff] %v792_v6 }
 0x112   : > { %801 = vst [vmem:[#allocation2] sm:$0xff] %v769_v9  ;;  %v462_v9 = vld [vmem:[#allocation2 + $0x48] sm:$0xff] }
 0x113   : > { %809 = vst [vmem:[#allocation2 + $0x88] sm:$0xff] %v777_v10  ;;  %v470_v10 = vld [vmem:[#allocation2 + $0x78] sm:$0xff] }
 0x115   : > { %v730_v15 = vpop.f32.mrf.mxu2  ;;  %v750_v16 = vpop.f32.mrf.mxu3 }
 0x116   : > { %v785_v17 = vadd.f32 %v730_v15, %v472_v11  ;;  %v793_v18 = vadd.f32 %v750_v16, %v480_v12  ;;  %v693_v19 = vpop.f32.mrf.mxu0  ;;  %v713_v20 = vpop.f32.mrf.mxu1 }
 0x117   : > { %v770_v21 = vadd.f32 %v693_v19, %v457_v13  ;;  %v778_v22 = vadd.f32 %v713_v20, %v465_v14  ;;  %v478_v19 = vld [vmem:[#allocation2 + $0xc0] sm:$0xff]  ;;  %v486_v20 = vld [vmem:[#allocation2 + $0x98] sm:$0xff] }
 0x118   : > { %817 = vst [vmem:[#allocation2 + $0x58] sm:$0xff] %v785_v17 }
 0x119   : > { %825 = vst [vmem:[#allocation2 + $0xd0] sm:$0xff] %v793_v18 }
 0x11a   : > { %802 = vst [vmem:[#allocation2 + $0xd8] sm:$0xff] %v770_v21 }
 0x11b   : > { %810 = vst [vmem:[#allocation2 + $0xe8] sm:$0xff] %v778_v22 }
 0x11d   : > { %v733_v27 = vpop.f32.mrf.mxu2  ;;  %v753_v28 = vpop.f32.mrf.mxu3 }
 0x11e   : > { %v786_v29 = vadd.f32 %v733_v27, %v473_v23  ;;  %v794_v30 = vadd.f32 %v753_v28, %v481_v24  ;;  %v695_v31 = vpop.f32.mrf.mxu0  ;;  %v715_v32 = vpop.f32.mrf.mxu1 }
 0x11f   : > { %v771_v33 = vadd.f32 %v695_v31, %v458_v25  ;;  %v779_v34 = vadd.f32 %v715_v32, %v466_v26 }
 0x120   : > { %818 = vst [vmem:[#allocation2 + $0x40] sm:$0xff] %v786_v29 }
 0x121   : > { %826 = vst [vmem:[#allocation2 + $0x10] sm:$0xff] %v794_v30 }
 0x122   : > { %803 = vst [vmem:[#allocation2 + $0x18] sm:$0xff] %v771_v33 }
 0x123   : > { %811 = vst [vmem:[#allocation2 + $0xb8] sm:$0xff] %v779_v34 }
 0x125   : > { %v735_v39 = vpop.f32.mrf.mxu2  ;;  %v755_v40 = vpop.f32.mrf.mxu3 }
 0x126   : > { %v787_v41 = vadd.f32 %v735_v39, %v474_v35  ;;  %v795_v42 = vadd.f32 %v755_v40, %v482_v36  ;;  %v698_v43 = vpop.f32.mrf.mxu0  ;;  %v718_v44 = vpop.f32.mrf.mxu1 }
 0x127   : > { %v772_v45 = vadd.f32 %v698_v43, %v459_v37  ;;  %v780_v46 = vadd.f32 %v718_v44, %v467_v38 }
 0x128   : > { %819 = vst [vmem:[#allocation2 + $0xc8] sm:$0xff] %v787_v41 }
 0x129   : > { %827 = vst [vmem:[#allocation2 + $0x28] sm:$0xff] %v795_v42 }
 0x12a   : > { %804 = vst [vmem:[#allocation2 + $0x50] sm:$0xff] %v772_v45 }
 0x12b   : > { %812 = vst [vmem:[#allocation2 + $0x60] sm:$0xff] %v780_v46 }
 0x12d   : > { %v738_v51 = vpop.f32.mrf.mxu2  ;;  %v758_v52 = vpop.f32.mrf.mxu3 }
 0x12e   : > { %v788_v53 = vadd.f32 %v738_v51, %v475_v47  ;;  %v796_v54 = vadd.f32 %v758_v52, %v483_v48  ;;  %v700_v55 = vpop.f32.mrf.mxu0  ;;  %v720_v56 = vpop.f32.mrf.mxu1 }
 0x12f   : > { %v773_v57 = vadd.f32 %v700_v55, %v460_v49  ;;  %v781_v58 = vadd.f32 %v720_v56, %v468_v50 }
 0x130   : > { %820 = vst [vmem:[#allocation2 + $0xe0] sm:$0xff] %v788_v53 }
 0x131   : > { %828 = vst [vmem:[#allocation2 + $0xa0] sm:$0xff] %v796_v54 }
 0x132   : > { %805 = vst [vmem:[#allocation2 + $0x68] sm:$0xff] %v773_v57 }
 0x133   : > { %813 = vst [vmem:[#allocation2 + $0xf0] sm:$0xff] %v781_v58 }
 0x135   : > { %v740_v63 = vpop.f32.mrf.mxu2  ;;  %v760_v0 = vpop.f32.mrf.mxu3 }
 0x136   : > { %v789_v1 = vadd.f32 %v740_v63, %v476_v59  ;;  %v797_v2 = vadd.f32 %v760_v0, %v484_v60  ;;  %v703_v3 = vpop.f32.mrf.mxu0  ;;  %v723_v4 = vpop.f32.mrf.mxu1 }
 0x137   : > { %v774_v5 = vadd.f32 %v703_v3, %v461_v61  ;;  %v782_v6 = vadd.f32 %v723_v4, %v469_v62 }
 0x138   : > { %821 = vst [vmem:[#allocation2 + $0x90] sm:$0xff] %v789_v1 }
 0x139   : > { %829 = vst [vmem:[#allocation2 + $0xf8] sm:$0xff] %v797_v2 }
 0x13a   : > { %806 = vst [vmem:[#allocation2 + $0x30] sm:$0xff] %v774_v5 }
 0x13b   : > { %814 = vst [vmem:[#allocation2 + $0x8] sm:$0xff] %v782_v6 }
 0x13d   : > { %v743_v11 = vpop.f32.mrf.mxu2  ;;  %v763_v12 = vpop.f32.mrf.mxu3 }
 0x13e   : > { %v790_v13 = vadd.f32 %v743_v11, %v477_v7  ;;  %v798_v14 = vadd.f32 %v763_v12, %v485_v8  ;;  %v705_v15 = vpop.f32.mrf.mxu0  ;;  %v725_v16 = vpop.f32.mrf.mxu1 }
 0x13f   : > { %v775_v17 = vadd.f32 %v705_v15, %v462_v9  ;;  %v783_v18 = vadd.f32 %v725_v16, %v470_v10 }
 0x140   : > { %822 = vst [vmem:[#allocation2 + $0x70] sm:$0xff] %v790_v13 }
 0x141   : > { %830 = vst [vmem:[#allocation2 + $0x20] sm:$0xff] %v798_v14 }
 0x142   : > { %807 = vst [vmem:[#allocation2 + $0x48] sm:$0xff] %v775_v17 }
 0x143   : > { %815 = vst [vmem:[#allocation2 + $0x78] sm:$0xff] %v783_v18 }
 0x145   : > { %v745_v21 = vpop.f32.mrf.mxu2  ;;  %v765_v22 = vpop.f32.mrf.mxu3  ;;  %835 = sbr.rel (%p1196_p13) target bundleno = 352 (0x160), region = 81 }
 0x146   : > { %v791_v23 = vadd.f32 %v745_v21, %v478_v19  ;;  %v799_v24 = vadd.f32 %v765_v22, %v486_v20 }
 0x148   : > { %823 = vst [vmem:[#allocation2 + $0xc0] sm:$0xff] %v791_v23 }
 0x149   : > { %831 = vst [vmem:[#allocation2 + $0x98] sm:$0xff] %v799_v24 }
 0x14a   : > { %v836_v25 = vld [vmem:[#allocation2 + $0xb0] sm:$0xff]  ;;  %v837_v26 = vld [vmem:[#allocation2] sm:$0xff]  ;;  %v838_v28 = vld [vmem:[#allocation2 + $0xd8] sm:$0xff] }
 0x14b   : > { %v1652_v27 = vld [vmem:[%s1725_s2] ss:$0 sm:$0xff]  ;;  %v839_v29 = vld [vmem:[#allocation2 + $0x18] sm:$0xff]  ;;  %v840_v30 = vld [vmem:[#allocation2 + $0x50] sm:$0xff] }
 0x14c   : > { %v841_v31 = vld [vmem:[#allocation2 + $0x68] sm:$0xff]  ;;  %v842_v32 = vld [vmem:[#allocation2 + $0x30] sm:$0xff]  ;;  %v872_v33 = vadd.f32 %v1652_v27, %v836_v25  ;;  %v873_v34 = vadd.f32 %v1652_v27, %v837_v26  ;;  %v874_v35 = vadd.f32 %v1652_v27, %v838_v28  ;;  %v875_v36 = vadd.f32 %v1652_v27, %v839_v29  ;;  %v844_v38 = vld [vmem:[#allocation2 + $0x80] sm:$0xff] }
 0x14d   : > { %v843_v37 = vld [vmem:[#allocation2 + $0x48] sm:$0xff]  ;;  %v876_v40 = vadd.f32 %v1652_v27, %v840_v30  ;;  %v877_v41 = vadd.f32 %v1652_v27, %v841_v31  ;;  %v878_v42 = vadd.f32 %v1652_v27, %v842_v32  ;;  %v847_v45 = vld [vmem:[#allocation2 + $0xb8] sm:$0xff]  ;;  %v848_v46 = vld [vmem:[#allocation2 + $0x60] sm:$0xff]  ;;  %v880_v49 = vadd.f32 %v1652_v27, %v844_v38 }
 0x14e   : > { %v845_v39 = vld [vmem:[#allocation2 + $0x88] sm:$0xff]  ;;  %v879_v43 = vadd.f32 %v1652_v27, %v843_v37  ;;  %v1226_v47 = vpack.c.bf16 %v873_v34, %v872_v33  ;;  %v1231_v48 = vpack.c.bf16 %v875_v36, %v874_v35  ;;  %v849_v51 = vld [vmem:[#allocation2 + $0xf0] sm:$0xff]  ;;  %v851_v53 = vld [vmem:[#allocation2 + $0x78] sm:$0xff]  ;;  %v883_v57 = vadd.f32 %v1652_v27, %v847_v45 }
 0x14f   : > { %v846_v44 = vld [vmem:[#allocation2 + $0xe8] sm:$0xff]  ;;  %v881_v50 = vadd.f32 %v1652_v27, %v845_v39  ;;  %v1236_v54 = vpack.c.bf16 %v877_v41, %v876_v40  ;;  %v852_v58 = vld [vmem:[#allocation2 + $0x38] sm:$0xff]  ;;  %v854_v60 = vld [vmem:[#allocation2 + $0x40] sm:$0xff]  ;;  %v884_v62 = vadd.f32 %v1652_v27, %v848_v46  ;;  %v885_v63 = vadd.f32 %v1652_v27, %v849_v51 }
 0x150   : > { %v850_v52 = vld [vmem:[#allocation2 + $0x8] sm:$0xff]  ;;  %v1241_v55 = vpack.c.bf16 %v879_v43, %v878_v42  ;;  %v882_v56 = vadd.f32 %v1652_v27, %v846_v44  ;;  %v853_v59 = vld [vmem:[#allocation2 + $0x58] sm:$0xff]  ;;  %1227 = vst [vmem:[%s1619_s29] sm:$0xff] %v1226_v47   ;;  %v856_v2 = vld [vmem:[#allocation2 + $0xe0] sm:$0xff]  ;;  %v887_v5 = vadd.f32 %v1652_v27, %v851_v53  ;;  %v888_v6 = vadd.f32 %v1652_v27, %v852_v58 }
 0x151   : > { %v1246_v61 = vpack.c.bf16 %v881_v50, %v880_v49  ;;  %v886_v0 = vadd.f32 %v1652_v27, %v850_v52  ;;  %v855_v1 = vld [vmem:[#allocation2 + $0xc8] sm:$0xff]  ;;  %v857_v3 = vld [vmem:[#allocation2 + $0x90] sm:$0xff]  ;;  %1303 = vst [vmem:[%s1619_s29 + $0x8] sm:$0xff] %v1231_v48   ;;  %v889_v7 = vadd.f32 %v1652_v27, %v853_v59  ;;  %v859_v9 = vld [vmem:[#allocation2 + $0xc0] sm:$0xff]  ;;  %v1256_v11 = vpack.c.bf16 %v885_v63, %v884_v62 }
 0x152   : > { %v1251_v4 = vpack.c.bf16 %v883_v57, %v882_v56  ;;  %v858_v8 = vld [vmem:[#allocation2 + $0x70] sm:$0xff]  ;;  %v860_v10 = vld [vmem:[#allocation2 + $0xa8] sm:$0xff]  ;;  %1304 = vst [vmem:[%s1619_s29 + $0x10] sm:$0xff] %v1236_v54   ;;  %v890_v12 = vadd.f32 %v1652_v27, %v854_v60  ;;  %v891_v13 = vadd.f32 %v1652_v27, %v855_v1  ;;  %v892_v14 = vadd.f32 %v1652_v27, %v856_v2  ;;  %v864_v21 = vld [vmem:[#allocation2 + $0xa0] sm:$0xff] }
 0x153   : > { %v861_v15 = vld [vmem:[#allocation2 + $0xd0] sm:$0xff]  ;;  %v863_v17 = vld [vmem:[#allocation2 + $0x28] sm:$0xff]  ;;  %1305 = vst [vmem:[%s1619_s29 + $0x18] sm:$0xff] %v1241_v55   ;;  %v1261_v18 = vpack.c.bf16 %v887_v5, %v886_v0  ;;  %v893_v19 = vadd.f32 %v1652_v27, %v857_v3  ;;  %v894_v20 = vadd.f32 %v1652_v27, %v858_v8  ;;  %v865_v22 = vld [vmem:[#allocation2 + $0xf8] sm:$0xff]  ;;  %v1266_v23 = vpack.c.bf16 %v889_v7, %v888_v6 }
 0x154   : > { %v862_v16 = vld [vmem:[#allocation2 + $0x10] sm:$0xff]  ;;  %1306 = vst [vmem:[%s1619_s29 + $0x20] sm:$0xff] %v1246_v61   ;;  %v895_v24 = vadd.f32 %v1652_v27, %v859_v9  ;;  %v896_v25 = vadd.f32 %v1652_v27, %v860_v10  ;;  %v897_v26 = vadd.f32 %v1652_v27, %v861_v15  ;;  %v866_v28 = vld [vmem:[#allocation2 + $0x20] sm:$0xff]  ;;  %v867_v29 = vld [vmem:[#allocation2 + $0x98] sm:$0xff]  ;;  %v1271_v30 = vpack.c.bf16 %v891_v13, %v890_v12 }
 0x155   : > { %1307 = vst [vmem:[%s1619_s29 + $0x28] sm:$0xff] %v1251_v4   ;;  %v898_v31 = vadd.f32 %v1652_v27, %v862_v16  ;;  %v899_v32 = vadd.f32 %v1652_v27, %v863_v17  ;;  %v1276_v33 = vpack.c.bf16 %v893_v19, %v892_v14  ;;  %v900_v34 = vadd.f32 %v1652_v27, %v864_v21 }
 0x156   : > { %1308 = vst [vmem:[%s1619_s29 + $0x30] sm:$0xff] %v1256_v11   ;;  %v901_v35 = vadd.f32 %v1652_v27, %v865_v22  ;;  %v1281_v36 = vpack.c.bf16 %v895_v24, %v894_v20  ;;  %v902_v37 = vadd.f32 %v1652_v27, %v866_v28  ;;  %v903_v38 = vadd.f32 %v1652_v27, %v867_v29 }
 0x157   : > { %1309 = vst [vmem:[%s1619_s29 + $0x38] sm:$0xff] %v1261_v18   ;;  %v1286_v39 = vpack.c.bf16 %v897_v26, %v896_v25  ;;  %v1291_v40 = vpack.c.bf16 %v899_v32, %v898_v31 }
 0x158   : > { %1310 = vst [vmem:[%s1619_s29 + $0x40] sm:$0xff] %v1266_v23   ;;  %v1296_v41 = vpack.c.bf16 %v901_v35, %v900_v34  ;;  %v1301_v42 = vpack.c.bf16 %v903_v38, %v902_v37 }
 0x159   : > { %1311 = vst [vmem:[%s1619_s29 + $0x48] sm:$0xff] %v1271_v30  }
 0x15a   : > { %1312 = vst [vmem:[%s1619_s29 + $0x50] sm:$0xff] %v1276_v33  }
 0x15b   : > { %1313 = vst [vmem:[%s1619_s29 + $0x58] sm:$0xff] %v1281_v36  }
 0x15c   : > { %1314 = vst [vmem:[%s1619_s29 + $0x60] sm:$0xff] %v1286_v39  }
 0x15d   : > { %1315 = vst [vmem:[%s1619_s29 + $0x68] sm:$0xff] %v1291_v40  }
 0x15e   : > { %1316 = vst [vmem:[%s1619_s29 + $0x70] sm:$0xff] %v1296_v41  }
 0x15f   : > { %1317 = vst [vmem:[%s1619_s29 + $0x78] sm:$0xff] %v1301_v42  }
 0x160 PF: > { %s13_s18 = sadd.s32 1, %s1455_s18   ;;  %s1727_s12 = smov %s1435_s13 }
 0x161   : > { %p10_p0 = scmp.ge.s32.totalorder %s13_s18, 20   ;;  %s1728_s13 = smov %s1529_s25 }
 0x162   : > { %s1729_s14 = smov %s1447_s16  ;;  %s1730_s15 = smov %s1451_s17 }
 0x163   : > { %s1731_s16 = smov %s1734_s19  ;;  %s1732_s17 = smov %s1738_s20 }
 0x164   :  { %12 = sbr.rel (!%p10_p0) target bundleno = 4 (0x4), region = 122 }

// kernel: _lambda_.31
= control target key start
LH: loop header
LB: loop body
LE: loop exit
PB: predicated region body
PF: predicated region fallthrough
CT: control target
= control target key end

     0   :  { %s445_s6 = smov 0   ;;  %s447_s7 = smov 0   ;;  %s524_s0 = inlined_call_operand.vmem [shape: bf16[2,64,128], index: 0, kind: input, shape index: {}]   ;;  %s525_s1 = inlined_call_operand.vmem [shape: f32[2,64,128], index: 1, kind: output, shape index: {}]  }
   0x1   :  { %s449_s8 = smov 0  }
   0x2 LB: > { %s23_s9 = sadd.s32 1, %s429_s7  ;;  %p341_p0 = scmp.ge.s32.totalorder %s433_s8, 1  ;;  %s433_s8 = sphi %s449_s8, %s11_s8   ;;  %s429_s7 = sphi %s447_s7, %s527_s7   ;;  %s425_s6 = sphi %s445_s6, %s526_s6  }
   0x3   : > { %p25_p1 = scmp.ge.s32.totalorder %s23_s9, 2  ;;  %p106_p2 = scmp.lt.s32.totalorder %s433_s8, 3 }
   0x5   : > { %s529_s9 = smov (%p25_p1, %s23_s9), 0  ;;  %p107_p3 = pnand %p341_p0, %p106_p2 }
   0x6   : > { %p132_p4 = scmp.lt.s32.totalorder (!%p107_p3), %s425_s6, 1 }
   0x7   : > { %110 = sbr.rel (%p107_p3) target bundleno = 91 (0x5b), region = 24 }
   0xc   : > { %s531_s6 = smov (!%p132_p4, %s425_s6), 1 }
   0xd   : > { %s348_s10 = sshll.u32 %s531_s6, 5  ;;  %s349_s14 = sshll.u32 %s531_s6, 6 }
   0xe   : > { %s139_s13 = scalar_lea.vmem %s524_s0, %s348_s10  ;;  %s147_s17 = scalar_lea.vmem %s525_s1, %s349_s14 }
   0xf   : > { %v351_v0 = vld [vmem:[%s139_s13] sm:$0xff]   ;;  %v366_v1 = vld [vmem:[%s139_s13 + $0x8] sm:$0xff]   ;;  %v367_v2 = vld [vmem:[%s139_s13 + $0x10] sm:$0xff]  }
  0x10   : > { %v469_v3 = vunpack.c.l.bf16 %v351_v0  ;;  %v471_v4 = vunpack.c.h.bf16 %v351_v0  ;;  %v473_v5 = vunpack.c.l.bf16 %v366_v1  ;;  %v475_v6 = vunpack.c.h.bf16 %v366_v1  ;;  %v368_v12 = vld [vmem:[%s139_s13 + $0x18] sm:$0xff]  }
  0x11   : > { %v477_v7 = vunpack.c.l.bf16 %v367_v2  ;;  %v487_v13 = vunpack.c.h.bf16 %v367_v2  ;;  %v492_v17 = vunpack.c.l.bf16 %v368_v12  ;;  %v365_v21 = vunpack.c.h.bf16 %v368_v12 }
  0x12   : > { %v164_v8 = vadd.f32 %v471_v4, %v469_v3  ;;  %v178_v9 = vmul.f32 %v469_v3, %v469_v3  ;;  %v179_v10 = vmul.f32 %v471_v4, %v471_v4  ;;  %v180_v11 = vmul.f32 %v473_v5, %v473_v5 }
  0x13   : > { %v181_v15 = vmul.f32 %v475_v6, %v475_v6  ;;  %v182_v19 = vmul.f32 %v477_v7, %v477_v7  ;;  %v183_v23 = vmul.f32 %v487_v13, %v487_v13  ;;  %v184_v26 = vmul.f32 %v492_v17, %v492_v17 }
  0x14   : > { %v165_v14 = vadd.f32 %v473_v5, %v164_v8  ;;  %v186_v16 = vadd.f32 %v179_v10, %v178_v9  ;;  %v185_v29 = vmul.f32 %v365_v21, %v365_v21 }
  0x16   : > { %v166_v18 = vadd.f32 %v475_v6, %v165_v14  ;;  %v187_v20 = vadd.f32 %v186_v16, %v180_v11 }
  0x18   : > { %v167_v22 = vadd.f32 %v477_v7, %v166_v18  ;;  %v188_v24 = vadd.f32 %v187_v20, %v181_v15 }
  0x1a   : > { %v168_v25 = vadd.f32 %v487_v13, %v167_v22  ;;  %v189_v27 = vadd.f32 %v188_v24, %v182_v19 }
  0x1c   : > { %v169_v28 = vadd.f32 %v492_v17, %v168_v25  ;;  %v190_v30 = vadd.f32 %v189_v27, %v183_v23 }
  0x1e   : > { %v170_v31 = vadd.f32 %v365_v21, %v169_v28  ;;  %v191_v32 = vadd.f32 %v190_v30, %v184_v26 }
  0x20   : > { %v171_v33 = vrot.slane %v170_v31, 4  ;;  %v192_v34 = vadd.f32 %v191_v32, %v185_v29 }
  0x22   : > { %v172_v35 = vadd.f32 %v171_v33, %v170_v31  ;;  %v193_v36 = vrot.slane %v192_v34, 4 }
  0x24   : > { %v173_v37 = vrot.slane %v172_v35, 2  ;;  %v194_v38 = vadd.f32 %v193_v36, %v192_v34 }
  0x26   : > { %v174_v39 = vadd.f32 %v173_v37, %v172_v35  ;;  %v195_v40 = vrot.slane %v194_v38, 2 }
  0x28   : > { %v175_v41 = vrot.slane %v174_v39, 1  ;;  %v196_v42 = vadd.f32 %v195_v40, %v194_v38 }
  0x2a   : > { %v176_v43 = vadd.f32 %v175_v41, %v174_v39  ;;  %v197_v44 = vrot.slane %v196_v42, 1 }
  0x2c   : > { %v177_v45 = vmul.f32 0.015625, %v176_v43  ;;  %v198_v46 = vadd.f32 %v197_v44, %v196_v42 }
  0x2e   : > { %v199_v47 = vmul.f32 0.015625, %v198_v46  ;;  %v200_v48 = vmul.f32 %v177_v45, %v177_v45  ;;  %v203_v57 = vsub.f32 %v469_v3, %v177_v45  ;;  %v204_v58 = vsub.f32 %v471_v4, %v177_v45 }
  0x2f   : > { %v205_v59 = vsub.f32 %v473_v5, %v177_v45  ;;  %v206_v60 = vsub.f32 %v475_v6, %v177_v45  ;;  %v207_v62 = vsub.f32 %v477_v7, %v177_v45  ;;  %v208_v63 = vsub.f32 %v487_v13, %v177_v45 }
  0x30   : > { %v201_v49 = vsub.f32 %v199_v47, %v200_v48  ;;  %v209_v0 = vsub.f32 %v492_v17, %v177_v45  ;;  %v210_v2 = vsub.f32 %v365_v21, %v177_v45 }
  0x32   : > { %v202_v50 = vmax.f32 %v201_v49, 0.0 }
  0x34   : > { %v211_v51 = vadd.f32 1e-05, %v202_v50 }
  0x36   : > { %393 = vrsqrt.f32 %v211_v51  ;;  %vm218_vm0 = vweird.f32 %v211_v51 }
  0x3c   : > { %v394_v52 = vpop.eup %393 }
  0x3d   : > { %v213_v53 = vmul.f32 %v394_v52, %v211_v51  ;;  %vm219_vm1 = vweird.f32 %v394_v52 }
  0x3e   : > { %vm220_vm2 = vmor %vm218_vm0, %vm219_vm1 }
  0x3f   : > { %v214_v54 = vmul.f32 %v394_v52, %v213_v53 }
  0x41   : > { %v215_v55 = vmul.f32 0.5, %v214_v54 }
  0x43   : > { %v216_v56 = vsub.f32 1.5, %v215_v55 }
  0x45   : > { %v217_v61 = vmul.f32 %v394_v52, %v216_v56 }
  0x47   : > { %v221_v1 = vsel %vm220_vm2, %v394_v52, %v217_v61 }
  0x48   : > { %v222_v8 = vmul.f32 %v221_v1, %v203_v57  ;;  %v223_v9 = vmul.f32 %v221_v1, %v204_v58  ;;  %v224_v3 = vmul.f32 %v221_v1, %v205_v59  ;;  %v225_v10 = vmul.f32 %v221_v1, %v206_v60 }
  0x49   : > { %v226_v11 = vmul.f32 %v221_v1, %v207_v62  ;;  %v227_v4 = vmul.f32 %v221_v1, %v208_v63  ;;  %v228_v6 = vmul.f32 %v221_v1, %v209_v0  ;;  %v229_v16 = vmul.f32 %v221_v1, %v210_v2 }
  0x4a   : > { %v230_v12 = vmax.f32 %v222_v8, 0.0  ;;  %v231_v5 = vmax.f32 %v223_v9, 0.0  ;;  %v232_v14 = vmax.f32 %v224_v3, 0.0  ;;  %v233_v15 = vmax.f32 %v225_v10, 0.0 }
  0x4b   : > { %v234_v7 = vmax.f32 %v226_v11, 0.0  ;;  %v235_v13 = vmax.f32 %v227_v4, 0.0  ;;  %v236_v17 = vmax.f32 %v228_v6, 0.0  ;;  %v237_v18 = vmax.f32 %v229_v16, 0.0 }
  0x4c   : > { %395 = vtanh.f32 %v230_v12 }
  0x4d   : > { %397 = vtanh.f32 %v231_v5 }
  0x4e   : > { %399 = vtanh.f32 %v232_v14 }
  0x4f   : > { %401 = vtanh.f32 %v233_v15 }
  0x50   : > { %403 = vtanh.f32 %v234_v7 }
  0x51   : > { %405 = vtanh.f32 %v235_v13 }
  0x52   : > { %v396_v19 = vpop.eup %395  ;;  %407 = vtanh.f32 %v236_v17 }
  0x53   : > { %v398_v20 = vpop.eup %397  ;;  %246 = vst [vmem:[%s147_s17] sm:$0xff] %v396_v19  ;;  %409 = vtanh.f32 %v237_v18 }
  0x54   : > { %v400_v21 = vpop.eup %399  ;;  %247 = vst [vmem:[%s147_s17 + $0x8] sm:$0xff] %v398_v20 }
  0x55   : > { %v402_v22 = vpop.eup %401  ;;  %248 = vst [vmem:[%s147_s17 + $0x10] sm:$0xff] %v400_v21 }
  0x56   : > { %v404_v23 = vpop.eup %403  ;;  %249 = vst [vmem:[%s147_s17 + $0x18] sm:$0xff] %v402_v22 }
  0x57   : > { %v406_v24 = vpop.eup %405  ;;  %250 = vst [vmem:[%s147_s17 + $0x20] sm:$0xff] %v404_v23 }
  0x58   : > { %v408_v25 = vpop.eup %407  ;;  %251 = vst [vmem:[%s147_s17 + $0x28] sm:$0xff] %v406_v24 }
  0x59   : > { %v410_v26 = vpop.eup %409  ;;  %252 = vst [vmem:[%s147_s17 + $0x30] sm:$0xff] %v408_v25 }
  0x5a   : > { %253 = vst [vmem:[%s147_s17 + $0x38] sm:$0xff] %v410_v26 }
  0x5b PF: > { %s11_s8 = sadd.s32 1, %s433_s8   ;;  %s526_s6 = smov %s429_s7 }
  0x5c   : > { %p8_p5 = scmp.ge.s32.totalorder %s11_s8, 4   ;;  %s527_s7 = smov %s529_s9 }
  0x5e   :  { %10 = sbr.rel (!%p8_p5) target bundleno = 2 (0x2), region = 54 }

// kernel: _lambda_.30
= control target key start
LH: loop header
LB: loop body
LE: loop exit
PB: predicated region body
PF: predicated region fallthrough
CT: control target
= control target key end

     0   :  { %s1052_s12 = smov 0   ;;  %s1054_s13 = smov 0   ;;  %s1184_s0 = inlined_call_operand.vmem [shape: bf16[128,6272], index: 0, kind: input, shape index: {}]   ;;  %s1185_s1 = inlined_call_operand.vmem [shape: bf16[6272,128], index: 1, kind: input, shape index: {}]   ;;  %s1186_s2 = inlined_call_operand.vmem [shape: f32[1,128], index: 2, kind: input, shape index: {}]   ;;  %s1187_s3 = inlined_call_operand.vmem [shape: bf16[128,128], index: 3, kind: output, shape index: {}]  }
   0x1   :  { %s1056_s14 = smov 0   ;;  %s1058_s15 = smov 0  }
   0x2   :  { %s1060_s16 = smov 0  }
   0x3 LB: > { %s25_s17 = sadd.s32 1, %s1025_s15  ;;  %p48_p1 = scmp.ne.s32.totalorder %s1017_s13, %s1013_s12  ;;  %s1029_s16 = sphi %s1060_s16, %s13_s16   ;;  %s1025_s15 = sphi %s1058_s15, %s1191_s15   ;;  %s1021_s14 = sphi %s1056_s14, %s1190_s14   ;;  %s1017_s13 = sphi %s1054_s13, %s1189_s13   ;;  %s1013_s12 = sphi %s1052_s12, %s1188_s12  }
   0x4   : > { %p26_p0 = scmp.ge.s32.totalorder %s25_s17, 49  ;;  %p49_p2 = scmp.eq.s32.totalorder %s1029_s16, 0 }
   0x5   : > { %s41_s19 = sadd.s32 1, %s1017_s13  ;;  %p785_p5 = scmp.ge.s32.totalorder %s1029_s16, 49 }
   0x6   : > { %s1193_s17 = smov (%p26_p0, %s25_s17), 0  ;;  %p50_p3 = por %p49_p2, %p48_p1 }
   0x7   : > { %s37_s18 = ssub.s32 %s1025_s15, %s1193_s17  ;;  %162 = sbr.rel (%p785_p5) target bundleno = 32 (0x20), region = 20 }
   0x8   : > { %p39_p4 = scmp.eq.s32.totalorder %s37_s18, 0 }
   0xa   : > { %s1087_s20 = scalar_select %p39_p4, %s1017_s13, %s41_s19  }
   0xc   : > { %165 = sbr.rel (!%p50_p3) target bundleno = 32 (0x20), region = 24  ;;  %s167_s21 = sand.u32 (%p50_p3), 1, %s1017_s13  }
   0xd   : > { %s787_s22 = sshll.u32 (%p50_p3), %s1025_s15, 2  ;;  %s786_s23 = sshll.u32 (%p50_p3), %s167_s21, 6 }
   0xe   : > { %s1095_s26 = scalar_lea.vmem (%p50_p3), %s1184_s0, %s787_s22  ;;  %s169_s27 = scalar_lea.vmem (%p50_p3), [#allocation3], %s786_s23 }
   0xf   : > { %v191_v0 = vld [vmem:[%s1095_s26] sm:$0xf] (%p50_p3)  ;;  %v193_v1 = vld [vmem:[%s1095_s26 + $0xc4] sm:$0xf] (%p50_p3)  ;;  %v195_v2 = vld [vmem:[%s1095_s26 + $0x188] sm:$0xf] (%p50_p3) }
  0x10   : > { %192 = vst [vmem:[%s169_s27] sm:$0xf] (%p50_p3), %v191_v0  ;;  %v197_v3 = vld [vmem:[%s1095_s26 + $0x24c] sm:$0xf] (%p50_p3)  ;;  %v199_v4 = vld [vmem:[%s1095_s26 + $0x310] sm:$0xf] (%p50_p3) }
  0x11   : > { %194 = vst [vmem:[%s169_s27 + $0x4] sm:$0xf] %v193_v1  ;;  %v201_v5 = vld [vmem:[%s1095_s26 + $0x3d4] sm:$0xf]  ;;  %v203_v6 = vld [vmem:[%s1095_s26 + $0x498] sm:$0xf] }
  0x12   : > { %196 = vst [vmem:[%s169_s27 + $0x8] sm:$0xf] %v195_v2  ;;  %v205_v7 = vld [vmem:[%s1095_s26 + $0x55c] sm:$0xf]  ;;  %v207_v8 = vld [vmem:[%s1095_s26 + $0x620] sm:$0xf] }
  0x13   : > { %198 = vst [vmem:[%s169_s27 + $0xc] sm:$0xf] %v197_v3  ;;  %v209_v9 = vld [vmem:[%s1095_s26 + $0x6e4] sm:$0xf]  ;;  %v211_v10 = vld [vmem:[%s1095_s26 + $0x7a8] sm:$0xf] }
  0x14   : > { %200 = vst [vmem:[%s169_s27 + $0x10] sm:$0xf] %v199_v4  ;;  %v213_v11 = vld [vmem:[%s1095_s26 + $0x86c] sm:$0xf]  ;;  %v215_v12 = vld [vmem:[%s1095_s26 + $0x930] sm:$0xf] }
  0x15   : > { %202 = vst [vmem:[%s169_s27 + $0x14] sm:$0xf] %v201_v5  ;;  %v217_v13 = vld [vmem:[%s1095_s26 + $0x9f4] sm:$0xf]  ;;  %v219_v14 = vld [vmem:[%s1095_s26 + $0xab8] sm:$0xf] }
  0x16   : > { %204 = vst [vmem:[%s169_s27 + $0x18] sm:$0xf] %v203_v6  ;;  %v221_v15 = vld [vmem:[%s1095_s26 + $0xb7c] sm:$0xf] }
  0x17   : > { %206 = vst [vmem:[%s169_s27 + $0x1c] sm:$0xf] %v205_v7 }
  0x18   : > { %208 = vst [vmem:[%s169_s27 + $0x20] sm:$0xf] %v207_v8 }
  0x19   : > { %210 = vst [vmem:[%s169_s27 + $0x24] sm:$0xf] %v209_v9 }
  0x1a   : > { %212 = vst [vmem:[%s169_s27 + $0x28] sm:$0xf] %v211_v10 }
  0x1b   : > { %214 = vst [vmem:[%s169_s27 + $0x2c] sm:$0xf] %v213_v11 }
  0x1c   : > { %216 = vst [vmem:[%s169_s27 + $0x30] sm:$0xf] %v215_v12 }
  0x1d   : > { %218 = vst [vmem:[%s169_s27 + $0x34] sm:$0xf] %v217_v13 }
  0x1e   : > { %220 = vst [vmem:[%s169_s27 + $0x38] sm:$0xf] %v219_v14 }
  0x1f   : > { %222 = vst [vmem:[%s169_s27 + $0x3c] sm:$0xf] %v221_v15 }
  0x20 PF: > { %p788_p6 = scmp.ge.s32.totalorder %s1029_s16, 1  ;;  %p289_p7 = scmp.lt.s32.totalorder %s1029_s16, 50 }
  0x22   : > { %p290_p8 = pnand %p788_p6, %p289_p7 }
  0x23   : > { %s296_s28 = sand.u32 (!%p290_p8), 1, %s1013_s12   ;;  %s790_s29 = sshll.u32 (!%p290_p8), %s1021_s14, 4 }
  0x24   : > { %293 = sbr.rel (%p290_p8) target bundleno = 270 (0x10e), region = 69  ;;  %s789_s30 = sshll.u32 (!%p290_p8), %s296_s28, 6 }
  0x25   : > { %p335_p9 = scmp.lt.s32.totalorder (!%p290_p8), %s790_s29, 783  ;;  %s1122_s8 = scalar_lea.vmem (!%p290_p8), [#allocation3], %s789_s30 }
  0x26   : > { %p792_p10 = scmp.ne.s32.totalorder (!%p290_p8), %s1021_s14, 0 }
  0x29   : > { %s1195_s29 = smov (!%p335_p9, %s790_s29), 783  ;;  %358 = sbr.rel (%p792_p10) target bundleno = 63 (0x3f), region = 77 }
  0x2a   : > { %s791_s4 = sshll.u32 %s1195_s29, 2 }
  0x2b   : > { %s1120_s7 = scalar_lea.vmem %s1185_s1, %s791_s4 }
  0x2e   : > { %v1031_v16 = vmov 0.0  }
  0x2f   : > { %359 = vst [vmem:[#allocation2 + $0x30] sm:$0xff] %v1031_v16 }
  0x30   : > { %360 = vst [vmem:[#allocation2] sm:$0xff] %v1031_v16 }
  0x31   : > { %361 = vst [vmem:[#allocation2 + $0x58] sm:$0xff] %v1031_v16 }
  0x32   : > { %362 = vst [vmem:[#allocation2 + $0x18] sm:$0xff] %v1031_v16 }
  0x33   : > { %363 = vst [vmem:[#allocation2 + $0x50] sm:$0xff] %v1031_v16 }
  0x34   : > { %364 = vst [vmem:[#allocation2 + $0x68] sm:$0xff] %v1031_v16 }
  0x35   : > { %365 = vst [vmem:[#allocation2 + $0x8] sm:$0xff] %v1031_v16 }
  0x36   : > { %366 = vst [vmem:[#allocation2 + $0x48] sm:$0xff] %v1031_v16 }
  0x37   : > { %367 = vst [vmem:[#allocation2 + $0x40] sm:$0xff] %v1031_v16 }
  0x38   : > { %368 = vst [vmem:[#allocation2 + $0x20] sm:$0xff] %v1031_v16 }
  0x39   : > { %369 = vst [vmem:[#allocation2 + $0x10] sm:$0xff] %v1031_v16 }
  0x3a   : > { %370 = vst [vmem:[#allocation2 + $0x38] sm:$0xff] %v1031_v16 }
  0x3b   : > { %371 = vst [vmem:[#allocation2 + $0x60] sm:$0xff] %v1031_v16 }
  0x3c   : > { %372 = vst [vmem:[#allocation2 + $0x70] sm:$0xff] %v1031_v16 }
  0x3d   : > { %373 = vst [vmem:[#allocation2 + $0x78] sm:$0xff] %v1031_v16 }
  0x3e   : > { %374 = vst [vmem:[#allocation2 + $0x28] sm:$0xff] %v1031_v16 }
  0x3f PF: > { %v877_v17 = vld [vmem:[%s1120_s7 + $0x38] sm:$0xff]  ;;  %v876_v18 = vld [vmem:[%s1120_s7 + $0x30] sm:$0xff]  ;;  %v875_v19 = vld [vmem:[%s1120_s7 + $0x28] sm:$0xff]  ;;  %p857_p11 = scmp.ne.s32.totalorder %s1021_s14, 48 }
  0x40   : > { %519 = vmatpush.bf16.msra.mxu0 %v877_v17  ;;  %925 = vmatpush.bf16.msra.mxu1 %v877_v17  ;;  %v874_v20 = vld [vmem:[%s1120_s7 + $0x20] sm:$0xff]  ;;  %v873_v21 = vld [vmem:[%s1120_s7 + $0x18] sm:$0xff]  ;;  %v872_v22 = vld [vmem:[%s1120_s7 + $0x10] sm:$0xff] }
  0x41   : > { %926 = vmatpush.bf16.msra.mxu2 %v877_v17  ;;  %927 = vmatpush.bf16.msra.mxu3 %v877_v17  ;;  %v871_v23 = vld [vmem:[%s1120_s7 + $0x8] sm:$0xff]  ;;  %v870_v24 = vld [vmem:[%s1120_s7] sm:$0xff]  ;;  %v864_v26 = vld [vmem:[%s1122_s8 + $0x10] sm:$0xff] }
  0x42   : > { %v862_v25 = vld [vmem:[%s1122_s8] sm:$0xff]  ;;  %v868_v28 = vld [vmem:[%s1122_s8 + $0x30] sm:$0xff]  ;;  %v863_v29 = vld [vmem:[%s1122_s8 + $0x8] sm:$0xff] }
  0x43   : > { %v866_v27 = vld [vmem:[%s1122_s8 + $0x20] sm:$0xff]  ;;  %v865_v30 = vld [vmem:[%s1122_s8 + $0x18] sm:$0xff]  ;;  %v867_v31 = vld [vmem:[%s1122_s8 + $0x28] sm:$0xff] }
  0x44   : > { %520 = vmatpush.bf16.msra.mxu0 %v876_v18  ;;  %928 = vmatpush.bf16.msra.mxu1 %v876_v18  ;;  %v869_v32 = vld [vmem:[%s1122_s8 + $0x38] sm:$0xff]  ;;  %v375_v33 = vld [vmem:[#allocation2 + $0x30] sm:$0xff]  ;;  %v383_v39 = vld [vmem:[#allocation2 + $0x40] sm:$0xff] }
  0x45   : > { %929 = vmatpush.bf16.msra.mxu2 %v876_v18  ;;  %930 = vmatpush.bf16.msra.mxu3 %v876_v18  ;;  %v379_v34 = vld [vmem:[#allocation2 + $0x50] sm:$0xff]  ;;  %v387_v40 = vld [vmem:[#allocation2 + $0x60] sm:$0xff]  ;;  %v380_v42 = vld [vmem:[#allocation2 + $0x68] sm:$0xff] }
  0x46   : > { %v376_v41 = vld [vmem:[#allocation2] sm:$0xff]  ;;  %v388_v52 = vld [vmem:[#allocation2 + $0x70] sm:$0xff]  ;;  %v377_v53 = vld [vmem:[#allocation2 + $0x58] sm:$0xff] }
  0x47   : > { %v384_v51 = vld [vmem:[#allocation2 + $0x20] sm:$0xff]  ;;  %v381_v54 = vld [vmem:[#allocation2 + $0x8] sm:$0xff]  ;;  %v385_v63 = vld [vmem:[#allocation2 + $0x10] sm:$0xff] }
  0x48   : > { %521 = vmatpush.bf16.msra.mxu0 %v875_v19  ;;  %931 = vmatpush.bf16.msra.mxu1 %v875_v19  ;;  %v389_v0 = vld [vmem:[#allocation2 + $0x78] sm:$0xff]  ;;  %v382_v2 = vld [vmem:[#allocation2 + $0x48] sm:$0xff] }
  0x49   : > { %932 = vmatpush.bf16.msra.mxu2 %v875_v19  ;;  %933 = vmatpush.bf16.msra.mxu3 %v875_v19  ;;  %v378_v1 = vld [vmem:[#allocation2 + $0x18] sm:$0xff]  ;;  %v390_v12 = vld [vmem:[#allocation2 + $0x28] sm:$0xff] }
  0x4a   : > { %v386_v11 = vld [vmem:[#allocation2 + $0x38] sm:$0xff] }
  0x4c   : > { %522 = vmatpush.bf16.msra.mxu0 %v874_v20  ;;  %934 = vmatpush.bf16.msra.mxu1 %v874_v20 }
  0x4d   : > { %935 = vmatpush.bf16.msra.mxu2 %v874_v20  ;;  %936 = vmatpush.bf16.msra.mxu3 %v874_v20 }
  0x50   : > { %523 = vmatpush.bf16.msra.mxu0 %v873_v21  ;;  %937 = vmatpush.bf16.msra.mxu1 %v873_v21 }
  0x51   : > { %938 = vmatpush.bf16.msra.mxu2 %v873_v21  ;;  %939 = vmatpush.bf16.msra.mxu3 %v873_v21 }
  0x54   : > { %524 = vmatpush.bf16.msra.mxu0 %v872_v22  ;;  %940 = vmatpush.bf16.msra.mxu1 %v872_v22 }
  0x55   : > { %941 = vmatpush.bf16.msra.mxu2 %v872_v22  ;;  %942 = vmatpush.bf16.msra.mxu3 %v872_v22 }
  0x58   : > { %525 = vmatpush.bf16.msra.mxu0 %v871_v23  ;;  %943 = vmatpush.bf16.msra.mxu1 %v871_v23 }
  0x59   : > { %944 = vmatpush.bf16.msra.mxu2 %v871_v23  ;;  %945 = vmatpush.bf16.msra.mxu3 %v871_v23 }
  0x5c   : > { %526 = vmatpush.bf16.msra.mxu0 %v870_v24  ;;  %946 = vmatpush.bf16.msra.mxu1 %v870_v24 }
  0x5d   : > { %947 = vmatpush.bf16.msra.mxu2 %v870_v24  ;;  %948 = vmatpush.bf16.msra.mxu3 %v870_v24 }
  0x5f   : > { %527 = vmatmul.bf16.vlgmr.msra.gmra.mxu0 %v862_v25  ;;  %537 = vmatmul.bf16.vlgmr.msra.gmra.mxu1 %v864_v26 }
  0x60   : > { %547 = vmatmul.bf16.vlgmr.msra.gmra.mxu2 %v866_v27  ;;  %557 = vmatmul.bf16.vlgmr.msra.gmra.mxu3 %v868_v28 }
  0x6f   : > { %532 = vmatmul.bf16.gmra.mxu0 %v863_v29  ;;  %542 = vmatmul.bf16.gmra.mxu1 %v865_v30 }
  0x70   : > { %552 = vmatmul.bf16.gmra.mxu2 %v867_v31  ;;  %562 = vmatmul.bf16.gmra.mxu3 %v869_v32 }
  0xdc   : > { %v528_v35 = vpop.f32.mrf.mxu0  ;;  %v538_v36 = vpop.f32.mrf.mxu1 }
  0xdd   : > { %v568_v37 = vadd.f32 %v528_v35, %v375_v33  ;;  %v572_v38 = vadd.f32 %v538_v36, %v379_v34 }
  0xdf   : > { %584 = vst [vmem:[#allocation2 + $0x30] sm:$0xff] %v568_v37 }
  0xe0   : > { %588 = vst [vmem:[#allocation2 + $0x50] sm:$0xff] %v572_v38 }
  0xe3   : > { %v548_v43 = vpop.f32.mrf.mxu2  ;;  %v558_v44 = vpop.f32.mrf.mxu3 }
  0xe4   : > { %v576_v45 = vadd.f32 %v548_v43, %v383_v39  ;;  %v580_v46 = vadd.f32 %v558_v44, %v387_v40  ;;  %v530_v47 = vpop.f32.mrf.mxu0  ;;  %v540_v48 = vpop.f32.mrf.mxu1 }
  0xe5   : > { %v569_v49 = vadd.f32 %v530_v47, %v376_v41  ;;  %v573_v50 = vadd.f32 %v540_v48, %v380_v42 }
  0xe6   : > { %592 = vst [vmem:[#allocation2 + $0x40] sm:$0xff] %v576_v45 }
  0xe7   : > { %596 = vst [vmem:[#allocation2 + $0x60] sm:$0xff] %v580_v46 }
  0xe8   : > { %585 = vst [vmem:[#allocation2] sm:$0xff] %v569_v49 }
  0xe9   : > { %589 = vst [vmem:[#allocation2 + $0x68] sm:$0xff] %v573_v50 }
  0xeb   : > { %v550_v55 = vpop.f32.mrf.mxu2  ;;  %v560_v56 = vpop.f32.mrf.mxu3 }
  0xec   : > { %v577_v57 = vadd.f32 %v550_v55, %v384_v51  ;;  %v581_v58 = vadd.f32 %v560_v56, %v388_v52  ;;  %v533_v59 = vpop.f32.mrf.mxu0  ;;  %v543_v60 = vpop.f32.mrf.mxu1 }
  0xed   : > { %v570_v61 = vadd.f32 %v533_v59, %v377_v53  ;;  %v574_v62 = vadd.f32 %v543_v60, %v381_v54 }
  0xee   : > { %593 = vst [vmem:[#allocation2 + $0x20] sm:$0xff] %v577_v57 }
  0xef   : > { %597 = vst [vmem:[#allocation2 + $0x70] sm:$0xff] %v581_v58 }
  0xf0   : > { %586 = vst [vmem:[#allocation2 + $0x58] sm:$0xff] %v570_v61 }
  0xf1   : > { %590 = vst [vmem:[#allocation2 + $0x8] sm:$0xff] %v574_v62 }
  0xf3   : > { %v553_v3 = vpop.f32.mrf.mxu2  ;;  %v563_v4 = vpop.f32.mrf.mxu3 }
  0xf4   : > { %v578_v5 = vadd.f32 %v553_v3, %v385_v63  ;;  %v582_v6 = vadd.f32 %v563_v4, %v389_v0  ;;  %v535_v7 = vpop.f32.mrf.mxu0  ;;  %v545_v8 = vpop.f32.mrf.mxu1 }
  0xf5   : > { %v571_v9 = vadd.f32 %v535_v7, %v378_v1  ;;  %v575_v10 = vadd.f32 %v545_v8, %v382_v2 }
  0xf6   : > { %594 = vst [vmem:[#allocation2 + $0x10] sm:$0xff] %v578_v5 }
  0xf7   : > { %598 = vst [vmem:[#allocation2 + $0x78] sm:$0xff] %v582_v6 }
  0xf8   : > { %587 = vst [vmem:[#allocation2 + $0x18] sm:$0xff] %v571_v9 }
  0xf9   : > { %591 = vst [vmem:[#allocation2 + $0x48] sm:$0xff] %v575_v10 }
  0xfb   : > { %v555_v13 = vpop.f32.mrf.mxu2  ;;  %v565_v14 = vpop.f32.mrf.mxu3  ;;  %603 = sbr.rel (%p857_p11) target bundleno = 270 (0x10e), region = 81 }
  0xfc   : > { %v579_v15 = vadd.f32 %v555_v13, %v386_v11  ;;  %v583_v16 = vadd.f32 %v565_v14, %v390_v12 }
  0xfe   : > { %595 = vst [vmem:[#allocation2 + $0x38] sm:$0xff] %v579_v15 }
  0xff   : > { %599 = vst [vmem:[#allocation2 + $0x28] sm:$0xff] %v583_v16 }
 0x100   : > { %v604_v17 = vld [vmem:[#allocation2 + $0x30] sm:$0xff]  ;;  %v605_v18 = vld [vmem:[#allocation2] sm:$0xff]  ;;  %v606_v20 = vld [vmem:[#allocation2 + $0x58] sm:$0xff] }
 0x101   : > { %v990_v19 = vld [vmem:[%s1186_s2] ss:$0 sm:$0xff]  ;;  %v607_v21 = vld [vmem:[#allocation2 + $0x18] sm:$0xff]  ;;  %v608_v22 = vld [vmem:[#allocation2 + $0x50] sm:$0xff] }
 0x102   : > { %v609_v23 = vld [vmem:[#allocation2 + $0x68] sm:$0xff]  ;;  %v624_v25 = vadd.f32 %v990_v19, %v604_v17  ;;  %v625_v26 = vadd.f32 %v990_v19, %v605_v18  ;;  %v626_v27 = vadd.f32 %v990_v19, %v606_v20  ;;  %v627_v28 = vadd.f32 %v990_v19, %v607_v21  ;;  %v612_v30 = vld [vmem:[#allocation2 + $0x40] sm:$0xff]  ;;  %v614_v36 = vld [vmem:[#allocation2 + $0x10] sm:$0xff] }
 0x103   : > { %v610_v24 = vld [vmem:[#allocation2 + $0x8] sm:$0xff]  ;;  %v613_v31 = vld [vmem:[#allocation2 + $0x20] sm:$0xff]  ;;  %v628_v32 = vadd.f32 %v990_v19, %v608_v22  ;;  %v629_v33 = vadd.f32 %v990_v19, %v609_v23  ;;  %v632_v41 = vadd.f32 %v990_v19, %v612_v30  ;;  %v617_v43 = vld [vmem:[#allocation2 + $0x70] sm:$0xff]  ;;  %v634_v48 = vadd.f32 %v990_v19, %v614_v36 }
 0x104   : > { %v611_v29 = vld [vmem:[#allocation2 + $0x48] sm:$0xff]  ;;  %v630_v34 = vadd.f32 %v990_v19, %v610_v24  ;;  %v616_v38 = vld [vmem:[#allocation2 + $0x60] sm:$0xff]  ;;  %v881_v39 = vpack.c.bf16 %v625_v26, %v624_v25  ;;  %v886_v40 = vpack.c.bf16 %v627_v28, %v626_v27  ;;  %v633_v42 = vadd.f32 %v990_v19, %v613_v31  ;;  %v618_v44 = vld [vmem:[#allocation2 + $0x78] sm:$0xff] }
 0x105   : > { %v631_v35 = vadd.f32 %v990_v19, %v611_v29  ;;  %v615_v37 = vld [vmem:[#allocation2 + $0x38] sm:$0xff]  ;;  %v891_v46 = vpack.c.bf16 %v629_v33, %v628_v32  ;;  %v636_v51 = vadd.f32 %v990_v19, %v616_v38  ;;  %v637_v52 = vadd.f32 %v990_v19, %v617_v43 }
 0x106   : > { %v619_v45 = vld [vmem:[#allocation2 + $0x28] sm:$0xff]  ;;  %v635_v49 = vadd.f32 %v990_v19, %v615_v37  ;;  %882 = vst [vmem:[%s1187_s3] sm:$0xff] %v881_v39   ;;  %v901_v50 = vpack.c.bf16 %v633_v42, %v632_v41  ;;  %v638_v53 = vadd.f32 %v990_v19, %v618_v44 }
 0x107   : > { %v896_v47 = vpack.c.bf16 %v631_v35, %v630_v34  ;;  %918 = vst [vmem:[%s1187_s3 + $0x8] sm:$0xff] %v886_v40   ;;  %v639_v55 = vadd.f32 %v990_v19, %v619_v45  ;;  %v911_v56 = vpack.c.bf16 %v637_v52, %v636_v51 }
 0x108   : > { %v906_v54 = vpack.c.bf16 %v635_v49, %v634_v48  ;;  %919 = vst [vmem:[%s1187_s3 + $0x10] sm:$0xff] %v891_v46  }
 0x109   : > { %920 = vst [vmem:[%s1187_s3 + $0x18] sm:$0xff] %v896_v47   ;;  %v916_v57 = vpack.c.bf16 %v639_v55, %v638_v53 }
 0x10a   : > { %921 = vst [vmem:[%s1187_s3 + $0x20] sm:$0xff] %v901_v50  }
 0x10b   : > { %922 = vst [vmem:[%s1187_s3 + $0x28] sm:$0xff] %v906_v54  }
 0x10c   : > { %923 = vst [vmem:[%s1187_s3 + $0x30] sm:$0xff] %v911_v56  }
 0x10d   : > { %924 = vst [vmem:[%s1187_s3 + $0x38] sm:$0xff] %v916_v57  }
 0x10e PF: > { %s13_s16 = sadd.s32 1, %s1029_s16   ;;  %s1188_s12 = smov %s1017_s13 }
 0x10f   : > { %p10_p12 = scmp.ge.s32.totalorder %s13_s16, 51   ;;  %s1189_s13 = smov %s1087_s20 }
 0x110   : > { %s1190_s14 = smov %s1025_s15  ;;  %s1191_s15 = smov %s1193_s17 }
 0x111   :  { %12 = sbr.rel (!%p10_p12) target bundleno = 3 (0x3), region = 122 }

</bundles_post_ra>
